<compile_context>
chip_gen: v6e
topology: v6e:2x2x1
jax: 0.10.0
libtpu: 0.0.40
codegen_flags: <defaults>
</compile_context>

<pallas_src>
import functools

import jax
import jax.numpy as jnp
from jax import lax
from jax.experimental import pallas as pl
from jax.experimental.pallas import tpu as pltpu
import numpy as np


_VMEM = pl.BlockSpec(memory_space=pltpu.MemorySpace.VMEM)
_LANES = 128


def _round_up(x, m):
    return ((x + m - 1) // m) * m


# ----------------------------------------------------------------------------
# Fused Pallas kernel: embedded tokens -> full bi-GRU stack -> Linear logits
# ----------------------------------------------------------------------------
def make_fused_bigru_fc_kernel(nlayers, T, BP, H, P, OUTP, n_ybuf):
    """Builds the fused kernel.

    Ref order (flat):
      x2d (T*BP, H)                                              [input]
      per layer l:  wif (Cin_l, 3P), wib (Cin_l, 3P),
                    bf (1, 3P), bb (1, 3P),
                    wh (P, 3P), bhn (1, P), fcw (P, OUTP)        [inputs]
      fcb (1, OUTP)                                              [input]
      out (BP, OUTP)                                             [output]
      gxf (T*BP, 3P), gxb (T*BP, 3P), ybuf x n_ybuf (T*BP, 2H)   [VMEM scratch]

    Lane layout of every gate block (width P): [fwd H | bwd H | zero pad].
    """
    TWO_H = 2 * H

    def kernel(*refs):
        it = iter(refs)
        x_ref = next(it)
        layers = []
        for _ in range(nlayers):
            layers.append(dict(wif=next(it), wib=next(it), bf=next(it),
                               bb=next(it), wh=next(it), bhn=next(it),
                               fcw=next(it)))
        fcb_ref = next(it)
        out_ref = next(it)
        gxf_ref = next(it)
        gxb_ref = next(it)
        ybufs = [next(it) for _ in range(n_ybuf)]

        # Lane-dense logits accumulator lives directly in the output block.
        out_ref[...] = jnp.broadcast_to(fcb_ref[...], (BP, OUTP))

        src = x_ref
        for l in range(nlayers):
            p = layers[l]
            last = (l == nlayers - 1)
            y_out = None if last else ybufs[l % n_ybuf]

            # ---- hoisted input projections for BOTH directions and all T
            #      timesteps (biases folded), spilled to VMEM scratch; the
            #      time loop only re-loads a (BP, 3P) slice per step. ----
            x_all = src[...]
            gxf_ref[...] = (jnp.dot(x_all, p["wif"][...],
                                    preferred_element_type=jnp.float32)
                            + p["bf"][...]).astype(gxf_ref.dtype)
            gxb_ref[...] = (jnp.dot(x_all, p["wib"][...],
                                    preferred_element_type=jnp.float32)
                            + p["bb"][...]).astype(gxb_ref.dtype)

            wh_ref = p["wh"]
            bhn = p["bhn"][...]                                   # (1, P) f32

            def step(s, h):
                # fwd direction handles time s; bwd direction handles T-1-s.
                rf = s * BP
                rb = (T - 1 - s) * BP
                if not isinstance(s, int):
                    rf = pl.multiple_of(rf, BP)
                    rb = pl.multiple_of(rb, BP)
                # One packed recurrent matmul: both directions, all 3 gates.
                gh = jnp.dot(h.astype(wh_ref.dtype), wh_ref[...],
                             preferred_element_type=jnp.float32)  # (BP, 3P)
                gx = (gxf_ref[pl.ds(rf, BP), :].astype(jnp.float32)
                      + gxb_ref[pl.ds(rb, BP), :].astype(jnp.float32))
                r = jax.nn.sigmoid(gx[:, 0:P] + gh[:, 0:P])
                z = jax.nn.sigmoid(gx[:, P:2 * P] + gh[:, P:2 * P])
                n = jnp.tanh(gx[:, 2 * P:3 * P]
                             + r * (gh[:, 2 * P:3 * P] + bhn))
                h_new = (1.0 - z) * n + z * h                     # (BP, P) f32
                if y_out is not None:        # last layer: only hT is needed
                    y_out[pl.ds(rf, BP), 0:H] = (
                        h_new[:, 0:H].astype(y_out.dtype))
                    y_out[pl.ds(rb, BP), H:TWO_H] = (
                        h_new[:, H:TWO_H].astype(y_out.dtype))
                return h_new

            h0 = jnp.zeros((BP, P), jnp.float32)
            if T <= 16:
                hT = h0
                for s in range(T):           # small T: fully static
                    hT = step(s, hT)
            else:                            # large T: bounded live ranges
                hT = lax.fori_loop(0, T, step, h0, unroll=8)

            # Classifier contribution of this layer's final hidden states
            # (fwd at lanes [0:H], bwd at [H:2H]); fcw rows are laid out to
            # match, so the (B, 2L*H) feature concat is never materialized.
            out_ref[...] = out_ref[...] + jnp.dot(
                hT.astype(p["fcw"].dtype), p["fcw"][...],
                preferred_element_type=jnp.float32)

            # TODO(synk): inter-layer dropout (p=0.5) would be applied to
            #             y_out here in training mode; identity in eval mode.
            if not last:
                src = y_out

    return kernel


# ----------------------------------------------------------------------------
# One-time parameter re-layout (PyTorch layout -> fused-kernel layout)
# ----------------------------------------------------------------------------
def pack_params(params, compute_dtype=jnp.bfloat16):
    """Gate-separate, transpose, direction-pack (lane-pad each gate block to
    P=128), fold biases and pad the classifier to 128 output lanes — ONCE."""
    H = params["embedding"].shape[1]
    nclasses = params["fc_w"].shape[0]
    P = _round_up(2 * H, _LANES)
    OUTP = _round_up(nclasses, _LANES)

    flat = []
    for l, p in enumerate(params["gru"]):
        cin = H if l == 0 else 2 * H
        wh = jnp.zeros((P, 3 * P), jnp.float32)
        bhn = jnp.zeros((1, P), jnp.float32)
        fcw = jnp.zeros((P, OUTP), jnp.float32)
        wis, bis = [], []
        for d, dn in enumerate(("f", "b")):
            w_ih, w_hh = p[f"w_ih_{dn}"], p[f"w_hh_{dn}"]
            b_ih, b_hh = p[f"b_ih_{dn}"], p[f"b_hh_{dn}"]
            c0 = d * H                      # lane offset of this direction
            wi = jnp.zeros((cin, 3 * P), jnp.float32)
            bi = jnp.zeros((1, 3 * P), jnp.float32)
            for g in range(3):              # gate order: r, z, n
                wi = wi.at[:, g * P + c0:g * P + c0 + H].set(
                    w_ih[g * H:(g + 1) * H, :].T)
                wh = wh.at[c0:c0 + H, g * P + c0:g * P + c0 + H].set(
                    w_hh[g * H:(g + 1) * H, :].T)
                # fold b_ih+b_hh for r/z; only b_ih for n (b_hn stays in r*(.))
                bg = b_ih[g * H:(g + 1) * H]
                if g < 2:
                    bg = bg + b_hh[g * H:(g + 1) * H]
                bi = bi.at[0, g * P + c0:g * P + c0 + H].set(bg)
            bhn = bhn.at[0, c0:c0 + H].set(b_hh[2 * H:3 * H])
            fcw = fcw.at[c0:c0 + H, 0:nclasses].set(
                params["fc_w"][:, (2 * l + d) * H:(2 * l + d + 1) * H].T)
            wis.append(wi.astype(compute_dtype))
            bis.append(bi)
        flat += [wis[0], wis[1], bis[0], bis[1],
                 wh.astype(compute_dtype), bhn, fcw.astype(compute_dtype)]

    fcb = jnp.zeros((1, OUTP), jnp.float32).at[0, 0:nclasses].set(params["fc_b"])
    flat.append(fcb)
    return tuple(flat)


# ----------------------------------------------------------------------------
# Forward (single pallas_call)
# ----------------------------------------------------------------------------
def fused_forward(tokens, embedding, packed, *, nlayers, dim, num_classes=5,
                  compute_dtype=jnp.bfloat16):
    """tokens: (T, B) int32. Returns (B, num_classes) f32 logits."""
    T, B = tokens.shape
    H = dim
    BP = _round_up(max(B, 1), 8)                  # pad batch to the sublane tile
    P = _round_up(2 * H, _LANES)
    OUTP = _round_up(num_classes, _LANES)
    n_ybuf = 1 if nlayers <= 2 else 2             # ping-pong only when needed

    # Embedding gather stays in XLA (data-dependent gather is glue, not compute).
    x = jnp.take(embedding, tokens, axis=0)       # (T, B, H)
    if BP != B:
        x = jnp.pad(x, ((0, 0), (0, BP - B), (0, 0)))
    x2d = x.reshape(T * BP, H).astype(compute_dtype)

    kernel = make_fused_bigru_fc_kernel(nlayers, T, BP, H, P, OUTP, n_ybuf)

    itemsize = jnp.dtype(compute_dtype).itemsize
    vmem_bytes = sum(int(np.prod(a.shape)) * jnp.dtype(a.dtype).itemsize
                     for a in (x2d,) + tuple(packed))
    vmem_bytes += BP * OUTP * 4                                   # output block
    vmem_bytes += (2 * T * BP * 3 * P + n_ybuf * T * BP * 2 * H) * itemsize
    vmem_limit = int(min(max(2 * vmem_bytes, 4 << 20) + (2 << 20), 48 << 20))

    out = pl.pallas_call(
        kernel,
        out_shape=jax.ShapeDtypeStruct((BP, OUTP), jnp.float32),
        in_specs=[_VMEM] * (1 + len(packed)),
        out_specs=_VMEM,
        scratch_shapes=(
            [pltpu.VMEM((T * BP, 3 * P), compute_dtype)] * 2          # gxf, gxb
            + [pltpu.VMEM((T * BP, 2 * H), compute_dtype)] * n_ybuf   # layer acts
        ),
        compiler_params=pltpu.CompilerParams(vmem_limit_bytes=vmem_limit),
    )(x2d, *packed)
    return out[:B, :num_classes]


# ----------------------------------------------------------------------------
# Pure-JAX reference (for correctness check only)
# ----------------------------------------------------------------------------
def gru_direction_ref(x_seq, h0, w_ih, w_hh, b_ih, b_hh):
    H = h0.shape[-1]

    def step(h, x_t):
        gx = x_t @ w_ih.T + b_ih
        gh = h @ w_hh.T + b_hh
        r = jax.nn.sigmoid(gx[:, 0 * H:1 * H] + gh[:, 0 * H:1 * H])
        z = jax.nn.sigmoid(gx[:, 1 * H:2 * H] + gh[:, 1 * H:2 * H])
        n = jnp.tanh(gx[:, 2 * H:3 * H] + r * gh[:, 2 * H:3 * H])
        h_new = (1.0 - z) * n + z * h
        return h_new, h_new

    hT, ys = lax.scan(step, h0, x_seq)
    return ys, hT


def forward_ref(tokens, params):
    T, B = tokens.shape
    H = params["embedding"].shape[1]
    nlayers = len(params["gru"])
    x = jnp.take(params["embedding"], tokens, axis=0)        # (T, B, H)

    hiddens = []
    layer_in = x
    for l in range(nlayers):
        p = params["gru"][l]
        h0 = jnp.zeros((B, H), jnp.float32)
        y_f, h_f = gru_direction_ref(layer_in, h0, p["w_ih_f"], p["w_hh_f"],
                                     p["b_ih_f"], p["b_hh_f"])
        y_b_rev, h_b = gru_direction_ref(layer_in[::-1], h0, p["w_ih_b"],
                                         p["w_hh_b"], p["b_ih_b"], p["b_hh_b"])
        y_b = y_b_rev[::-1]
        hiddens += [h_f, h_b]
        layer_in = jnp.concatenate([y_f, y_b], axis=-1)
    hidden = jnp.stack(hiddens, axis=0)                      # (2L, B, H)
    feats = jnp.transpose(hidden, (1, 0, 2)).reshape(B, -1)  # (B, 2L*H)
    return feats @ params["fc_w"].T + params["fc_b"]


# ----------------------------------------------------------------------------
# Deterministic parameter construction (PyTorch-style shapes & init ranges)
# ----------------------------------------------------------------------------
def init_params(key, vocab_size, dim, nlayers, num_classes=5):
    keys = iter(jax.random.split(key, 8 + nlayers * 16))
    k = 1.0 / np.sqrt(dim)

    def unif(shape):
        return jax.random.uniform(next(keys), shape, jnp.float32, -k, k)

    emb = jax.random.normal(next(keys), (vocab_size, dim), jnp.float32)
    emb = emb.at[1].set(0.0)                                 # padding_idx=1

    gru = []
    for l in range(nlayers):
        in_dim = dim if l == 0 else 2 * dim
        gru.append(dict(
            w_ih_f=unif((3 * dim, in_dim)), w_hh_f=unif((3 * dim, dim)),
            b_ih_f=unif((3 * dim,)),        b_hh_f=unif((3 * dim,)),
            w_ih_b=unif((3 * dim, in_dim)), w_hh_b=unif((3 * dim, dim)),
            b_ih_b=unif((3 * dim,)),        b_hh_b=unif((3 * dim,)),
        ))

    fc_in = nlayers * 2 * dim
    kf = 1.0 / np.sqrt(fc_in)
    fc_w = jax.random.uniform(next(keys), (num_classes, fc_in), jnp.float32, -kf, kf)
    fc_b = jax.random.uniform(next(keys), (num_classes,), jnp.float32, -kf, kf)

    return dict(embedding=emb, gru=gru, fc_w=fc_w, fc_b=fc_b)


# ----------------------------------------------------------------------------
if __name__ == "__main__":
    # Small shapes consistent with the module: seq=8, batch=2, dim=32, nlayers=2.
    VOCAB, DIM, NLAYERS = 16, 32, 2
    SEQ, BATCH = 8, 2

    root = jax.random.PRNGKey(0)
    k_par, k_tok = jax.random.split(root)
    params = init_params(k_par, VOCAB, DIM, NLAYERS)
    tokens = jax.random.randint(k_tok, (SEQ, BATCH), 0, VOCAB, dtype=jnp.int32)

    packed = pack_params(params)   # one-time weight re-layout (not per-forward)

    fwd_pallas = jax.jit(functools.partial(fused_forward, nlayers=NLAYERS, dim=DIM))
    out = jax.block_until_ready(fwd_pallas(tokens, params["embedding"], packed))

    ref = jax.block_until_ready(jax.jit(forward_ref)(tokens, params))

    assert out.shape == (BATCH, 5), out.shape
    # bf16 matmuls (f32 accumulation) vs an all-f32 reference -> looser tolerance.
    np.testing.assert_allclose(np.asarray(out), np.asarray(ref),
                               rtol=5e-2, atol=5e-2)
    print("KERNEL_OK")
</pallas_src>

<mosaic_0001>
module attributes {stable_mosaic.version = 11 : i64} {
  func.func @kernel(%arg0: memref<64x32xbf16, #tpu.memory_space<vmem>>, %arg1: memref<32x384xbf16, #tpu.memory_space<vmem>>, %arg2: memref<32x384xbf16, #tpu.memory_space<vmem>>, %arg3: memref<1x384xf32, #tpu.memory_space<vmem>>, %arg4: memref<1x384xf32, #tpu.memory_space<vmem>>, %arg5: memref<128x384xbf16, #tpu.memory_space<vmem>>, %arg6: memref<1x128xf32, #tpu.memory_space<vmem>>, %arg7: memref<128x128xbf16, #tpu.memory_space<vmem>>, %arg8: memref<64x384xbf16, #tpu.memory_space<vmem>>, %arg9: memref<64x384xbf16, #tpu.memory_space<vmem>>, %arg10: memref<1x384xf32, #tpu.memory_space<vmem>>, %arg11: memref<1x384xf32, #tpu.memory_space<vmem>>, %arg12: memref<128x384xbf16, #tpu.memory_space<vmem>>, %arg13: memref<1x128xf32, #tpu.memory_space<vmem>>, %arg14: memref<128x128xbf16, #tpu.memory_space<vmem>>, %arg15: memref<1x128xf32, #tpu.memory_space<vmem>>, %arg16: memref<8x128xf32, #tpu.memory_space<vmem>>, %arg17: memref<64x384xbf16, #tpu.memory_space<vmem>>, %arg18: memref<64x384xbf16, #tpu.memory_space<vmem>>, %arg19: memref<64x64xbf16, #tpu.memory_space<vmem>>) attributes {dimension_semantics = [], scalar_prefetch = 0 : i64, scratch_operands = 3 : i64, tpu.core_type = #tpu.core_type<tc>} {
    %c0 = arith.constant 0 : index
    %c0_0 = arith.constant 0 : index
    %0 = vector.load %arg15[%c0, %c0_0] : memref<1x128xf32, #tpu.memory_space<vmem>>, vector<1x128xf32>
    %1 = vector.shape_cast %0 : vector<1x128xf32> to vector<1x128xf32>
    %2 = vector.broadcast %1 : vector<1x128xf32> to vector<8x128xf32>
    %c0_1 = arith.constant 0 : index
    %c0_2 = arith.constant 0 : index
    %3 = vector.load %arg16[%c0_1, %c0_2] : memref<8x128xf32, #tpu.memory_space<vmem>>, vector<8x128xf32>
    tpu.vector_store %arg16[%c0_1, %c0_2], %2 {strides = array<i32>} : memref<8x128xf32, #tpu.memory_space<vmem>>, vector<8x128xf32>,
    %c0_3 = arith.constant 0 : index
    %c0_4 = arith.constant 0 : index
    %4 = vector.load %arg0[%c0_3, %c0_4] : memref<64x32xbf16, #tpu.memory_space<vmem>>, vector<64x32xbf16>
    %c0_5 = arith.constant 0 : index
    %c0_6 = arith.constant 0 : index
    %5 = vector.load %arg1[%c0_5, %c0_6] : memref<32x384xbf16, #tpu.memory_space<vmem>>, vector<32x384xbf16>
    %cst = arith.constant dense<0.000000e+00> : vector<64x384xf32>
    %6 = tpu.matmul %4, %5, %cst {dimension_numbers = #tpu.dot_dimension_numbers<[1], [0], [0], [1], [0, 0, 1, 1], [], []>} : vector<64x32xbf16>, vector<32x384xbf16>, vector<64x384xf32> -> vector<64x384xf32>
    %c0_7 = arith.constant 0 : index
    %c0_8 = arith.constant 0 : index
    %7 = vector.load %arg3[%c0_7, %c0_8] : memref<1x384xf32, #tpu.memory_space<vmem>>, vector<1x384xf32>
    %8 = vector.broadcast %7 : vector<1x384xf32> to vector<64x384xf32>
    %9 = arith.addf %6, %8 : vector<64x384xf32>
    %10 = arith.truncf %9 : vector<64x384xf32> to vector<64x384xbf16>
    %c0_9 = arith.constant 0 : index
    %c0_10 = arith.constant 0 : index
    %11 = vector.load %arg17[%c0_9, %c0_10] : memref<64x384xbf16, #tpu.memory_space<vmem>>, vector<64x384xbf16>
    tpu.vector_store %arg17[%c0_9, %c0_10], %10 {strides = array<i32>} : memref<64x384xbf16, #tpu.memory_space<vmem>>, vector<64x384xbf16>,
    %c0_11 = arith.constant 0 : index
    %c0_12 = arith.constant 0 : index
    %12 = vector.load %arg2[%c0_11, %c0_12] : memref<32x384xbf16, #tpu.memory_space<vmem>>, vector<32x384xbf16>
    %cst_13 = arith.constant dense<0.000000e+00> : vector<64x384xf32>
    %13 = tpu.matmul %4, %12, %cst_13 {dimension_numbers = #tpu.dot_dimension_numbers<[1], [0], [0], [1], [0, 0, 1, 1], [], []>} : vector<64x32xbf16>, vector<32x384xbf16>, vector<64x384xf32> -> vector<64x384xf32>
    %c0_14 = arith.constant 0 : index
    %c0_15 = arith.constant 0 : index
    %14 = vector.load %arg4[%c0_14, %c0_15] : memref<1x384xf32, #tpu.memory_space<vmem>>, vector<1x384xf32>
    %15 = vector.broadcast %14 : vector<1x384xf32> to vector<64x384xf32>
    %16 = arith.addf %13, %15 : vector<64x384xf32>
    %17 = arith.truncf %16 : vector<64x384xf32> to vector<64x384xbf16>
    %c0_16 = arith.constant 0 : index
    %c0_17 = arith.constant 0 : index
    %18 = vector.load %arg18[%c0_16, %c0_17] : memref<64x384xbf16, #tpu.memory_space<vmem>>, vector<64x384xbf16>
    tpu.vector_store %arg18[%c0_16, %c0_17], %17 {strides = array<i32>} : memref<64x384xbf16, #tpu.memory_space<vmem>>, vector<64x384xbf16>,
    %c0_18 = arith.constant 0 : index
    %c0_19 = arith.constant 0 : index
    %19 = vector.load %arg6[%c0_18, %c0_19] : memref<1x128xf32, #tpu.memory_space<vmem>>, vector<1x128xf32>
    %cst_20 = arith.constant 0.000000e+00 : f32
    %20 = vector.broadcast %cst_20 : f32 to vector<8x128xf32>
    %21 = arith.truncf %20 : vector<8x128xf32> to vector<8x128xbf16>
    %c0_21 = arith.constant 0 : index
    %c0_22 = arith.constant 0 : index
    %22 = vector.load %arg5[%c0_21, %c0_22] : memref<128x384xbf16, #tpu.memory_space<vmem>>, vector<128x384xbf16>
    %cst_23 = arith.constant dense<0.000000e+00> : vector<8x384xf32>
    %23 = tpu.matmul %21, %22, %cst_23 {dimension_numbers = #tpu.dot_dimension_numbers<[1], [0], [0], [1], [0, 0, 1, 1], [], []>} : vector<8x128xbf16>, vector<128x384xbf16>, vector<8x384xf32> -> vector<8x384xf32>
    %c0_24 = arith.constant 0 : index
    %c0_25 = arith.constant 0 : index
    %24 = vector.load %arg17[%c0_24, %c0_25] : memref<64x384xbf16, #tpu.memory_space<vmem>>, vector<8x384xbf16>
    %25 = arith.extf %24 : vector<8x384xbf16> to vector<8x384xf32>
    %c56 = arith.constant 56 : index
    %c0_26 = arith.constant 0 : index
    %26 = vector.load %arg18[%c56, %c0_26] : memref<64x384xbf16, #tpu.memory_space<vmem>>, vector<8x384xbf16>
    %27 = arith.extf %26 : vector<8x384xbf16> to vector<8x384xf32>
    %28 = arith.addf %25, %27 : vector<8x384xf32>
    %29 = vector.extract_strided_slice %28 {offsets = [0, 0], sizes = [8, 128], strides = [1, 1]} : vector<8x384xf32> to vector<8x128xf32>
    %30 = vector.extract_strided_slice %23 {offsets = [0, 0], sizes = [8, 128], strides = [1, 1]} : vector<8x384xf32> to vector<8x128xf32>
    %31 = arith.addf %29, %30 : vector<8x128xf32>
    %32 = arith.negf %31 : vector<8x128xf32>
    %33 = math.exp %32 : vector<8x128xf32>
    %cst_27 = arith.constant 1.000000e+00 : f32
    %34 = vector.broadcast %cst_27 : f32 to vector<8x128xf32>
    %35 = arith.addf %34, %33 : vector<8x128xf32>
    %36 = arith.divf %34, %35 : vector<8x128xf32>
    %37 = vector.extract_strided_slice %28 {offsets = [0, 128], sizes = [8, 128], strides = [1, 1]} : vector<8x384xf32> to vector<8x128xf32>
    %38 = vector.extract_strided_slice %23 {offsets = [0, 128], sizes = [8, 128], strides = [1, 1]} : vector<8x384xf32> to vector<8x128xf32>
    %39 = arith.addf %37, %38 : vector<8x128xf32>
    %40 = arith.negf %39 : vector<8x128xf32>
    %41 = math.exp %40 : vector<8x128xf32>
    %cst_28 = arith.constant 1.000000e+00 : f32
    %42 = vector.broadcast %cst_28 : f32 to vector<8x128xf32>
    %43 = arith.addf %42, %41 : vector<8x128xf32>
    %44 = arith.divf %42, %43 : vector<8x128xf32>
    %45 = vector.extract_strided_slice %28 {offsets = [0, 256], sizes = [8, 128], strides = [1, 1]} : vector<8x384xf32> to vector<8x128xf32>
    %46 = vector.extract_strided_slice %23 {offsets = [0, 256], sizes = [8, 128], strides = [1, 1]} : vector<8x384xf32> to vector<8x128xf32>
    %47 = vector.broadcast %19 : vector<1x128xf32> to vector<8x128xf32>
    %48 = arith.addf %46, %47 : vector<8x128xf32>
    %49 = arith.mulf %36, %48 : vector<8x128xf32>
    %50 = arith.addf %45, %49 : vector<8x128xf32>
    %51 = math.tanh %50 : vector<8x128xf32>
    %cst_29 = arith.constant 1.000000e+00 : f32
    %52 = vector.broadcast %cst_29 : f32 to vector<8x128xf32>
    %53 = arith.subf %52, %44 : vector<8x128xf32>
    %54 = arith.mulf %53, %51 : vector<8x128xf32>
    %55 = arith.mulf %44, %20 : vector<8x128xf32>
    %56 = arith.addf %54, %55 : vector<8x128xf32>
    %57 = vector.extract_strided_slice %56 {offsets = [0, 0], sizes = [8, 32], strides = [1, 1]} : vector<8x128xf32> to vector<8x32xf32>
    %58 = arith.truncf %57 : vector<8x32xf32> to vector<8x32xbf16>
    %c0_30 = arith.constant 0 : index
    %c0_31 = arith.constant 0 : index
    %59 = vector.load %arg19[%c0_30, %c0_31] : memref<64x64xbf16, #tpu.memory_space<vmem>>, vector<8x32xbf16>
    tpu.vector_store %arg19[%c0_30, %c0_31], %58 {strides = array<i32>} : memref<64x64xbf16, #tpu.memory_space<vmem>>, vector<8x32xbf16>,
    %60 = vector.extract_strided_slice %56 {offsets = [0, 32], sizes = [8, 32], strides = [1, 1]} : vector<8x128xf32> to vector<8x32xf32>
    %61 = arith.truncf %60 : vector<8x32xf32> to vector<8x32xbf16>
    %c56_32 = arith.constant 56 : index
    %c32 = arith.constant 32 : index
    %62 = vector.load %arg19[%c56_32, %c32] : memref<64x64xbf16, #tpu.memory_space<vmem>>, vector<8x32xbf16>
    tpu.vector_store %arg19[%c56_32, %c32], %61 {strides = array<i32>} : memref<64x64xbf16, #tpu.memory_space<vmem>>, vector<8x32xbf16>,
    %63 = arith.truncf %56 : vector<8x128xf32> to vector<8x128xbf16>
    %c0_33 = arith.constant 0 : index
    %c0_34 = arith.constant 0 : index
    %64 = vector.load %arg5[%c0_33, %c0_34] : memref<128x384xbf16, #tpu.memory_space<vmem>>, vector<128x384xbf16>
    %cst_35 = arith.constant dense<0.000000e+00> : vector<8x384xf32>
    %65 = tpu.matmul %63, %64, %cst_35 {dimension_numbers = #tpu.dot_dimension_numbers<[1], [0], [0], [1], [0, 0, 1, 1], [], []>} : vector<8x128xbf16>, vector<128x384xbf16>, vector<8x384xf32> -> vector<8x384xf32>
    %c8 = arith.constant 8 : index
    %c0_36 = arith.constant 0 : index
    %66 = vector.load %arg17[%c8, %c0_36] : memref<64x384xbf16, #tpu.memory_space<vmem>>, vector<8x384xbf16>
    %67 = arith.extf %66 : vector<8x384xbf16> to vector<8x384xf32>
    %c48 = arith.constant 48 : index
    %c0_37 = arith.constant 0 : index
    %68 = vector.load %arg18[%c48, %c0_37] : memref<64x384xbf16, #tpu.memory_space<vmem>>, vector<8x384xbf16>
    %69 = arith.extf %68 : vector<8x384xbf16> to vector<8x384xf32>
    %70 = arith.addf %67, %69 : vector<8x384xf32>
    %71 = vector.extract_strided_slice %70 {offsets = [0, 0], sizes = [8, 128], strides = [1, 1]} : vector<8x384xf32> to vector<8x128xf32>
    %72 = vector.extract_strided_slice %65 {offsets = [0, 0], sizes = [8, 128], strides = [1, 1]} : vector<8x384xf32> to vector<8x128xf32>
    %73 = arith.addf %71, %72 : vector<8x128xf32>
    %74 = arith.negf %73 : vector<8x128xf32>
    %75 = math.exp %74 : vector<8x128xf32>
    %cst_38 = arith.constant 1.000000e+00 : f32
    %76 = vector.broadcast %cst_38 : f32 to vector<8x128xf32>
    %77 = arith.addf %76, %75 : vector<8x128xf32>
    %78 = arith.divf %76, %77 : vector<8x128xf32>
    %79 = vector.extract_strided_slice %70 {offsets = [0, 128], sizes = [8, 128], strides = [1, 1]} : vector<8x384xf32> to vector<8x128xf32>
    %80 = vector.extract_strided_slice %65 {offsets = [0, 128], sizes = [8, 128], strides = [1, 1]} : vector<8x384xf32> to vector<8x128xf32>
    %81 = arith.addf %79, %80 : vector<8x128xf32>
    %82 = arith.negf %81 : vector<8x128xf32>
    %83 = math.exp %82 : vector<8x128xf32>
    %cst_39 = arith.constant 1.000000e+00 : f32
    %84 = vector.broadcast %cst_39 : f32 to vector<8x128xf32>
    %85 = arith.addf %84, %83 : vector<8x128xf32>
    %86 = arith.divf %84, %85 : vector<8x128xf32>
    %87 = vector.extract_strided_slice %70 {offsets = [0, 256], sizes = [8, 128], strides = [1, 1]} : vector<8x384xf32> to vector<8x128xf32>
    %88 = vector.extract_strided_slice %65 {offsets = [0, 256], sizes = [8, 128], strides = [1, 1]} : vector<8x384xf32> to vector<8x128xf32>
    %89 = vector.broadcast %19 : vector<1x128xf32> to vector<8x128xf32>
    %90 = arith.addf %88, %89 : vector<8x128xf32>
    %91 = arith.mulf %78, %90 : vector<8x128xf32>
    %92 = arith.addf %87, %91 : vector<8x128xf32>
    %93 = math.tanh %92 : vector<8x128xf32>
    %cst_40 = arith.constant 1.000000e+00 : f32
    %94 = vector.broadcast %cst_40 : f32 to vector<8x128xf32>
    %95 = arith.subf %94, %86 : vector<8x128xf32>
    %96 = arith.mulf %95, %93 : vector<8x128xf32>
    %97 = arith.mulf %86, %56 : vector<8x128xf32>
    %98 = arith.addf %96, %97 : vector<8x128xf32>
    %99 = vector.extract_strided_slice %98 {offsets = [0, 0], sizes = [8, 32], strides = [1, 1]} : vector<8x128xf32> to vector<8x32xf32>
    %100 = arith.truncf %99 : vector<8x32xf32> to vector<8x32xbf16>
    %c8_41 = arith.constant 8 : index
    %c0_42 = arith.constant 0 : index
    %101 = vector.load %arg19[%c8_41, %c0_42] : memref<64x64xbf16, #tpu.memory_space<vmem>>, vector<8x32xbf16>
    tpu.vector_store %arg19[%c8_41, %c0_42], %100 {strides = array<i32>} : memref<64x64xbf16, #tpu.memory_space<vmem>>, vector<8x32xbf16>,
    %102 = vector.extract_strided_slice %98 {offsets = [0, 32], sizes = [8, 32], strides = [1, 1]} : vector<8x128xf32> to vector<8x32xf32>
    %103 = arith.truncf %102 : vector<8x32xf32> to vector<8x32xbf16>
    %c48_43 = arith.constant 48 : index
    %c32_44 = arith.constant 32 : index
    %104 = vector.load %arg19[%c48_43, %c32_44] : memref<64x64xbf16, #tpu.memory_space<vmem>>, vector<8x32xbf16>
    tpu.vector_store %arg19[%c48_43, %c32_44], %103 {strides = array<i32>} : memref<64x64xbf16, #tpu.memory_space<vmem>>, vector<8x32xbf16>,
    %105 = arith.truncf %98 : vector<8x128xf32> to vector<8x128xbf16>
    %c0_45 = arith.constant 0 : index
    %c0_46 = arith.constant 0 : index
    %106 = vector.load %arg5[%c0_45, %c0_46] : memref<128x384xbf16, #tpu.memory_space<vmem>>, vector<128x384xbf16>
    %cst_47 = arith.constant dense<0.000000e+00> : vector<8x384xf32>
    %107 = tpu.matmul %105, %106, %cst_47 {dimension_numbers = #tpu.dot_dimension_numbers<[1], [0], [0], [1], [0, 0, 1, 1], [], []>} : vector<8x128xbf16>, vector<128x384xbf16>, vector<8x384xf32> -> vector<8x384xf32>
    %c16 = arith.constant 16 : index
    %c0_48 = arith.constant 0 : index
    %108 = vector.load %arg17[%c16, %c0_48] : memref<64x384xbf16, #tpu.memory_space<vmem>>, vector<8x384xbf16>
    %109 = arith.extf %108 : vector<8x384xbf16> to vector<8x384xf32>
    %c40 = arith.constant 40 : index
    %c0_49 = arith.constant 0 : index
    %110 = vector.load %arg18[%c40, %c0_49] : memref<64x384xbf16, #tpu.memory_space<vmem>>, vector<8x384xbf16>
    %111 = arith.extf %110 : vector<8x384xbf16> to vector<8x384xf32>
    %112 = arith.addf %109, %111 : vector<8x384xf32>
    %113 = vector.extract_strided_slice %112 {offsets = [0, 0], sizes = [8, 128], strides = [1, 1]} : vector<8x384xf32> to vector<8x128xf32>
    %114 = vector.extract_strided_slice %107 {offsets = [0, 0], sizes = [8, 128], strides = [1, 1]} : vector<8x384xf32> to vector<8x128xf32>
    %115 = arith.addf %113, %114 : vector<8x128xf32>
    %116 = arith.negf %115 : vector<8x128xf32>
    %117 = math.exp %116 : vector<8x128xf32>
    %cst_50 = arith.constant 1.000000e+00 : f32
    %118 = vector.broadcast %cst_50 : f32 to vector<8x128xf32>
    %119 = arith.addf %118, %117 : vector<8x128xf32>
    %120 = arith.divf %118, %119 : vector<8x128xf32>
    %121 = vector.extract_strided_slice %112 {offsets = [0, 128], sizes = [8, 128], strides = [1, 1]} : vector<8x384xf32> to vector<8x128xf32>
    %122 = vector.extract_strided_slice %107 {offsets = [0, 128], sizes = [8, 128], strides = [1, 1]} : vector<8x384xf32> to vector<8x128xf32>
    %123 = arith.addf %121, %122 : vector<8x128xf32>
    %124 = arith.negf %123 : vector<8x128xf32>
    %125 = math.exp %124 : vector<8x128xf32>
    %cst_51 = arith.constant 1.000000e+00 : f32
    %126 = vector.broadcast %cst_51 : f32 to vector<8x128xf32>
    %127 = arith.addf %126, %125 : vector<8x128xf32>
    %128 = arith.divf %126, %127 : vector<8x128xf32>
    %129 = vector.extract_strided_slice %112 {offsets = [0, 256], sizes = [8, 128], strides = [1, 1]} : vector<8x384xf32> to vector<8x128xf32>
    %130 = vector.extract_strided_slice %107 {offsets = [0, 256], sizes = [8, 128], strides = [1, 1]} : vector<8x384xf32> to vector<8x128xf32>
    %131 = vector.broadcast %19 : vector<1x128xf32> to vector<8x128xf32>
    %132 = arith.addf %130, %131 : vector<8x128xf32>
    %133 = arith.mulf %120, %132 : vector<8x128xf32>
    %134 = arith.addf %129, %133 : vector<8x128xf32>
    %135 = math.tanh %134 : vector<8x128xf32>
    %cst_52 = arith.constant 1.000000e+00 : f32
    %136 = vector.broadcast %cst_52 : f32 to vector<8x128xf32>
    %137 = arith.subf %136, %128 : vector<8x128xf32>
    %138 = arith.mulf %137, %135 : vector<8x128xf32>
    %139 = arith.mulf %128, %98 : vector<8x128xf32>
    %140 = arith.addf %138, %139 : vector<8x128xf32>
    %141 = vector.extract_strided_slice %140 {offsets = [0, 0], sizes = [8, 32], strides = [1, 1]} : vector<8x128xf32> to vector<8x32xf32>
    %142 = arith.truncf %141 : vector<8x32xf32> to vector<8x32xbf16>
    %c16_53 = arith.constant 16 : index
    %c0_54 = arith.constant 0 : index
    %143 = vector.load %arg19[%c16_53, %c0_54] : memref<64x64xbf16, #tpu.memory_space<vmem>>, vector<8x32xbf16>
    tpu.vector_store %arg19[%c16_53, %c0_54], %142 {strides = array<i32>} : memref<64x64xbf16, #tpu.memory_space<vmem>>, vector<8x32xbf16>,
    %144 = vector.extract_strided_slice %140 {offsets = [0, 32], sizes = [8, 32], strides = [1, 1]} : vector<8x128xf32> to vector<8x32xf32>
    %145 = arith.truncf %144 : vector<8x32xf32> to vector<8x32xbf16>
    %c40_55 = arith.constant 40 : index
    %c32_56 = arith.constant 32 : index
    %146 = vector.load %arg19[%c40_55, %c32_56] : memref<64x64xbf16, #tpu.memory_space<vmem>>, vector<8x32xbf16>
    tpu.vector_store %arg19[%c40_55, %c32_56], %145 {strides = array<i32>} : memref<64x64xbf16, #tpu.memory_space<vmem>>, vector<8x32xbf16>,
    %147 = arith.truncf %140 : vector<8x128xf32> to vector<8x128xbf16>
    %c0_57 = arith.constant 0 : index
    %c0_58 = arith.constant 0 : index
    %148 = vector.load %arg5[%c0_57, %c0_58] : memref<128x384xbf16, #tpu.memory_space<vmem>>, vector<128x384xbf16>
    %cst_59 = arith.constant dense<0.000000e+00> : vector<8x384xf32>
    %149 = tpu.matmul %147, %148, %cst_59 {dimension_numbers = #tpu.dot_dimension_numbers<[1], [0], [0], [1], [0, 0, 1, 1], [], []>} : vector<8x128xbf16>, vector<128x384xbf16>, vector<8x384xf32> -> vector<8x384xf32>
    %c24 = arith.constant 24 : index
    %c0_60 = arith.constant 0 : index
    %150 = vector.load %arg17[%c24, %c0_60] : memref<64x384xbf16, #tpu.memory_space<vmem>>, vector<8x384xbf16>
    %151 = arith.extf %150 : vector<8x384xbf16> to vector<8x384xf32>
    %c32_61 = arith.constant 32 : index
    %c0_62 = arith.constant 0 : index
    %152 = vector.load %arg18[%c32_61, %c0_62] : memref<64x384xbf16, #tpu.memory_space<vmem>>, vector<8x384xbf16>
    %153 = arith.extf %152 : vector<8x384xbf16> to vector<8x384xf32>
    %154 = arith.addf %151, %153 : vector<8x384xf32>
    %155 = vector.extract_strided_slice %154 {offsets = [0, 0], sizes = [8, 128], strides = [1, 1]} : vector<8x384xf32> to vector<8x128xf32>
    %156 = vector.extract_strided_slice %149 {offsets = [0, 0], sizes = [8, 128], strides = [1, 1]} : vector<8x384xf32> to vector<8x128xf32>
    %157 = arith.addf %155, %156 : vector<8x128xf32>
    %158 = arith.negf %157 : vector<8x128xf32>
    %159 = math.exp %158 : vector<8x128xf32>
    %cst_63 = arith.constant 1.000000e+00 : f32
    %160 = vector.broadcast %cst_63 : f32 to vector<8x128xf32>
    %161 = arith.addf %160, %159 : vector<8x128xf32>
    %162 = arith.divf %160, %161 : vector<8x128xf32>
    %163 = vector.extract_strided_slice %154 {offsets = [0, 128], sizes = [8, 128], strides = [1, 1]} : vector<8x384xf32> to vector<8x128xf32>
    %164 = vector.extract_strided_slice %149 {offsets = [0, 128], sizes = [8, 128], strides = [1, 1]} : vector<8x384xf32> to vector<8x128xf32>
    %165 = arith.addf %163, %164 : vector<8x128xf32>
    %166 = arith.negf %165 : vector<8x128xf32>
    %167 = math.exp %166 : vector<8x128xf32>
    %cst_64 = arith.constant 1.000000e+00 : f32
    %168 = vector.broadcast %cst_64 : f32 to vector<8x128xf32>
    %169 = arith.addf %168, %167 : vector<8x128xf32>
    %170 = arith.divf %168, %169 : vector<8x128xf32>
    %171 = vector.extract_strided_slice %154 {offsets = [0, 256], sizes = [8, 128], strides = [1, 1]} : vector<8x384xf32> to vector<8x128xf32>
    %172 = vector.extract_strided_slice %149 {offsets = [0, 256], sizes = [8, 128], strides = [1, 1]} : vector<8x384xf32> to vector<8x128xf32>
    %173 = vector.broadcast %19 : vector<1x128xf32> to vector<8x128xf32>
    %174 = arith.addf %172, %173 : vector<8x128xf32>
    %175 = arith.mulf %162, %174 : vector<8x128xf32>
    %176 = arith.addf %171, %175 : vector<8x128xf32>
    %177 = math.tanh %176 : vector<8x128xf32>
    %cst_65 = arith.constant 1.000000e+00 : f32
    %178 = vector.broadcast %cst_65 : f32 to vector<8x128xf32>
    %179 = arith.subf %178, %170 : vector<8x128xf32>
    %180 = arith.mulf %179, %177 : vector<8x128xf32>
    %181 = arith.mulf %170, %140 : vector<8x128xf32>
    %182 = arith.addf %180, %181 : vector<8x128xf32>
    %183 = vector.extract_strided_slice %182 {offsets = [0, 0], sizes = [8, 32], strides = [1, 1]} : vector<8x128xf32> to vector<8x32xf32>
    %184 = arith.truncf %183 : vector<8x32xf32> to vector<8x32xbf16>
    %c24_66 = arith.constant 24 : index
    %c0_67 = arith.constant 0 : index
    %185 = vector.load %arg19[%c24_66, %c0_67] : memref<64x64xbf16, #tpu.memory_space<vmem>>, vector<8x32xbf16>
    tpu.vector_store %arg19[%c24_66, %c0_67], %184 {strides = array<i32>} : memref<64x64xbf16, #tpu.memory_space<vmem>>, vector<8x32xbf16>,
    %186 = vector.extract_strided_slice %182 {offsets = [0, 32], sizes = [8, 32], strides = [1, 1]} : vector<8x128xf32> to vector<8x32xf32>
    %187 = arith.truncf %186 : vector<8x32xf32> to vector<8x32xbf16>
    %c32_68 = arith.constant 32 : index
    %c32_69 = arith.constant 32 : index
    %188 = vector.load %arg19[%c32_68, %c32_69] : memref<64x64xbf16, #tpu.memory_space<vmem>>, vector<8x32xbf16>
    tpu.vector_store %arg19[%c32_68, %c32_69], %187 {strides = array<i32>} : memref<64x64xbf16, #tpu.memory_space<vmem>>, vector<8x32xbf16>,
    %189 = arith.truncf %182 : vector<8x128xf32> to vector<8x128xbf16>
    %c0_70 = arith.constant 0 : index
    %c0_71 = arith.constant 0 : index
    %190 = vector.load %arg5[%c0_70, %c0_71] : memref<128x384xbf16, #tpu.memory_space<vmem>>, vector<128x384xbf16>
    %cst_72 = arith.constant dense<0.000000e+00> : vector<8x384xf32>
    %191 = tpu.matmul %189, %190, %cst_72 {dimension_numbers = #tpu.dot_dimension_numbers<[1], [0], [0], [1], [0, 0, 1, 1], [], []>} : vector<8x128xbf16>, vector<128x384xbf16>, vector<8x384xf32> -> vector<8x384xf32>
    %c32_73 = arith.constant 32 : index
    %c0_74 = arith.constant 0 : index
    %192 = vector.load %arg17[%c32_73, %c0_74] : memref<64x384xbf16, #tpu.memory_space<vmem>>, vector<8x384xbf16>
    %193 = arith.extf %192 : vector<8x384xbf16> to vector<8x384xf32>
    %c24_75 = arith.constant 24 : index
    %c0_76 = arith.constant 0 : index
    %194 = vector.load %arg18[%c24_75, %c0_76] : memref<64x384xbf16, #tpu.memory_space<vmem>>, vector<8x384xbf16>
    %195 = arith.extf %194 : vector<8x384xbf16> to vector<8x384xf32>
    %196 = arith.addf %193, %195 : vector<8x384xf32>
    %197 = vector.extract_strided_slice %196 {offsets = [0, 0], sizes = [8, 128], strides = [1, 1]} : vector<8x384xf32> to vector<8x128xf32>
    %198 = vector.extract_strided_slice %191 {offsets = [0, 0], sizes = [8, 128], strides = [1, 1]} : vector<8x384xf32> to vector<8x128xf32>
    %199 = arith.addf %197, %198 : vector<8x128xf32>
    %200 = arith.negf %199 : vector<8x128xf32>
    %201 = math.exp %200 : vector<8x128xf32>
    %cst_77 = arith.constant 1.000000e+00 : f32
    %202 = vector.broadcast %cst_77 : f32 to vector<8x128xf32>
    %203 = arith.addf %202, %201 : vector<8x128xf32>
    %204 = arith.divf %202, %203 : vector<8x128xf32>
    %205 = vector.extract_strided_slice %196 {offsets = [0, 128], sizes = [8, 128], strides = [1, 1]} : vector<8x384xf32> to vector<8x128xf32>
    %206 = vector.extract_strided_slice %191 {offsets = [0, 128], sizes = [8, 128], strides = [1, 1]} : vector<8x384xf32> to vector<8x128xf32>
    %207 = arith.addf %205, %206 : vector<8x128xf32>
    %208 = arith.negf %207 : vector<8x128xf32>
    %209 = math.exp %208 : vector<8x128xf32>
    %cst_78 = arith.constant 1.000000e+00 : f32
    %210 = vector.broadcast %cst_78 : f32 to vector<8x128xf32>
    %211 = arith.addf %210, %209 : vector<8x128xf32>
    %212 = arith.divf %210, %211 : vector<8x128xf32>
    %213 = vector.extract_strided_slice %196 {offsets = [0, 256], sizes = [8, 128], strides = [1, 1]} : vector<8x384xf32> to vector<8x128xf32>
    %214 = vector.extract_strided_slice %191 {offsets = [0, 256], sizes = [8, 128], strides = [1, 1]} : vector<8x384xf32> to vector<8x128xf32>
    %215 = vector.broadcast %19 : vector<1x128xf32> to vector<8x128xf32>
    %216 = arith.addf %214, %215 : vector<8x128xf32>
    %217 = arith.mulf %204, %216 : vector<8x128xf32>
    %218 = arith.addf %213, %217 : vector<8x128xf32>
    %219 = math.tanh %218 : vector<8x128xf32>
    %cst_79 = arith.constant 1.000000e+00 : f32
    %220 = vector.broadcast %cst_79 : f32 to vector<8x128xf32>
    %221 = arith.subf %220, %212 : vector<8x128xf32>
    %222 = arith.mulf %221, %219 : vector<8x128xf32>
    %223 = arith.mulf %212, %182 : vector<8x128xf32>
    %224 = arith.addf %222, %223 : vector<8x128xf32>
    %225 = vector.extract_strided_slice %224 {offsets = [0, 0], sizes = [8, 32], strides = [1, 1]} : vector<8x128xf32> to vector<8x32xf32>
    %226 = arith.truncf %225 : vector<8x32xf32> to vector<8x32xbf16>
    %c32_80 = arith.constant 32 : index
    %c0_81 = arith.constant 0 : index
    %227 = vector.load %arg19[%c32_80, %c0_81] : memref<64x64xbf16, #tpu.memory_space<vmem>>, vector<8x32xbf16>
    tpu.vector_store %arg19[%c32_80, %c0_81], %226 {strides = array<i32>} : memref<64x64xbf16, #tpu.memory_space<vmem>>, vector<8x32xbf16>,
    %228 = vector.extract_strided_slice %224 {offsets = [0, 32], sizes = [8, 32], strides = [1, 1]} : vector<8x128xf32> to vector<8x32xf32>
    %229 = arith.truncf %228 : vector<8x32xf32> to vector<8x32xbf16>
    %c24_82 = arith.constant 24 : index
    %c32_83 = arith.constant 32 : index
    %230 = vector.load %arg19[%c24_82, %c32_83] : memref<64x64xbf16, #tpu.memory_space<vmem>>, vector<8x32xbf16>
    tpu.vector_store %arg19[%c24_82, %c32_83], %229 {strides = array<i32>} : memref<64x64xbf16, #tpu.memory_space<vmem>>, vector<8x32xbf16>,
    %231 = arith.truncf %224 : vector<8x128xf32> to vector<8x128xbf16>
    %c0_84 = arith.constant 0 : index
    %c0_85 = arith.constant 0 : index
    %232 = vector.load %arg5[%c0_84, %c0_85] : memref<128x384xbf16, #tpu.memory_space<vmem>>, vector<128x384xbf16>
    %cst_86 = arith.constant dense<0.000000e+00> : vector<8x384xf32>
    %233 = tpu.matmul %231, %232, %cst_86 {dimension_numbers = #tpu.dot_dimension_numbers<[1], [0], [0], [1], [0, 0, 1, 1], [], []>} : vector<8x128xbf16>, vector<128x384xbf16>, vector<8x384xf32> -> vector<8x384xf32>
    %c40_87 = arith.constant 40 : index
    %c0_88 = arith.constant 0 : index
    %234 = vector.load %arg17[%c40_87, %c0_88] : memref<64x384xbf16, #tpu.memory_space<vmem>>, vector<8x384xbf16>
    %235 = arith.extf %234 : vector<8x384xbf16> to vector<8x384xf32>
    %c16_89 = arith.constant 16 : index
    %c0_90 = arith.constant 0 : index
    %236 = vector.load %arg18[%c16_89, %c0_90] : memref<64x384xbf16, #tpu.memory_space<vmem>>, vector<8x384xbf16>
    %237 = arith.extf %236 : vector<8x384xbf16> to vector<8x384xf32>
    %238 = arith.addf %235, %237 : vector<8x384xf32>
    %239 = vector.extract_strided_slice %238 {offsets = [0, 0], sizes = [8, 128], strides = [1, 1]} : vector<8x384xf32> to vector<8x128xf32>
    %240 = vector.extract_strided_slice %233 {offsets = [0, 0], sizes = [8, 128], strides = [1, 1]} : vector<8x384xf32> to vector<8x128xf32>
    %241 = arith.addf %239, %240 : vector<8x128xf32>
    %242 = arith.negf %241 : vector<8x128xf32>
    %243 = math.exp %242 : vector<8x128xf32>
    %cst_91 = arith.constant 1.000000e+00 : f32
    %244 = vector.broadcast %cst_91 : f32 to vector<8x128xf32>
    %245 = arith.addf %244, %243 : vector<8x128xf32>
    %246 = arith.divf %244, %245 : vector<8x128xf32>
    %247 = vector.extract_strided_slice %238 {offsets = [0, 128], sizes = [8, 128], strides = [1, 1]} : vector<8x384xf32> to vector<8x128xf32>
    %248 = vector.extract_strided_slice %233 {offsets = [0, 128], sizes = [8, 128], strides = [1, 1]} : vector<8x384xf32> to vector<8x128xf32>
    %249 = arith.addf %247, %248 : vector<8x128xf32>
    %250 = arith.negf %249 : vector<8x128xf32>
    %251 = math.exp %250 : vector<8x128xf32>
    %cst_92 = arith.constant 1.000000e+00 : f32
    %252 = vector.broadcast %cst_92 : f32 to vector<8x128xf32>
    %253 = arith.addf %252, %251 : vector<8x128xf32>
    %254 = arith.divf %252, %253 : vector<8x128xf32>
    %255 = vector.extract_strided_slice %238 {offsets = [0, 256], sizes = [8, 128], strides = [1, 1]} : vector<8x384xf32> to vector<8x128xf32>
    %256 = vector.extract_strided_slice %233 {offsets = [0, 256], sizes = [8, 128], strides = [1, 1]} : vector<8x384xf32> to vector<8x128xf32>
    %257 = vector.broadcast %19 : vector<1x128xf32> to vector<8x128xf32>
    %258 = arith.addf %256, %257 : vector<8x128xf32>
    %259 = arith.mulf %246, %258 : vector<8x128xf32>
    %260 = arith.addf %255, %259 : vector<8x128xf32>
    %261 = math.tanh %260 : vector<8x128xf32>
    %cst_93 = arith.constant 1.000000e+00 : f32
    %262 = vector.broadcast %cst_93 : f32 to vector<8x128xf32>
    %263 = arith.subf %262, %254 : vector<8x128xf32>
    %264 = arith.mulf %263, %261 : vector<8x128xf32>
    %265 = arith.mulf %254, %224 : vector<8x128xf32>
    %266 = arith.addf %264, %265 : vector<8x128xf32>
    %267 = vector.extract_strided_slice %266 {offsets = [0, 0], sizes = [8, 32], strides = [1, 1]} : vector<8x128xf32> to vector<8x32xf32>
    %268 = arith.truncf %267 : vector<8x32xf32> to vector<8x32xbf16>
    %c40_94 = arith.constant 40 : index
    %c0_95 = arith.constant 0 : index
    %269 = vector.load %arg19[%c40_94, %c0_95] : memref<64x64xbf16, #tpu.memory_space<vmem>>, vector<8x32xbf16>
    tpu.vector_store %arg19[%c40_94, %c0_95], %268 {strides = array<i32>} : memref<64x64xbf16, #tpu.memory_space<vmem>>, vector<8x32xbf16>,
    %270 = vector.extract_strided_slice %266 {offsets = [0, 32], sizes = [8, 32], strides = [1, 1]} : vector<8x128xf32> to vector<8x32xf32>
    %271 = arith.truncf %270 : vector<8x32xf32> to vector<8x32xbf16>
    %c16_96 = arith.constant 16 : index
    %c32_97 = arith.constant 32 : index
    %272 = vector.load %arg19[%c16_96, %c32_97] : memref<64x64xbf16, #tpu.memory_space<vmem>>, vector<8x32xbf16>
    tpu.vector_store %arg19[%c16_96, %c32_97], %271 {strides = array<i32>} : memref<64x64xbf16, #tpu.memory_space<vmem>>, vector<8x32xbf16>,
    %273 = arith.truncf %266 : vector<8x128xf32> to vector<8x128xbf16>
    %c0_98 = arith.constant 0 : index
    %c0_99 = arith.constant 0 : index
    %274 = vector.load %arg5[%c0_98, %c0_99] : memref<128x384xbf16, #tpu.memory_space<vmem>>, vector<128x384xbf16>
    %cst_100 = arith.constant dense<0.000000e+00> : vector<8x384xf32>
    %275 = tpu.matmul %273, %274, %cst_100 {dimension_numbers = #tpu.dot_dimension_numbers<[1], [0], [0], [1], [0, 0, 1, 1], [], []>} : vector<8x128xbf16>, vector<128x384xbf16>, vector<8x384xf32> -> vector<8x384xf32>
    %c48_101 = arith.constant 48 : index
    %c0_102 = arith.constant 0 : index
    %276 = vector.load %arg17[%c48_101, %c0_102] : memref<64x384xbf16, #tpu.memory_space<vmem>>, vector<8x384xbf16>
    %277 = arith.extf %276 : vector<8x384xbf16> to vector<8x384xf32>
    %c8_103 = arith.constant 8 : index
    %c0_104 = arith.constant 0 : index
    %278 = vector.load %arg18[%c8_103, %c0_104] : memref<64x384xbf16, #tpu.memory_space<vmem>>, vector<8x384xbf16>
    %279 = arith.extf %278 : vector<8x384xbf16> to vector<8x384xf32>
    %280 = arith.addf %277, %279 : vector<8x384xf32>
    %281 = vector.extract_strided_slice %280 {offsets = [0, 0], sizes = [8, 128], strides = [1, 1]} : vector<8x384xf32> to vector<8x128xf32>
    %282 = vector.extract_strided_slice %275 {offsets = [0, 0], sizes = [8, 128], strides = [1, 1]} : vector<8x384xf32> to vector<8x128xf32>
    %283 = arith.addf %281, %282 : vector<8x128xf32>
    %284 = arith.negf %283 : vector<8x128xf32>
    %285 = math.exp %284 : vector<8x128xf32>
    %cst_105 = arith.constant 1.000000e+00 : f32
    %286 = vector.broadcast %cst_105 : f32 to vector<8x128xf32>
    %287 = arith.addf %286, %285 : vector<8x128xf32>
    %288 = arith.divf %286, %287 : vector<8x128xf32>
    %289 = vector.extract_strided_slice %280 {offsets = [0, 128], sizes = [8, 128], strides = [1, 1]} : vector<8x384xf32> to vector<8x128xf32>
    %290 = vector.extract_strided_slice %275 {offsets = [0, 128], sizes = [8, 128], strides = [1, 1]} : vector<8x384xf32> to vector<8x128xf32>
    %291 = arith.addf %289, %290 : vector<8x128xf32>
    %292 = arith.negf %291 : vector<8x128xf32>
    %293 = math.exp %292 : vector<8x128xf32>
    %cst_106 = arith.constant 1.000000e+00 : f32
    %294 = vector.broadcast %cst_106 : f32 to vector<8x128xf32>
    %295 = arith.addf %294, %293 : vector<8x128xf32>
    %296 = arith.divf %294, %295 : vector<8x128xf32>
    %297 = vector.extract_strided_slice %280 {offsets = [0, 256], sizes = [8, 128], strides = [1, 1]} : vector<8x384xf32> to vector<8x128xf32>
    %298 = vector.extract_strided_slice %275 {offsets = [0, 256], sizes = [8, 128], strides = [1, 1]} : vector<8x384xf32> to vector<8x128xf32>
    %299 = vector.broadcast %19 : vector<1x128xf32> to vector<8x128xf32>
    %300 = arith.addf %298, %299 : vector<8x128xf32>
    %301 = arith.mulf %288, %300 : vector<8x128xf32>
    %302 = arith.addf %297, %301 : vector<8x128xf32>
    %303 = math.tanh %302 : vector<8x128xf32>
    %cst_107 = arith.constant 1.000000e+00 : f32
    %304 = vector.broadcast %cst_107 : f32 to vector<8x128xf32>
    %305 = arith.subf %304, %296 : vector<8x128xf32>
    %306 = arith.mulf %305, %303 : vector<8x128xf32>
    %307 = arith.mulf %296, %266 : vector<8x128xf32>
    %308 = arith.addf %306, %307 : vector<8x128xf32>
    %309 = vector.extract_strided_slice %308 {offsets = [0, 0], sizes = [8, 32], strides = [1, 1]} : vector<8x128xf32> to vector<8x32xf32>
    %310 = arith.truncf %309 : vector<8x32xf32> to vector<8x32xbf16>
    %c48_108 = arith.constant 48 : index
    %c0_109 = arith.constant 0 : index
    %311 = vector.load %arg19[%c48_108, %c0_109] : memref<64x64xbf16, #tpu.memory_space<vmem>>, vector<8x32xbf16>
    tpu.vector_store %arg19[%c48_108, %c0_109], %310 {strides = array<i32>} : memref<64x64xbf16, #tpu.memory_space<vmem>>, vector<8x32xbf16>,
    %312 = vector.extract_strided_slice %308 {offsets = [0, 32], sizes = [8, 32], strides = [1, 1]} : vector<8x128xf32> to vector<8x32xf32>
    %313 = arith.truncf %312 : vector<8x32xf32> to vector<8x32xbf16>
    %c8_110 = arith.constant 8 : index
    %c32_111 = arith.constant 32 : index
    %314 = vector.load %arg19[%c8_110, %c32_111] : memref<64x64xbf16, #tpu.memory_space<vmem>>, vector<8x32xbf16>
    tpu.vector_store %arg19[%c8_110, %c32_111], %313 {strides = array<i32>} : memref<64x64xbf16, #tpu.memory_space<vmem>>, vector<8x32xbf16>,
    %315 = arith.truncf %308 : vector<8x128xf32> to vector<8x128xbf16>
    %c0_112 = arith.constant 0 : index
    %c0_113 = arith.constant 0 : index
    %316 = vector.load %arg5[%c0_112, %c0_113] : memref<128x384xbf16, #tpu.memory_space<vmem>>, vector<128x384xbf16>
    %cst_114 = arith.constant dense<0.000000e+00> : vector<8x384xf32>
    %317 = tpu.matmul %315, %316, %cst_114 {dimension_numbers = #tpu.dot_dimension_numbers<[1], [0], [0], [1], [0, 0, 1, 1], [], []>} : vector<8x128xbf16>, vector<128x384xbf16>, vector<8x384xf32> -> vector<8x384xf32>
    %c56_115 = arith.constant 56 : index
    %c0_116 = arith.constant 0 : index
    %318 = vector.load %arg17[%c56_115, %c0_116] : memref<64x384xbf16, #tpu.memory_space<vmem>>, vector<8x384xbf16>
    %319 = arith.extf %318 : vector<8x384xbf16> to vector<8x384xf32>
    %c0_117 = arith.constant 0 : index
    %c0_118 = arith.constant 0 : index
    %320 = vector.load %arg18[%c0_117, %c0_118] : memref<64x384xbf16, #tpu.memory_space<vmem>>, vector<8x384xbf16>
    %321 = arith.extf %320 : vector<8x384xbf16> to vector<8x384xf32>
    %322 = arith.addf %319, %321 : vector<8x384xf32>
    %323 = vector.extract_strided_slice %322 {offsets = [0, 0], sizes = [8, 128], strides = [1, 1]} : vector<8x384xf32> to vector<8x128xf32>
    %324 = vector.extract_strided_slice %317 {offsets = [0, 0], sizes = [8, 128], strides = [1, 1]} : vector<8x384xf32> to vector<8x128xf32>
    %325 = arith.addf %323, %324 : vector<8x128xf32>
    %326 = arith.negf %325 : vector<8x128xf32>
    %327 = math.exp %326 : vector<8x128xf32>
    %cst_119 = arith.constant 1.000000e+00 : f32
    %328 = vector.broadcast %cst_119 : f32 to vector<8x128xf32>
    %329 = arith.addf %328, %327 : vector<8x128xf32>
    %330 = arith.divf %328, %329 : vector<8x128xf32>
    %331 = vector.extract_strided_slice %322 {offsets = [0, 128], sizes = [8, 128], strides = [1, 1]} : vector<8x384xf32> to vector<8x128xf32>
    %332 = vector.extract_strided_slice %317 {offsets = [0, 128], sizes = [8, 128], strides = [1, 1]} : vector<8x384xf32> to vector<8x128xf32>
    %333 = arith.addf %331, %332 : vector<8x128xf32>
    %334 = arith.negf %333 : vector<8x128xf32>
    %335 = math.exp %334 : vector<8x128xf32>
    %cst_120 = arith.constant 1.000000e+00 : f32
    %336 = vector.broadcast %cst_120 : f32 to vector<8x128xf32>
    %337 = arith.addf %336, %335 : vector<8x128xf32>
    %338 = arith.divf %336, %337 : vector<8x128xf32>
    %339 = vector.extract_strided_slice %322 {offsets = [0, 256], sizes = [8, 128], strides = [1, 1]} : vector<8x384xf32> to vector<8x128xf32>
    %340 = vector.extract_strided_slice %317 {offsets = [0, 256], sizes = [8, 128], strides = [1, 1]} : vector<8x384xf32> to vector<8x128xf32>
    %341 = vector.broadcast %19 : vector<1x128xf32> to vector<8x128xf32>
    %342 = arith.addf %340, %341 : vector<8x128xf32>
    %343 = arith.mulf %330, %342 : vector<8x128xf32>
    %344 = arith.addf %339, %343 : vector<8x128xf32>
    %345 = math.tanh %344 : vector<8x128xf32>
    %cst_121 = arith.constant 1.000000e+00 : f32
    %346 = vector.broadcast %cst_121 : f32 to vector<8x128xf32>
    %347 = arith.subf %346, %338 : vector<8x128xf32>
    %348 = arith.mulf %347, %345 : vector<8x128xf32>
    %349 = arith.mulf %338, %308 : vector<8x128xf32>
    %350 = arith.addf %348, %349 : vector<8x128xf32>
    %351 = vector.extract_strided_slice %350 {offsets = [0, 0], sizes = [8, 32], strides = [1, 1]} : vector<8x128xf32> to vector<8x32xf32>
    %352 = arith.truncf %351 : vector<8x32xf32> to vector<8x32xbf16>
    %c56_122 = arith.constant 56 : index
    %c0_123 = arith.constant 0 : index
    %353 = vector.load %arg19[%c56_122, %c0_123] : memref<64x64xbf16, #tpu.memory_space<vmem>>, vector<8x32xbf16>
    tpu.vector_store %arg19[%c56_122, %c0_123], %352 {strides = array<i32>} : memref<64x64xbf16, #tpu.memory_space<vmem>>, vector<8x32xbf16>,
    %354 = vector.extract_strided_slice %350 {offsets = [0, 32], sizes = [8, 32], strides = [1, 1]} : vector<8x128xf32> to vector<8x32xf32>
    %355 = arith.truncf %354 : vector<8x32xf32> to vector<8x32xbf16>
    %c0_124 = arith.constant 0 : index
    %c32_125 = arith.constant 32 : index
    %356 = vector.load %arg19[%c0_124, %c32_125] : memref<64x64xbf16, #tpu.memory_space<vmem>>, vector<8x32xbf16>
    tpu.vector_store %arg19[%c0_124, %c32_125], %355 {strides = array<i32>} : memref<64x64xbf16, #tpu.memory_space<vmem>>, vector<8x32xbf16>,
    %c0_126 = arith.constant 0 : index
    %c0_127 = arith.constant 0 : index
    %357 = vector.load %arg16[%c0_126, %c0_127] : memref<8x128xf32, #tpu.memory_space<vmem>>, vector<8x128xf32>
    %358 = arith.truncf %350 : vector<8x128xf32> to vector<8x128xbf16>
    %c0_128 = arith.constant 0 : index
    %c0_129 = arith.constant 0 : index
    %359 = vector.load %arg7[%c0_128, %c0_129] : memref<128x128xbf16, #tpu.memory_space<vmem>>, vector<128x128xbf16>
    %cst_130 = arith.constant dense<0.000000e+00> : vector<8x128xf32>
    %360 = tpu.matmul %358, %359, %cst_130 {dimension_numbers = #tpu.dot_dimension_numbers<[1], [0], [0], [1], [0, 0, 1, 1], [], []>} : vector<8x128xbf16>, vector<128x128xbf16>, vector<8x128xf32> -> vector<8x128xf32>
    %361 = arith.addf %357, %360 : vector<8x128xf32>
    %c0_131 = arith.constant 0 : index
    %c0_132 = arith.constant 0 : index
    %362 = vector.load %arg16[%c0_131, %c0_132] : memref<8x128xf32, #tpu.memory_space<vmem>>, vector<8x128xf32>
    tpu.vector_store %arg16[%c0_131, %c0_132], %361 {strides = array<i32>} : memref<8x128xf32, #tpu.memory_space<vmem>>, vector<8x128xf32>,
    %c0_133 = arith.constant 0 : index
    %c0_134 = arith.constant 0 : index
    %363 = vector.load %arg19[%c0_133, %c0_134] : memref<64x64xbf16, #tpu.memory_space<vmem>>, vector<64x64xbf16>
    %c0_135 = arith.constant 0 : index
    %c0_136 = arith.constant 0 : index
    %364 = vector.load %arg8[%c0_135, %c0_136] : memref<64x384xbf16, #tpu.memory_space<vmem>>, vector<64x384xbf16>
    %cst_137 = arith.constant dense<0.000000e+00> : vector<64x384xf32>
    %365 = tpu.matmul %363, %364, %cst_137 {dimension_numbers = #tpu.dot_dimension_numbers<[1], [0], [0], [1], [0, 0, 1, 1], [], []>} : vector<64x64xbf16>, vector<64x384xbf16>, vector<64x384xf32> -> vector<64x384xf32>
    %c0_138 = arith.constant 0 : index
    %c0_139 = arith.constant 0 : index
    %366 = vector.load %arg10[%c0_138, %c0_139] : memref<1x384xf32, #tpu.memory_space<vmem>>, vector<1x384xf32>
    %367 = vector.broadcast %366 : vector<1x384xf32> to vector<64x384xf32>
    %368 = arith.addf %365, %367 : vector<64x384xf32>
    %369 = arith.truncf %368 : vector<64x384xf32> to vector<64x384xbf16>
    %c0_140 = arith.constant 0 : index
    %c0_141 = arith.constant 0 : index
    %370 = vector.load %arg17[%c0_140, %c0_141] : memref<64x384xbf16, #tpu.memory_space<vmem>>, vector<64x384xbf16>
    tpu.vector_store %arg17[%c0_140, %c0_141], %369 {strides = array<i32>} : memref<64x384xbf16, #tpu.memory_space<vmem>>, vector<64x384xbf16>,
    %c0_142 = arith.constant 0 : index
    %c0_143 = arith.constant 0 : index
    %371 = vector.load %arg9[%c0_142, %c0_143] : memref<64x384xbf16, #tpu.memory_space<vmem>>, vector<64x384xbf16>
    %cst_144 = arith.constant dense<0.000000e+00> : vector<64x384xf32>
    %372 = tpu.matmul %363, %371, %cst_144 {dimension_numbers = #tpu.dot_dimension_numbers<[1], [0], [0], [1], [0, 0, 1, 1], [], []>} : vector<64x64xbf16>, vector<64x384xbf16>, vector<64x384xf32> -> vector<64x384xf32>
    %c0_145 = arith.constant 0 : index
    %c0_146 = arith.constant 0 : index
    %373 = vector.load %arg11[%c0_145, %c0_146] : memref<1x384xf32, #tpu.memory_space<vmem>>, vector<1x384xf32>
    %374 = vector.broadcast %373 : vector<1x384xf32> to vector<64x384xf32>
    %375 = arith.addf %372, %374 : vector<64x384xf32>
    %376 = arith.truncf %375 : vector<64x384xf32> to vector<64x384xbf16>
    %c0_147 = arith.constant 0 : index
    %c0_148 = arith.constant 0 : index
    %377 = vector.load %arg18[%c0_147, %c0_148] : memref<64x384xbf16, #tpu.memory_space<vmem>>, vector<64x384xbf16>
    tpu.vector_store %arg18[%c0_147, %c0_148], %376 {strides = array<i32>} : memref<64x384xbf16, #tpu.memory_space<vmem>>, vector<64x384xbf16>,
    %c0_149 = arith.constant 0 : index
    %c0_150 = arith.constant 0 : index
    %378 = vector.load %arg13[%c0_149, %c0_150] : memref<1x128xf32, #tpu.memory_space<vmem>>, vector<1x128xf32>
    %cst_151 = arith.constant 0.000000e+00 : f32
    %379 = vector.broadcast %cst_151 : f32 to vector<8x128xf32>
    %380 = arith.truncf %379 : vector<8x128xf32> to vector<8x128xbf16>
    %c0_152 = arith.constant 0 : index
    %c0_153 = arith.constant 0 : index
    %381 = vector.load %arg12[%c0_152, %c0_153] : memref<128x384xbf16, #tpu.memory_space<vmem>>, vector<128x384xbf16>
    %cst_154 = arith.constant dense<0.000000e+00> : vector<8x384xf32>
    %382 = tpu.matmul %380, %381, %cst_154 {dimension_numbers = #tpu.dot_dimension_numbers<[1], [0], [0], [1], [0, 0, 1, 1], [], []>} : vector<8x128xbf16>, vector<128x384xbf16>, vector<8x384xf32> -> vector<8x384xf32>
    %c0_155 = arith.constant 0 : index
    %c0_156 = arith.constant 0 : index
    %383 = vector.load %arg17[%c0_155, %c0_156] : memref<64x384xbf16, #tpu.memory_space<vmem>>, vector<8x384xbf16>
    %384 = arith.extf %383 : vector<8x384xbf16> to vector<8x384xf32>
    %c56_157 = arith.constant 56 : index
    %c0_158 = arith.constant 0 : index
    %385 = vector.load %arg18[%c56_157, %c0_158] : memref<64x384xbf16, #tpu.memory_space<vmem>>, vector<8x384xbf16>
    %386 = arith.extf %385 : vector<8x384xbf16> to vector<8x384xf32>
    %387 = arith.addf %384, %386 : vector<8x384xf32>
    %388 = vector.extract_strided_slice %387 {offsets = [0, 0], sizes = [8, 128], strides = [1, 1]} : vector<8x384xf32> to vector<8x128xf32>
    %389 = vector.extract_strided_slice %382 {offsets = [0, 0], sizes = [8, 128], strides = [1, 1]} : vector<8x384xf32> to vector<8x128xf32>
    %390 = arith.addf %388, %389 : vector<8x128xf32>
    %391 = arith.negf %390 : vector<8x128xf32>
    %392 = math.exp %391 : vector<8x128xf32>
    %cst_159 = arith.constant 1.000000e+00 : f32
    %393 = vector.broadcast %cst_159 : f32 to vector<8x128xf32>
    %394 = arith.addf %393, %392 : vector<8x128xf32>
    %395 = arith.divf %393, %394 : vector<8x128xf32>
    %396 = vector.extract_strided_slice %387 {offsets = [0, 128], sizes = [8, 128], strides = [1, 1]} : vector<8x384xf32> to vector<8x128xf32>
    %397 = vector.extract_strided_slice %382 {offsets = [0, 128], sizes = [8, 128], strides = [1, 1]} : vector<8x384xf32> to vector<8x128xf32>
    %398 = arith.addf %396, %397 : vector<8x128xf32>
    %399 = arith.negf %398 : vector<8x128xf32>
    %400 = math.exp %399 : vector<8x128xf32>
    %cst_160 = arith.constant 1.000000e+00 : f32
    %401 = vector.broadcast %cst_160 : f32 to vector<8x128xf32>
    %402 = arith.addf %401, %400 : vector<8x128xf32>
    %403 = arith.divf %401, %402 : vector<8x128xf32>
    %404 = vector.extract_strided_slice %387 {offsets = [0, 256], sizes = [8, 128], strides = [1, 1]} : vector<8x384xf32> to vector<8x128xf32>
    %405 = vector.extract_strided_slice %382 {offsets = [0, 256], sizes = [8, 128], strides = [1, 1]} : vector<8x384xf32> to vector<8x128xf32>
    %406 = vector.broadcast %378 : vector<1x128xf32> to vector<8x128xf32>
    %407 = arith.addf %405, %406 : vector<8x128xf32>
    %408 = arith.mulf %395, %407 : vector<8x128xf32>
    %409 = arith.addf %404, %408 : vector<8x128xf32>
    %410 = math.tanh %409 : vector<8x128xf32>
    %cst_161 = arith.constant 1.000000e+00 : f32
    %411 = vector.broadcast %cst_161 : f32 to vector<8x128xf32>
    %412 = arith.subf %411, %403 : vector<8x128xf32>
    %413 = arith.mulf %412, %410 : vector<8x128xf32>
    %414 = arith.mulf %403, %379 : vector<8x128xf32>
    %415 = arith.addf %413, %414 : vector<8x128xf32>
    %416 = arith.truncf %415 : vector<8x128xf32> to vector<8x128xbf16>
    %c0_162 = arith.constant 0 : index
    %c0_163 = arith.constant 0 : index
    %417 = vector.load %arg12[%c0_162, %c0_163] : memref<128x384xbf16, #tpu.memory_space<vmem>>, vector<128x384xbf16>
    %cst_164 = arith.constant dense<0.000000e+00> : vector<8x384xf32>
    %418 = tpu.matmul %416, %417, %cst_164 {dimension_numbers = #tpu.dot_dimension_numbers<[1], [0], [0], [1], [0, 0, 1, 1], [], []>} : vector<8x128xbf16>, vector<128x384xbf16>, vector<8x384xf32> -> vector<8x384xf32>
    %c8_165 = arith.constant 8 : index
    %c0_166 = arith.constant 0 : index
    %419 = vector.load %arg17[%c8_165, %c0_166] : memref<64x384xbf16, #tpu.memory_space<vmem>>, vector<8x384xbf16>
    %420 = arith.extf %419 : vector<8x384xbf16> to vector<8x384xf32>
    %c48_167 = arith.constant 48 : index
    %c0_168 = arith.constant 0 : index
    %421 = vector.load %arg18[%c48_167, %c0_168] : memref<64x384xbf16, #tpu.memory_space<vmem>>, vector<8x384xbf16>
    %422 = arith.extf %421 : vector<8x384xbf16> to vector<8x384xf32>
    %423 = arith.addf %420, %422 : vector<8x384xf32>
    %424 = vector.extract_strided_slice %423 {offsets = [0, 0], sizes = [8, 128], strides = [1, 1]} : vector<8x384xf32> to vector<8x128xf32>
    %425 = vector.extract_strided_slice %418 {offsets = [0, 0], sizes = [8, 128], strides = [1, 1]} : vector<8x384xf32> to vector<8x128xf32>
    %426 = arith.addf %424, %425 : vector<8x128xf32>
    %427 = arith.negf %426 : vector<8x128xf32>
    %428 = math.exp %427 : vector<8x128xf32>
    %cst_169 = arith.constant 1.000000e+00 : f32
    %429 = vector.broadcast %cst_169 : f32 to vector<8x128xf32>
    %430 = arith.addf %429, %428 : vector<8x128xf32>
    %431 = arith.divf %429, %430 : vector<8x128xf32>
    %432 = vector.extract_strided_slice %423 {offsets = [0, 128], sizes = [8, 128], strides = [1, 1]} : vector<8x384xf32> to vector<8x128xf32>
    %433 = vector.extract_strided_slice %418 {offsets = [0, 128], sizes = [8, 128], strides = [1, 1]} : vector<8x384xf32> to vector<8x128xf32>
    %434 = arith.addf %432, %433 : vector<8x128xf32>
    %435 = arith.negf %434 : vector<8x128xf32>
    %436 = math.exp %435 : vector<8x128xf32>
    %cst_170 = arith.constant 1.000000e+00 : f32
    %437 = vector.broadcast %cst_170 : f32 to vector<8x128xf32>
    %438 = arith.addf %437, %436 : vector<8x128xf32>
    %439 = arith.divf %437, %438 : vector<8x128xf32>
    %440 = vector.extract_strided_slice %423 {offsets = [0, 256], sizes = [8, 128], strides = [1, 1]} : vector<8x384xf32> to vector<8x128xf32>
    %441 = vector.extract_strided_slice %418 {offsets = [0, 256], sizes = [8, 128], strides = [1, 1]} : vector<8x384xf32> to vector<8x128xf32>
    %442 = vector.broadcast %378 : vector<1x128xf32> to vector<8x128xf32>
    %443 = arith.addf %441, %442 : vector<8x128xf32>
    %444 = arith.mulf %431, %443 : vector<8x128xf32>
    %445 = arith.addf %440, %444 : vector<8x128xf32>
    %446 = math.tanh %445 : vector<8x128xf32>
    %cst_171 = arith.constant 1.000000e+00 : f32
    %447 = vector.broadcast %cst_171 : f32 to vector<8x128xf32>
    %448 = arith.subf %447, %439 : vector<8x128xf32>
    %449 = arith.mulf %448, %446 : vector<8x128xf32>
    %450 = arith.mulf %439, %415 : vector<8x128xf32>
    %451 = arith.addf %449, %450 : vector<8x128xf32>
    %452 = arith.truncf %451 : vector<8x128xf32> to vector<8x128xbf16>
    %c0_172 = arith.constant 0 : index
    %c0_173 = arith.constant 0 : index
    %453 = vector.load %arg12[%c0_172, %c0_173] : memref<128x384xbf16, #tpu.memory_space<vmem>>, vector<128x384xbf16>
    %cst_174 = arith.constant dense<0.000000e+00> : vector<8x384xf32>
    %454 = tpu.matmul %452, %453, %cst_174 {dimension_numbers = #tpu.dot_dimension_numbers<[1], [0], [0], [1], [0, 0, 1, 1], [], []>} : vector<8x128xbf16>, vector<128x384xbf16>, vector<8x384xf32> -> vector<8x384xf32>
    %c16_175 = arith.constant 16 : index
    %c0_176 = arith.constant 0 : index
    %455 = vector.load %arg17[%c16_175, %c0_176] : memref<64x384xbf16, #tpu.memory_space<vmem>>, vector<8x384xbf16>
    %456 = arith.extf %455 : vector<8x384xbf16> to vector<8x384xf32>
    %c40_177 = arith.constant 40 : index
    %c0_178 = arith.constant 0 : index
    %457 = vector.load %arg18[%c40_177, %c0_178] : memref<64x384xbf16, #tpu.memory_space<vmem>>, vector<8x384xbf16>
    %458 = arith.extf %457 : vector<8x384xbf16> to vector<8x384xf32>
    %459 = arith.addf %456, %458 : vector<8x384xf32>
    %460 = vector.extract_strided_slice %459 {offsets = [0, 0], sizes = [8, 128], strides = [1, 1]} : vector<8x384xf32> to vector<8x128xf32>
    %461 = vector.extract_strided_slice %454 {offsets = [0, 0], sizes = [8, 128], strides = [1, 1]} : vector<8x384xf32> to vector<8x128xf32>
    %462 = arith.addf %460, %461 : vector<8x128xf32>
    %463 = arith.negf %462 : vector<8x128xf32>
    %464 = math.exp %463 : vector<8x128xf32>
    %cst_179 = arith.constant 1.000000e+00 : f32
    %465 = vector.broadcast %cst_179 : f32 to vector<8x128xf32>
    %466 = arith.addf %465, %464 : vector<8x128xf32>
    %467 = arith.divf %465, %466 : vector<8x128xf32>
    %468 = vector.extract_strided_slice %459 {offsets = [0, 128], sizes = [8, 128], strides = [1, 1]} : vector<8x384xf32> to vector<8x128xf32>
    %469 = vector.extract_strided_slice %454 {offsets = [0, 128], sizes = [8, 128], strides = [1, 1]} : vector<8x384xf32> to vector<8x128xf32>
    %470 = arith.addf %468, %469 : vector<8x128xf32>
    %471 = arith.negf %470 : vector<8x128xf32>
    %472 = math.exp %471 : vector<8x128xf32>
    %cst_180 = arith.constant 1.000000e+00 : f32
    %473 = vector.broadcast %cst_180 : f32 to vector<8x128xf32>
    %474 = arith.addf %473, %472 : vector<8x128xf32>
    %475 = arith.divf %473, %474 : vector<8x128xf32>
    %476 = vector.extract_strided_slice %459 {offsets = [0, 256], sizes = [8, 128], strides = [1, 1]} : vector<8x384xf32> to vector<8x128xf32>
    %477 = vector.extract_strided_slice %454 {offsets = [0, 256], sizes = [8, 128], strides = [1, 1]} : vector<8x384xf32> to vector<8x128xf32>
    %478 = vector.broadcast %378 : vector<1x128xf32> to vector<8x128xf32>
    %479 = arith.addf %477, %478 : vector<8x128xf32>
    %480 = arith.mulf %467, %479 : vector<8x128xf32>
    %481 = arith.addf %476, %480 : vector<8x128xf32>
    %482 = math.tanh %481 : vector<8x128xf32>
    %cst_181 = arith.constant 1.000000e+00 : f32
    %483 = vector.broadcast %cst_181 : f32 to vector<8x128xf32>
    %484 = arith.subf %483, %475 : vector<8x128xf32>
    %485 = arith.mulf %484, %482 : vector<8x128xf32>
    %486 = arith.mulf %475, %451 : vector<8x128xf32>
    %487 = arith.addf %485, %486 : vector<8x128xf32>
    %488 = arith.truncf %487 : vector<8x128xf32> to vector<8x128xbf16>
    %c0_182 = arith.constant 0 : index
    %c0_183 = arith.constant 0 : index
    %489 = vector.load %arg12[%c0_182, %c0_183] : memref<128x384xbf16, #tpu.memory_space<vmem>>, vector<128x384xbf16>
    %cst_184 = arith.constant dense<0.000000e+00> : vector<8x384xf32>
    %490 = tpu.matmul %488, %489, %cst_184 {dimension_numbers = #tpu.dot_dimension_numbers<[1], [0], [0], [1], [0, 0, 1, 1], [], []>} : vector<8x128xbf16>, vector<128x384xbf16>, vector<8x384xf32> -> vector<8x384xf32>
    %c24_185 = arith.constant 24 : index
    %c0_186 = arith.constant 0 : index
    %491 = vector.load %arg17[%c24_185, %c0_186] : memref<64x384xbf16, #tpu.memory_space<vmem>>, vector<8x384xbf16>
    %492 = arith.extf %491 : vector<8x384xbf16> to vector<8x384xf32>
    %c32_187 = arith.constant 32 : index
    %c0_188 = arith.constant 0 : index
    %493 = vector.load %arg18[%c32_187, %c0_188] : memref<64x384xbf16, #tpu.memory_space<vmem>>, vector<8x384xbf16>
    %494 = arith.extf %493 : vector<8x384xbf16> to vector<8x384xf32>
    %495 = arith.addf %492, %494 : vector<8x384xf32>
    %496 = vector.extract_strided_slice %495 {offsets = [0, 0], sizes = [8, 128], strides = [1, 1]} : vector<8x384xf32> to vector<8x128xf32>
    %497 = vector.extract_strided_slice %490 {offsets = [0, 0], sizes = [8, 128], strides = [1, 1]} : vector<8x384xf32> to vector<8x128xf32>
    %498 = arith.addf %496, %497 : vector<8x128xf32>
    %499 = arith.negf %498 : vector<8x128xf32>
    %500 = math.exp %499 : vector<8x128xf32>
    %cst_189 = arith.constant 1.000000e+00 : f32
    %501 = vector.broadcast %cst_189 : f32 to vector<8x128xf32>
    %502 = arith.addf %501, %500 : vector<8x128xf32>
    %503 = arith.divf %501, %502 : vector<8x128xf32>
    %504 = vector.extract_strided_slice %495 {offsets = [0, 128], sizes = [8, 128], strides = [1, 1]} : vector<8x384xf32> to vector<8x128xf32>
    %505 = vector.extract_strided_slice %490 {offsets = [0, 128], sizes = [8, 128], strides = [1, 1]} : vector<8x384xf32> to vector<8x128xf32>
    %506 = arith.addf %504, %505 : vector<8x128xf32>
    %507 = arith.negf %506 : vector<8x128xf32>
    %508 = math.exp %507 : vector<8x128xf32>
    %cst_190 = arith.constant 1.000000e+00 : f32
    %509 = vector.broadcast %cst_190 : f32 to vector<8x128xf32>
    %510 = arith.addf %509, %508 : vector<8x128xf32>
    %511 = arith.divf %509, %510 : vector<8x128xf32>
    %512 = vector.extract_strided_slice %495 {offsets = [0, 256], sizes = [8, 128], strides = [1, 1]} : vector<8x384xf32> to vector<8x128xf32>
    %513 = vector.extract_strided_slice %490 {offsets = [0, 256], sizes = [8, 128], strides = [1, 1]} : vector<8x384xf32> to vector<8x128xf32>
    %514 = vector.broadcast %378 : vector<1x128xf32> to vector<8x128xf32>
    %515 = arith.addf %513, %514 : vector<8x128xf32>
    %516 = arith.mulf %503, %515 : vector<8x128xf32>
    %517 = arith.addf %512, %516 : vector<8x128xf32>
    %518 = math.tanh %517 : vector<8x128xf32>
    %cst_191 = arith.constant 1.000000e+00 : f32
    %519 = vector.broadcast %cst_191 : f32 to vector<8x128xf32>
    %520 = arith.subf %519, %511 : vector<8x128xf32>
    %521 = arith.mulf %520, %518 : vector<8x128xf32>
    %522 = arith.mulf %511, %487 : vector<8x128xf32>
    %523 = arith.addf %521, %522 : vector<8x128xf32>
    %524 = arith.truncf %523 : vector<8x128xf32> to vector<8x128xbf16>
    %c0_192 = arith.constant 0 : index
    %c0_193 = arith.constant 0 : index
    %525 = vector.load %arg12[%c0_192, %c0_193] : memref<128x384xbf16, #tpu.memory_space<vmem>>, vector<128x384xbf16>
    %cst_194 = arith.constant dense<0.000000e+00> : vector<8x384xf32>
    %526 = tpu.matmul %524, %525, %cst_194 {dimension_numbers = #tpu.dot_dimension_numbers<[1], [0], [0], [1], [0, 0, 1, 1], [], []>} : vector<8x128xbf16>, vector<128x384xbf16>, vector<8x384xf32> -> vector<8x384xf32>
    %c32_195 = arith.constant 32 : index
    %c0_196 = arith.constant 0 : index
    %527 = vector.load %arg17[%c32_195, %c0_196] : memref<64x384xbf16, #tpu.memory_space<vmem>>, vector<8x384xbf16>
    %528 = arith.extf %527 : vector<8x384xbf16> to vector<8x384xf32>
    %c24_197 = arith.constant 24 : index
    %c0_198 = arith.constant 0 : index
    %529 = vector.load %arg18[%c24_197, %c0_198] : memref<64x384xbf16, #tpu.memory_space<vmem>>, vector<8x384xbf16>
    %530 = arith.extf %529 : vector<8x384xbf16> to vector<8x384xf32>
    %531 = arith.addf %528, %530 : vector<8x384xf32>
    %532 = vector.extract_strided_slice %531 {offsets = [0, 0], sizes = [8, 128], strides = [1, 1]} : vector<8x384xf32> to vector<8x128xf32>
    %533 = vector.extract_strided_slice %526 {offsets = [0, 0], sizes = [8, 128], strides = [1, 1]} : vector<8x384xf32> to vector<8x128xf32>
    %534 = arith.addf %532, %533 : vector<8x128xf32>
    %535 = arith.negf %534 : vector<8x128xf32>
    %536 = math.exp %535 : vector<8x128xf32>
    %cst_199 = arith.constant 1.000000e+00 : f32
    %537 = vector.broadcast %cst_199 : f32 to vector<8x128xf32>
    %538 = arith.addf %537, %536 : vector<8x128xf32>
    %539 = arith.divf %537, %538 : vector<8x128xf32>
    %540 = vector.extract_strided_slice %531 {offsets = [0, 128], sizes = [8, 128], strides = [1, 1]} : vector<8x384xf32> to vector<8x128xf32>
    %541 = vector.extract_strided_slice %526 {offsets = [0, 128], sizes = [8, 128], strides = [1, 1]} : vector<8x384xf32> to vector<8x128xf32>
    %542 = arith.addf %540, %541 : vector<8x128xf32>
    %543 = arith.negf %542 : vector<8x128xf32>
    %544 = math.exp %543 : vector<8x128xf32>
    %cst_200 = arith.constant 1.000000e+00 : f32
    %545 = vector.broadcast %cst_200 : f32 to vector<8x128xf32>
    %546 = arith.addf %545, %544 : vector<8x128xf32>
    %547 = arith.divf %545, %546 : vector<8x128xf32>
    %548 = vector.extract_strided_slice %531 {offsets = [0, 256], sizes = [8, 128], strides = [1, 1]} : vector<8x384xf32> to vector<8x128xf32>
    %549 = vector.extract_strided_slice %526 {offsets = [0, 256], sizes = [8, 128], strides = [1, 1]} : vector<8x384xf32> to vector<8x128xf32>
    %550 = vector.broadcast %378 : vector<1x128xf32> to vector<8x128xf32>
    %551 = arith.addf %549, %550 : vector<8x128xf32>
    %552 = arith.mulf %539, %551 : vector<8x128xf32>
    %553 = arith.addf %548, %552 : vector<8x128xf32>
    %554 = math.tanh %553 : vector<8x128xf32>
    %cst_201 = arith.constant 1.000000e+00 : f32
    %555 = vector.broadcast %cst_201 : f32 to vector<8x128xf32>
    %556 = arith.subf %555, %547 : vector<8x128xf32>
    %557 = arith.mulf %556, %554 : vector<8x128xf32>
    %558 = arith.mulf %547, %523 : vector<8x128xf32>
    %559 = arith.addf %557, %558 : vector<8x128xf32>
    %560 = arith.truncf %559 : vector<8x128xf32> to vector<8x128xbf16>
    %c0_202 = arith.constant 0 : index
    %c0_203 = arith.constant 0 : index
    %561 = vector.load %arg12[%c0_202, %c0_203] : memref<128x384xbf16, #tpu.memory_space<vmem>>, vector<128x384xbf16>
    %cst_204 = arith.constant dense<0.000000e+00> : vector<8x384xf32>
    %562 = tpu.matmul %560, %561, %cst_204 {dimension_numbers = #tpu.dot_dimension_numbers<[1], [0], [0], [1], [0, 0, 1, 1], [], []>} : vector<8x128xbf16>, vector<128x384xbf16>, vector<8x384xf32> -> vector<8x384xf32>
    %c40_205 = arith.constant 40 : index
    %c0_206 = arith.constant 0 : index
    %563 = vector.load %arg17[%c40_205, %c0_206] : memref<64x384xbf16, #tpu.memory_space<vmem>>, vector<8x384xbf16>
    %564 = arith.extf %563 : vector<8x384xbf16> to vector<8x384xf32>
    %c16_207 = arith.constant 16 : index
    %c0_208 = arith.constant 0 : index
    %565 = vector.load %arg18[%c16_207, %c0_208] : memref<64x384xbf16, #tpu.memory_space<vmem>>, vector<8x384xbf16>
    %566 = arith.extf %565 : vector<8x384xbf16> to vector<8x384xf32>
    %567 = arith.addf %564, %566 : vector<8x384xf32>
    %568 = vector.extract_strided_slice %567 {offsets = [0, 0], sizes = [8, 128], strides = [1, 1]} : vector<8x384xf32> to vector<8x128xf32>
    %569 = vector.extract_strided_slice %562 {offsets = [0, 0], sizes = [8, 128], strides = [1, 1]} : vector<8x384xf32> to vector<8x128xf32>
    %570 = arith.addf %568, %569 : vector<8x128xf32>
    %571 = arith.negf %570 : vector<8x128xf32>
    %572 = math.exp %571 : vector<8x128xf32>
    %cst_209 = arith.constant 1.000000e+00 : f32
    %573 = vector.broadcast %cst_209 : f32 to vector<8x128xf32>
    %574 = arith.addf %573, %572 : vector<8x128xf32>
    %575 = arith.divf %573, %574 : vector<8x128xf32>
    %576 = vector.extract_strided_slice %567 {offsets = [0, 128], sizes = [8, 128], strides = [1, 1]} : vector<8x384xf32> to vector<8x128xf32>
    %577 = vector.extract_strided_slice %562 {offsets = [0, 128], sizes = [8, 128], strides = [1, 1]} : vector<8x384xf32> to vector<8x128xf32>
    %578 = arith.addf %576, %577 : vector<8x128xf32>
    %579 = arith.negf %578 : vector<8x128xf32>
    %580 = math.exp %579 : vector<8x128xf32>
    %cst_210 = arith.constant 1.000000e+00 : f32
    %581 = vector.broadcast %cst_210 : f32 to vector<8x128xf32>
    %582 = arith.addf %581, %580 : vector<8x128xf32>
    %583 = arith.divf %581, %582 : vector<8x128xf32>
    %584 = vector.extract_strided_slice %567 {offsets = [0, 256], sizes = [8, 128], strides = [1, 1]} : vector<8x384xf32> to vector<8x128xf32>
    %585 = vector.extract_strided_slice %562 {offsets = [0, 256], sizes = [8, 128], strides = [1, 1]} : vector<8x384xf32> to vector<8x128xf32>
    %586 = vector.broadcast %378 : vector<1x128xf32> to vector<8x128xf32>
    %587 = arith.addf %585, %586 : vector<8x128xf32>
    %588 = arith.mulf %575, %587 : vector<8x128xf32>
    %589 = arith.addf %584, %588 : vector<8x128xf32>
    %590 = math.tanh %589 : vector<8x128xf32>
    %cst_211 = arith.constant 1.000000e+00 : f32
    %591 = vector.broadcast %cst_211 : f32 to vector<8x128xf32>
    %592 = arith.subf %591, %583 : vector<8x128xf32>
    %593 = arith.mulf %592, %590 : vector<8x128xf32>
    %594 = arith.mulf %583, %559 : vector<8x128xf32>
    %595 = arith.addf %593, %594 : vector<8x128xf32>
    %596 = arith.truncf %595 : vector<8x128xf32> to vector<8x128xbf16>
    %c0_212 = arith.constant 0 : index
    %c0_213 = arith.constant 0 : index
    %597 = vector.load %arg12[%c0_212, %c0_213] : memref<128x384xbf16, #tpu.memory_space<vmem>>, vector<128x384xbf16>
    %cst_214 = arith.constant dense<0.000000e+00> : vector<8x384xf32>
    %598 = tpu.matmul %596, %597, %cst_214 {dimension_numbers = #tpu.dot_dimension_numbers<[1], [0], [0], [1], [0, 0, 1, 1], [], []>} : vector<8x128xbf16>, vector<128x384xbf16>, vector<8x384xf32> -> vector<8x384xf32>
    %c48_215 = arith.constant 48 : index
    %c0_216 = arith.constant 0 : index
    %599 = vector.load %arg17[%c48_215, %c0_216] : memref<64x384xbf16, #tpu.memory_space<vmem>>, vector<8x384xbf16>
    %600 = arith.extf %599 : vector<8x384xbf16> to vector<8x384xf32>
    %c8_217 = arith.constant 8 : index
    %c0_218 = arith.constant 0 : index
    %601 = vector.load %arg18[%c8_217, %c0_218] : memref<64x384xbf16, #tpu.memory_space<vmem>>, vector<8x384xbf16>
    %602 = arith.extf %601 : vector<8x384xbf16> to vector<8x384xf32>
    %603 = arith.addf %600, %602 : vector<8x384xf32>
    %604 = vector.extract_strided_slice %603 {offsets = [0, 0], sizes = [8, 128], strides = [1, 1]} : vector<8x384xf32> to vector<8x128xf32>
    %605 = vector.extract_strided_slice %598 {offsets = [0, 0], sizes = [8, 128], strides = [1, 1]} : vector<8x384xf32> to vector<8x128xf32>
    %606 = arith.addf %604, %605 : vector<8x128xf32>
    %607 = arith.negf %606 : vector<8x128xf32>
    %608 = math.exp %607 : vector<8x128xf32>
    %cst_219 = arith.constant 1.000000e+00 : f32
    %609 = vector.broadcast %cst_219 : f32 to vector<8x128xf32>
    %610 = arith.addf %609, %608 : vector<8x128xf32>
    %611 = arith.divf %609, %610 : vector<8x128xf32>
    %612 = vector.extract_strided_slice %603 {offsets = [0, 128], sizes = [8, 128], strides = [1, 1]} : vector<8x384xf32> to vector<8x128xf32>
    %613 = vector.extract_strided_slice %598 {offsets = [0, 128], sizes = [8, 128], strides = [1, 1]} : vector<8x384xf32> to vector<8x128xf32>
    %614 = arith.addf %612, %613 : vector<8x128xf32>
    %615 = arith.negf %614 : vector<8x128xf32>
    %616 = math.exp %615 : vector<8x128xf32>
    %cst_220 = arith.constant 1.000000e+00 : f32
    %617 = vector.broadcast %cst_220 : f32 to vector<8x128xf32>
    %618 = arith.addf %617, %616 : vector<8x128xf32>
    %619 = arith.divf %617, %618 : vector<8x128xf32>
    %620 = vector.extract_strided_slice %603 {offsets = [0, 256], sizes = [8, 128], strides = [1, 1]} : vector<8x384xf32> to vector<8x128xf32>
    %621 = vector.extract_strided_slice %598 {offsets = [0, 256], sizes = [8, 128], strides = [1, 1]} : vector<8x384xf32> to vector<8x128xf32>
    %622 = vector.broadcast %378 : vector<1x128xf32> to vector<8x128xf32>
    %623 = arith.addf %621, %622 : vector<8x128xf32>
    %624 = arith.mulf %611, %623 : vector<8x128xf32>
    %625 = arith.addf %620, %624 : vector<8x128xf32>
    %626 = math.tanh %625 : vector<8x128xf32>
    %cst_221 = arith.constant 1.000000e+00 : f32
    %627 = vector.broadcast %cst_221 : f32 to vector<8x128xf32>
    %628 = arith.subf %627, %619 : vector<8x128xf32>
    %629 = arith.mulf %628, %626 : vector<8x128xf32>
    %630 = arith.mulf %619, %595 : vector<8x128xf32>
    %631 = arith.addf %629, %630 : vector<8x128xf32>
    %632 = arith.truncf %631 : vector<8x128xf32> to vector<8x128xbf16>
    %c0_222 = arith.constant 0 : index
    %c0_223 = arith.constant 0 : index
    %633 = vector.load %arg12[%c0_222, %c0_223] : memref<128x384xbf16, #tpu.memory_space<vmem>>, vector<128x384xbf16>
    %cst_224 = arith.constant dense<0.000000e+00> : vector<8x384xf32>
    %634 = tpu.matmul %632, %633, %cst_224 {dimension_numbers = #tpu.dot_dimension_numbers<[1], [0], [0], [1], [0, 0, 1, 1], [], []>} : vector<8x128xbf16>, vector<128x384xbf16>, vector<8x384xf32> -> vector<8x384xf32>
    %c56_225 = arith.constant 56 : index
    %c0_226 = arith.constant 0 : index
    %635 = vector.load %arg17[%c56_225, %c0_226] : memref<64x384xbf16, #tpu.memory_space<vmem>>, vector<8x384xbf16>
    %636 = arith.extf %635 : vector<8x384xbf16> to vector<8x384xf32>
    %c0_227 = arith.constant 0 : index
    %c0_228 = arith.constant 0 : index
    %637 = vector.load %arg18[%c0_227, %c0_228] : memref<64x384xbf16, #tpu.memory_space<vmem>>, vector<8x384xbf16>
    %638 = arith.extf %637 : vector<8x384xbf16> to vector<8x384xf32>
    %639 = arith.addf %636, %638 : vector<8x384xf32>
    %640 = vector.extract_strided_slice %639 {offsets = [0, 0], sizes = [8, 128], strides = [1, 1]} : vector<8x384xf32> to vector<8x128xf32>
    %641 = vector.extract_strided_slice %634 {offsets = [0, 0], sizes = [8, 128], strides = [1, 1]} : vector<8x384xf32> to vector<8x128xf32>
    %642 = arith.addf %640, %641 : vector<8x128xf32>
    %643 = arith.negf %642 : vector<8x128xf32>
    %644 = math.exp %643 : vector<8x128xf32>
    %cst_229 = arith.constant 1.000000e+00 : f32
    %645 = vector.broadcast %cst_229 : f32 to vector<8x128xf32>
    %646 = arith.addf %645, %644 : vector<8x128xf32>
    %647 = arith.divf %645, %646 : vector<8x128xf32>
    %648 = vector.extract_strided_slice %639 {offsets = [0, 128], sizes = [8, 128], strides = [1, 1]} : vector<8x384xf32> to vector<8x128xf32>
    %649 = vector.extract_strided_slice %634 {offsets = [0, 128], sizes = [8, 128], strides = [1, 1]} : vector<8x384xf32> to vector<8x128xf32>
    %650 = arith.addf %648, %649 : vector<8x128xf32>
    %651 = arith.negf %650 : vector<8x128xf32>
    %652 = math.exp %651 : vector<8x128xf32>
    %cst_230 = arith.constant 1.000000e+00 : f32
    %653 = vector.broadcast %cst_230 : f32 to vector<8x128xf32>
    %654 = arith.addf %653, %652 : vector<8x128xf32>
    %655 = arith.divf %653, %654 : vector<8x128xf32>
    %656 = vector.extract_strided_slice %639 {offsets = [0, 256], sizes = [8, 128], strides = [1, 1]} : vector<8x384xf32> to vector<8x128xf32>
    %657 = vector.extract_strided_slice %634 {offsets = [0, 256], sizes = [8, 128], strides = [1, 1]} : vector<8x384xf32> to vector<8x128xf32>
    %658 = vector.broadcast %378 : vector<1x128xf32> to vector<8x128xf32>
    %659 = arith.addf %657, %658 : vector<8x128xf32>
    %660 = arith.mulf %647, %659 : vector<8x128xf32>
    %661 = arith.addf %656, %660 : vector<8x128xf32>
    %662 = math.tanh %661 : vector<8x128xf32>
    %cst_231 = arith.constant 1.000000e+00 : f32
    %663 = vector.broadcast %cst_231 : f32 to vector<8x128xf32>
    %664 = arith.subf %663, %655 : vector<8x128xf32>
    %665 = arith.mulf %664, %662 : vector<8x128xf32>
    %666 = arith.mulf %655, %631 : vector<8x128xf32>
    %667 = arith.addf %665, %666 : vector<8x128xf32>
    %c0_232 = arith.constant 0 : index
    %c0_233 = arith.constant 0 : index
    %668 = vector.load %arg16[%c0_232, %c0_233] : memref<8x128xf32, #tpu.memory_space<vmem>>, vector<8x128xf32>
    %669 = arith.truncf %667 : vector<8x128xf32> to vector<8x128xbf16>
    %c0_234 = arith.constant 0 : index
    %c0_235 = arith.constant 0 : index
    %670 = vector.load %arg14[%c0_234, %c0_235] : memref<128x128xbf16, #tpu.memory_space<vmem>>, vector<128x128xbf16>
    %cst_236 = arith.constant dense<0.000000e+00> : vector<8x128xf32>
    %671 = tpu.matmul %669, %670, %cst_236 {dimension_numbers = #tpu.dot_dimension_numbers<[1], [0], [0], [1], [0, 0, 1, 1], [], []>} : vector<8x128xbf16>, vector<128x128xbf16>, vector<8x128xf32> -> vector<8x128xf32>
    %672 = arith.addf %668, %671 : vector<8x128xf32>
    %c0_237 = arith.constant 0 : index
    %c0_238 = arith.constant 0 : index
    %673 = vector.load %arg16[%c0_237, %c0_238] : memref<8x128xf32, #tpu.memory_space<vmem>>, vector<8x128xf32>
    tpu.vector_store %arg16[%c0_237, %c0_238], %672 {strides = array<i32>} : memref<8x128xf32, #tpu.memory_space<vmem>>, vector<8x128xf32>,
    return
  }
}

</mosaic_0001>

<bundles_post_ra>
// kernel: fused_forward.1
= control target key start
LH: loop header
LB: loop body
LE: loop exit
PB: predicated region body
PF: predicated region fallthrough
CT: control target
= control target key end

     0   :  { %s8287_s0 = inlined_call_operand.vmem [shape: bf16[64,32], index: 0, kind: input, shape index: {}]   ;;  %s8288_s1 = inlined_call_operand.hbm [shape: bf16[32,384], index: 1, kind: input, shape index: {}]   ;;  %s8289_s2 = inlined_call_operand.hbm [shape: bf16[32,384], index: 2, kind: input, shape index: {}]   ;;  %s8290_s3 = inlined_call_operand.vmem [shape: f32[1,384], index: 3, kind: input, shape index: {}]   ;;  %s8291_s4 = inlined_call_operand.vmem [shape: f32[1,384], index: 4, kind: input, shape index: {}]   ;;  %s8292_s5 = inlined_call_operand.hbm [shape: bf16[128,384], index: 5, kind: input, shape index: {}]   ;;  %s8293_s6 = inlined_call_operand.vmem [shape: f32[1,128], index: 6, kind: input, shape index: {}]   ;;  %s8294_s7 = inlined_call_operand.hbm [shape: bf16[128,128], index: 7, kind: input, shape index: {}]   ;;  %s8295_s8 = inlined_call_operand.hbm [shape: bf16[64,384], index: 8, kind: input, shape index: {}]   ;;  %s8296_s9 = inlined_call_operand.hbm [shape: bf16[64,384], index: 9, kind: input, shape index: {}]   ;;  %s8297_s10 = inlined_call_operand.hbm [shape: f32[1,384], index: 10, kind: input, shape index: {}]   ;;  %s8298_s11 = inlined_call_operand.hbm [shape: f32[1,384], index: 11, kind: input, shape index: {}]   ;;  %s8299_s12 = inlined_call_operand.vmem [shape: bf16[128,384], index: 12, kind: input, shape index: {}]   ;;  %s8300_s13 = inlined_call_operand.hbm [shape: f32[1,128], index: 13, kind: input, shape index: {}]   ;;  %s8301_s14 = inlined_call_operand.hbm [shape: bf16[128,128], index: 14, kind: input, shape index: {}]   ;;  %s8302_s15 = inlined_call_operand.vmem [shape: f32[1,128], index: 15, kind: input, shape index: {}]   ;;  %s8303_s16 = inlined_call_operand.vmem [shape: f32[8,128], index: 16, kind: output, shape index: {}]  }
   0x1   :  { %8311 = sst [smem:[#allocation31_spill]] %s8287_s0 }
   0x2   :  { %21 = vsyncpa [#allocation6], 0 }
   0x3   :  { %22 = vsyncpa [#allocation8], 0 }
   0x4   :  { %23 = vsyncpa [#allocation11], 0 }
   0x5   :  { %24 = vsyncpa [#allocation14], 0 }
   0x6   :  { %25 = vsyncpa [#allocation17], 0 }
   0x7   :  { %26 = vsyncpa [#allocation20], 0  ;;  %s6829_s21 = smov [#allocation7]   ;;  %s6830_s23 = smov [#allocation10]  }
   0x8   :  { %s46_s22 = sshll.u32 %s6829_s21, 4  ;;  %s76_s24 = sshll.u32 %s6830_s23, 4  ;;  %s47_s22 = int_to_ptr.vmem [resolvable:$true] %s46_s22  ;;  %s77_s24 = int_to_ptr.vmem [resolvable:$true] %s76_s24 }
   0x9   :  { %s6625_s25 = scalar_lea.vmem %s47_s22, 768  ;;  %p6630_p1 = scmp.lt.s32.totalorder %s47_s22, %s47_s22 }
   0xa   :  { %p6626_p0 = scmp.ne.s32.totalorder %s47_s22, %s6625_s25  ;;  %p6631_p2 = scmp.lt.s32.totalorder %s6625_s25, %s6625_s25 }
   0xc   :  { %p6632_p3 = por %p6631_p2, %p6630_p1 }
   0xe   :  { %p6633_p4 = pnand %p6632_p3, %p6626_p0 }
  0x10   :  { %6636 = shalt.err (!%p6633_p4)
}
  0x11   :  { %s6831_s26 = smov 192   ;;  %s6832_s27 = smov 12  }
  0x12   :  { %52 = dma.hbm_to_vmem [thread:$0]  %s8289_s2, 768, %s47_s22, [#allocation8], %s6831_s26, %s6831_s26, %s6832_s27  }
  0x13   :  { %s6645_s30 = scalar_lea.vmem %s77_s24, 1024  ;;  %p6650_p6 = scmp.lt.s32.totalorder %s77_s24, %s77_s24 }
  0x14   :  { %p6646_p5 = scmp.ne.s32.totalorder %s77_s24, %s6645_s30  ;;  %p6651_p7 = scmp.lt.s32.totalorder %s6645_s30, %s6645_s30 }
  0x16   :  { %p6652_p8 = por %p6651_p7, %p6650_p6 }
  0x18   :  { %p6653_p9 = pnand %p6652_p8, %p6646_p5 }
  0x1a   :  { %6656 = shalt.err (!%p6653_p9)
}
  0x1b   :  { %s6833_s0 = smov 64   ;;  %s6834_s17 = smov 4  }
  0x1c   :  { %82 = dma.hbm_to_vmem [thread:$0]  %s8294_s7, 1024, %s77_s24, [#allocation11], %s6833_s0, %s6833_s0, %s6834_s17  }
  0x1d   :  { %s6835_s20 = smov [#allocation13]   ;;  %s6836_s23 = smov [#allocation16]  }
  0x1e   :  { %s100_s21 = sshll.u32 %s6835_s20, 4  ;;  %s123_s2 = sshll.u32 %s6836_s23, 4  ;;  %s101_s21 = int_to_ptr.vmem [resolvable:$true] %s100_s21  ;;  %s124_s2 = int_to_ptr.vmem [resolvable:$true] %s123_s2 }
  0x1f   :  { %s6665_s22 = scalar_lea.vmem %s101_s21, 1536  ;;  %p6670_p11 = scmp.lt.s32.totalorder %s101_s21, %s101_s21 }
  0x20   :  { %p6666_p10 = scmp.ne.s32.totalorder %s101_s21, %s6665_s22  ;;  %p6671_p12 = scmp.lt.s32.totalorder %s6665_s22, %s6665_s22 }
  0x22   :  { %p6672_p13 = por %p6671_p12, %p6670_p11 }
  0x24   :  { %p6673_p0 = pnand %p6672_p13, %p6666_p10 }
  0x26   :  { %6676 = shalt.err (!%p6673_p0)
}
  0x27   :  { %106 = dma.hbm_to_vmem [thread:$0]  %s8296_s9, 1536, %s101_s21, [#allocation14], %s6831_s26, %s6831_s26, %s6832_s27  }
  0x28   :  { %s6685_s7 = scalar_lea.vmem %s124_s2, 48  ;;  %s6689_s24 = scalar_lea.vmem %s124_s2, 64 }
  0x29   :  { %p6686_p1 = scmp.ne.s32.totalorder %s124_s2, %s6685_s7  ;;  %p6690_p2 = scmp.lt.s32.totalorder %s124_s2, %s124_s2 }
  0x2a   :  { %p6691_p3 = scmp.lt.s32.totalorder %s6689_s24, %s6685_s7 }
  0x2c   :  { %p6692_p4 = por %p6691_p3, %p6690_p2 }
  0x2e   :  { %p6693_p5 = pnand %p6692_p4, %p6686_p1 }
  0x30   :  { %6696 = shalt.err (!%p6693_p5)
}
  0x31   :  { %126 = dma.hbm_to_vmem [thread:$0]  %s8298_s11, 48, %s124_s2, [#allocation17]  }
  0x32   :  { %s6837_s18 = smov [#allocation5]   ;;  %s6838_s20 = smov [#allocation9]  }
  0x33   :  { %s34_s19 = sshll.u32 %s6837_s18, 4  ;;  %s62_s23 = sshll.u32 %s6838_s20, 4  ;;  %s35_s19 = int_to_ptr.vmem [resolvable:$true] %s34_s19  ;;  %s63_s23 = int_to_ptr.vmem [resolvable:$true] %s62_s23 }
  0x34   :  { %s6705_s22 = scalar_lea.vmem %s35_s19, 768  ;;  %p6710_p7 = scmp.lt.s32.totalorder %s35_s19, %s35_s19 }
  0x35   :  { %p6706_p6 = scmp.ne.s32.totalorder %s35_s19, %s6705_s22  ;;  %p6711_p8 = scmp.lt.s32.totalorder %s6705_s22, %s6705_s22 }
  0x37   :  { %p6712_p9 = por %p6711_p8, %p6710_p7 }
  0x39   :  { %p6713_p10 = pnand %p6712_p9, %p6706_p6 }
  0x3b   :  { %6716 = shalt.err (!%p6713_p10)
}
  0x3c   :  { %40 = dma.hbm_to_vmem [thread:$0]  %s8288_s1, 768, %s35_s19, [#allocation6], %s6831_s26, %s6831_s26, %s6832_s27  }
  0x3d   :  { %s6725_s11 = scalar_lea.vmem %s63_s23, 3072  ;;  %p6730_p12 = scmp.lt.s32.totalorder %s63_s23, %s63_s23 }
  0x3e   :  { %p6726_p11 = scmp.ne.s32.totalorder %s63_s23, %s6725_s11  ;;  %p6731_p13 = scmp.lt.s32.totalorder %s6725_s11, %s6725_s11 }
  0x40   :  { %p6732_p0 = por %p6731_p13, %p6730_p12 }
  0x42   :  { %p6733_p1 = pnand %p6732_p0, %p6726_p11 }
  0x44   :  { %6736 = shalt.err (!%p6733_p1)
}
  0x45   :  { %68 = dma.hbm_to_vmem [thread:$0]  %s8292_s5, 3072, %s63_s23, [#allocation8], %s6831_s26, %s6831_s26, %s6832_s27  }
  0x46   :  { %s6839_s28 = smov [#allocation12]   ;;  %s6840_s24 = smov [#allocation15]  }
  0x47   :  { %s88_s7 = sshll.u32 %s6839_s28, 4  ;;  %s113_s29 = sshll.u32 %s6840_s24, 4  ;;  %s89_s7 = int_to_ptr.vmem [resolvable:$true] %s88_s7  ;;  %s114_s29 = int_to_ptr.vmem [resolvable:$true] %s113_s29 }
  0x48   :  { %s6745_s1 = scalar_lea.vmem %s89_s7, 1536  ;;  %p6750_p3 = scmp.lt.s32.totalorder %s89_s7, %s89_s7 }
  0x49   :  { %p6746_p2 = scmp.ne.s32.totalorder %s89_s7, %s6745_s1  ;;  %p6751_p4 = scmp.lt.s32.totalorder %s6745_s1, %s6745_s1 }
  0x4b   :  { %p6752_p5 = por %p6751_p4, %p6750_p3 }
  0x4d   :  { %p6753_p6 = pnand %p6752_p5, %p6746_p2 }
  0x4f   :  { %6756 = shalt.err (!%p6753_p6)
}
  0x50   :  { %94 = dma.hbm_to_vmem [thread:$0]  %s8295_s8, 1536, %s89_s7, [#allocation11], %s6831_s26, %s6831_s26, %s6832_s27  }
  0x51   :  { %s6765_s5 = scalar_lea.vmem %s114_s29, 48  ;;  %s6769_s19 = scalar_lea.vmem %s114_s29, 64 }
  0x52   :  { %p6766_p7 = scmp.ne.s32.totalorder %s114_s29, %s6765_s5  ;;  %p6770_p8 = scmp.lt.s32.totalorder %s114_s29, %s114_s29 }
  0x53   :  { %p6771_p9 = scmp.lt.s32.totalorder %s6769_s19, %s6765_s5 }
  0x55   :  { %p6772_p10 = por %p6771_p9, %p6770_p8 }
  0x57   :  { %p6773_p11 = pnand %p6772_p10, %p6766_p7 }
  0x59   :  { %6776 = shalt.err (!%p6773_p11)
}
  0x5a   :  { %116 = dma.hbm_to_vmem [thread:$0]  %s8297_s10, 48, %s114_s29, [#allocation14]  }
  0x5b   :  { %s6841_s22 = smov [#allocation18]   ;;  %s6842_s21 = smov [#allocation19]  }
  0x5c   :  { %s135_s9 = sshll.u32 %s6841_s22, 4  ;;  %s144_s11 = sshll.u32 %s6842_s21, 4  ;;  %s136_s9 = int_to_ptr.vmem [resolvable:$true] %s135_s9  ;;  %s145_s11 = int_to_ptr.vmem [resolvable:$true] %s144_s11 }
  0x5d   :  { %s6785_s2 = scalar_lea.vmem %s136_s9, 16  ;;  %s6789_s8 = scalar_lea.vmem %s136_s9, 32 }
  0x5e   :  { %p6786_p12 = scmp.ne.s32.totalorder %s136_s9, %s6785_s2  ;;  %p6790_p13 = scmp.lt.s32.totalorder %s136_s9, %s136_s9 }
  0x5f   :  { %p6791_p0 = scmp.lt.s32.totalorder %s6789_s8, %s6785_s2 }
  0x61   :  { %p6792_p1 = por %p6791_p0, %p6790_p13 }
  0x63   :  { %p6793_p2 = pnand %p6792_p1, %p6786_p12 }
  0x65   :  { %6796 = shalt.err (!%p6793_p2)
}
  0x66   :  { %138 = dma.hbm_to_vmem [thread:$0]  %s8300_s13, 16, %s136_s9, [#allocation17]  }
  0x67   :  { %s6805_s25 = scalar_lea.vmem %s145_s11, 1024  ;;  %p6810_p4 = scmp.lt.s32.totalorder %s145_s11, %s145_s11 }
  0x68   :  { %p6806_p3 = scmp.ne.s32.totalorder %s145_s11, %s6805_s25  ;;  %p6811_p5 = scmp.lt.s32.totalorder %s6805_s25, %s6805_s25 }
  0x6a   :  { %p6812_p6 = por %p6811_p5, %p6810_p4 }
  0x6c   :  { %p6813_p7 = pnand %p6812_p6, %p6806_p3 }
  0x6e   :  { %6816 = shalt.err (!%p6813_p7)
}
  0x6f   :  { %150 = dma.hbm_to_vmem [thread:$0]  %s8301_s14, 1024, %s145_s11, [#allocation20], %s6833_s0, %s6833_s0, %s6834_s17  }
  0x70   :  { %6817 = dma.done.wait [#allocation6], 768  }
  0x71   :  { %6818 = vsyncadd [#allocation6], 4294966528 }
  0x72   :  { %6819 = dma.done.wait [#allocation8], 3840  }
  0x73   :  { %6820 = vsyncadd [#allocation8], 4294963456 }
  0x74   :  { %6821 = dma.done.wait [#allocation11], 2560  }
  0x75   :  { %6822 = vsyncadd [#allocation11], 4294964736 }
  0x76   :  { %6823 = dma.done.wait [#allocation14], 1584  }
  0x77   :  { %6824 = vsyncadd [#allocation14], 4294965712 }
  0x78   :  { %6825 = dma.done.wait [#allocation17], 64  }
  0x79   :  { %6826 = vsyncadd [#allocation17], 4294967232 }
  0x7a   :  { %6827 = dma.done.wait [#allocation20], 1024  }
  0x7b   :  { %6828 = vsyncadd [#allocation20], 4294966272  ;;  %v8305_v0 = vmov 0   ;;  %v6184_v1 = vld [vmem:[#allocation5 + $0x1c] ss:$12 sps:$4 sm:$0xff]   ;;  %s8312_s0 = sld [smem:[#allocation31_spill]]  ;;  %v210_v47 = vlaneseq }
  0x7c   :  { %322 = vmatprep.mubr.bf16.mxu0 %v8305_v0  ;;  %342 = vmatprep.mubr.bf16.mxu1 %v8305_v0  ;;  %v6186_v2 = vld [vmem:[#allocation5 + $0x18] ss:$12 sps:$4 sm:$0xff]   ;;  %v6189_v4 = vld [vmem:[#allocation5] ss:$12 sps:$4 sm:$0xff]   ;;  %vm277_vm0 = vcmask 261120   ;;  %v8307_v14 = vmov 0.0  }
  0x7d   :  { %302 = vmatprep.subr.bf16.mxu0 %v6184_v1  ;;  %6163 = vmatprep.subr.bf16.mxu1 %v6184_v1  ;;  %v6187_v3 = vld [vmem:[#allocation5 + $0x4] ss:$12 sps:$4 sm:$0xff]   ;;  %v6192_v6 = vld [vmem:[#allocation5 + $0x20] ss:$12 sps:$4 sm:$0xff]   ;;  %v6195_v8 = vld [vmem:[#allocation5 + $0x8] ss:$12 sps:$4 sm:$0xff]  }
  0x7e   :  { %303 = vmatpush1.bf16.msra.mxu0 %v6186_v2  ;;  %6165 = vmatpush1.bf16.msra.mxu1 %v6186_v2  ;;  %v6196_v9 = vld [vmem:[#allocation7 + $0x20] ss:$12 sps:$4 sm:$0xff]   ;;  %v6197_v10 = vld [vmem:[#allocation7 + $0x8] ss:$12 sps:$4 sm:$0xff]   ;;  %v6198_v15 = vld [vmem:[#allocation7 + $0x18] ss:$12 sps:$4 sm:$0xff]  }
  0x7f   :  { %304 = vmatprep.subr.bf16.mxu0 %v6187_v3  ;;  %6164 = vmatprep.subr.bf16.mxu1 %v6187_v3  ;;  %v6200_v11 = vld [vmem:[#allocation7 + $0x1c] ss:$12 sps:$4 sm:$0xff]   ;;  %v6203_v16 = vld [vmem:[#allocation7 + $0x4] ss:$12 sps:$4 sm:$0xff]   ;;  %v6228_v17 = vld [vmem:[#allocation9 + $0xb0] ss:$12 sps:$4 sm:$0xff]  }
  0x80   :  { %v6201_v18 = vld [vmem:[#allocation7] ss:$12 sps:$4 sm:$0xff]   ;;  %v7022_v19 = vld [vmem:[#allocation9 + $0xac] ss:$12 sps:$4 sm:$0xff]   ;;  %v6231_v22 = vld [vmem:[#allocation9 + $0x68] ss:$12 sps:$4 sm:$0xff]  }
  0x81   :  { %v6987_v5 = vld [vmem:[%s8312_s0] sm:$0xff]   ;;  %v6992_v7 = vld [vmem:[%s8312_s0 + $0x10] sm:$0xff]   ;;  %v6193_v12 = vld [vmem:[%s8312_s0 + $0x8] sm:$0xff]   ;;  %vm6845_vm1 = vmmov 0   ;;  %v211_v49 = vshrl.u32 %v210_v47, 7  ;;  %vm1099_vm2 = vcmask 257024  }
  0x82   :  { %305 = vmatpush1.bf16.msra.mxu0 %v6189_v4  ;;  %6166 = vmatpush1.bf16.msra.mxu1 %v6189_v4  ;;  %v7006_v13 = vld [vmem:[%s8312_s0 + $0x18] sm:$0xff]   ;;  %v6230_v21 = vld [vmem:[#allocation9 + $0x80] ss:$12 sps:$4 sm:$0xff]   ;;  %v6204_v23 = vld [vmem:[#allocation9 + $0xa8] ss:$12 sps:$4 sm:$0xff]   ;;  %vm1101_vm3 = vcmask 519424  }
  0x83   :  { %5747 = vmatprep.subr.bf16.mxu1 %v6192_v6  ;;  %5759 = vmatprep.subr.bf16.mxu0 %v6196_v9  ;;  %v6229_v20 = vld [vmem:[#allocation9 + $0x98] ss:$12 sps:$4 sm:$0xff]   ;;  %v6209_v24 = vld [vmem:[#allocation9 + $0x94] ss:$12 sps:$4 sm:$0xff]   ;;  %v6232_v25 = vld [vmem:[#allocation9 + $0x50] ss:$12 sps:$4 sm:$0xff]  }
  0x84   :  { %v6207_v26 = vld [vmem:[#allocation9 + $0x90] ss:$12 sps:$4 sm:$0xff]   ;;  %v6233_v28 = vld [vmem:[#allocation9 + $0x38] ss:$12 sps:$4 sm:$0xff]   ;;  %v6234_v31 = vld [vmem:[#allocation9 + $0x20] ss:$12 sps:$4 sm:$0xff]  }
  0x85   :  { %5097 = vmatmul.mubr.msk.bf16.vlgmr.msra.gmra.mxu0 %vm277_vm0, %v6987_v5  ;;  %5099 = vmatmul.mubr.msk.bf16.vlgmr.msra.gmra.mxu1 %vm277_vm0, %v6992_v7  ;;  %v6212_v27 = vld [vmem:[#allocation9 + $0x7c] ss:$12 sps:$4 sm:$0xff]   ;;  %v6210_v29 = vld [vmem:[#allocation9 + $0x78] ss:$12 sps:$4 sm:$0xff]   ;;  %v7040_v32 = vld [vmem:[#allocation9 + $0x60] ss:$12 sps:$4 sm:$0xff]  }
  0x86   :  { %5748 = vmatpush3.bf16.msra.mxu1 %v6192_v6  ;;  %332 = vmatprep.mubr.bf16.mxu0 %v8305_v0  ;;  %v6215_v30 = vld [vmem:[#allocation9 + $0x64] ss:$12 sps:$4 sm:$0xff]   ;;  %v7043_v33 = vld [vmem:[#allocation9 + $0x4c] ss:$12 sps:$4 sm:$0xff]   ;;  %v6235_v34 = vld [vmem:[#allocation9 + $0x8] ss:$12 sps:$4 sm:$0xff]  }
  0x87   :  { %352 = vmatprep.mubr.bf16.mxu1 %v8305_v0  ;;  %5749 = vmatprep.subr.bf16.mxu1 %v6195_v8  ;;  %v7047_v35 = vld [vmem:[#allocation9 + $0x48] ss:$12 sps:$4 sm:$0xff]   ;;  %v7054_v37 = vld [vmem:[#allocation9 + $0x30] ss:$12 sps:$4 sm:$0xff]   ;;  %v7065_v39 = vld [vmem:[#allocation9 + $0x18] ss:$12 sps:$4 sm:$0xff]  }
  0x88   :  { %5760 = vmatpush3.bf16.msra.mxu0 %v6196_v9  ;;  %v7049_v36 = vld [vmem:[#allocation9 + $0x34] ss:$12 sps:$4 sm:$0xff]   ;;  %v7058_v38 = vld [vmem:[#allocation9 + $0x1c] ss:$12 sps:$4 sm:$0xff]   ;;  %v7069_v40 = vld [vmem:[#allocation9 + $0x4] ss:$12 sps:$4 sm:$0xff]  }
  0x89   :  { %5761 = vmatprep.subr.bf16.mxu0 %v6197_v10  ;;  %v7073_v41 = vld [vmem:[#allocation9] ss:$12 sps:$4 sm:$0xff]   ;;  %v6236_v42 = vld [vmem:[#allocation9 + $0xb0] ss:$12 sps:$4 sm:$0xff]   ;;  %v6237_v43 = vld [vmem:[#allocation9 + $0x98] ss:$12 sps:$4 sm:$0xff]  }
  0x8a   :  { %5750 = vmatpush3.bf16.msra.mxu1 %v6195_v8  ;;  %v6238_v44 = vld [vmem:[#allocation9 + $0x80] ss:$12 sps:$4 sm:$0xff]   ;;  %v6239_v45 = vld [vmem:[#allocation9 + $0x68] ss:$12 sps:$4 sm:$0xff]   ;;  %v6240_v46 = vld [vmem:[#allocation9 + $0x50] ss:$12 sps:$4 sm:$0xff]  }
  0x8b   :  { %593 = vmatprep.subr.bf16.mxu1 %v6200_v11  ;;  %v6241_v48 = vld [vmem:[#allocation9 + $0x38] ss:$12 sps:$4 sm:$0xff]   ;;  %v6242_v50 = vld [vmem:[#allocation9 + $0x20] ss:$12 sps:$4 sm:$0xff]   ;;  %v7100_v51 = vsub.s32 0, %v211_v49  ;;  %v7102_v52 = vsub.s32 1, %v211_v49 }
  0x8c   :  { %5762 = vmatpush3.bf16.msra.mxu0 %v6197_v10  ;;  %v6243_v53 = vld [vmem:[#allocation9 + $0x8] ss:$12 sps:$4 sm:$0xff]   ;;  %v208_v54 = vld [vmem:[%s8290_s3] sm:$0x7]  ;;  %vm3288_vm4 = vcmask 523264  }
  0x8d   :  { %5098 = vmatmul.mubr.msk.bf16.gmra.mxu0 %vm277_vm0, %v6193_v12  ;;  %5100 = vmatmul.mubr.msk.bf16.gmra.mxu1 %vm277_vm0, %v7006_v13  ;;  %v7109_v55 = vrot.slane %v208_v54, %v7100_v51  ;;  %v7112_v56 = vrot.slane %v208_v54, %v7102_v52 }
  0x8e   :  { %5751 = vmatprep.mubr.msk.bf16.mxu1 %vm277_vm0, %v6987_v5  ;;  %5763 = vmatprep.mubr.msk.bf16.mxu0 %vm277_vm0, %v6987_v5 }
  0x8f   :  { %5771 = vmatprep.subr.bf16.mxu0 %v8307_v14 }
  0x95   :  { %5752 = vmatmul.mubr.msk.bf16.vlgmr.msra.gmra.mxu1 %vm277_vm0, %v6193_v12  ;;  %5764 = vmatmul.mubr.msk.bf16.vlgmr.msra.gmra.mxu0 %vm277_vm0, %v6193_v12 }
  0x96   :  { %594 = vmatpush1.bf16.msra.mxu1 %v6198_v15  ;;  %5755 = vmatprep.mubr.msk.bf16.mxu1 %vm277_vm0, %v6992_v7  ;;  %v7128_v15 = vsub.s32 2, %v211_v49 }
  0x97   :  { %5767 = vmatprep.mubr.msk.bf16.mxu0 %vm277_vm0, %v6992_v7  ;;  %595 = vmatprep.subr.bf16.mxu1 %v6203_v16 }
  0x98   :  { %5772 = vmatpush3.bf16.msra.mxu0 %v6228_v17 }
  0x99   :  { %5773 = vmatprep.subr.bf16.mxu0 %v8307_v14 }
  0x9a   :  { %596 = vmatpush1.bf16.msra.mxu1 %v6201_v18 }
  0x9b   :  { %976 = vmatprep.subr.bf16.mxu1 %v7022_v19 }
  0x9c   :  { %5774 = vmatpush3.bf16.msra.mxu0 %v6229_v20 }
  0x9d   :  { %5756 = vmatmul.mubr.msk.bf16.gmra.mxu1 %vm277_vm0, %v7006_v13  ;;  %5768 = vmatmul.mubr.msk.bf16.gmra.mxu0 %vm277_vm0, %v7006_v13 }
  0x9e   :  { %613 = vmatprep.mubr.bf16.mxu1 %v8305_v0  ;;  %5775 = vmatprep.subr.bf16.mxu0 %v8307_v14 }
  0x9f   :  { %5787 = vmatprep.mubr.msk.bf16.mxu0 %vm6845_vm1, %v8307_v14 }
  0xa0   :  { %5776 = vmatpush3.bf16.msra.mxu0 %v6230_v21 }
  0xa1   :  { %5777 = vmatprep.subr.bf16.mxu0 %v8307_v14 }
  0xa4   :  { %5778 = vmatpush3.bf16.msra.mxu0 %v6231_v22 }
  0xa5   :  { %5127 = vmatmul.mubr.msk.bf16.vlgmr.msra.gmra.mxu1 %vm277_vm0, %v6987_v5  ;;  %5779 = vmatprep.subr.bf16.mxu0 %v8307_v14 }
  0xa6   :  { %623 = vmatprep.mubr.bf16.mxu1 %v8305_v0  ;;  %977 = vmatpush1.bf16.msra.mxu1 %v6204_v23 }
  0xa7   :  { %978 = vmatprep.subr.bf16.mxu1 %v6209_v24 }
  0xa8   :  { %5780 = vmatpush3.bf16.msra.mxu0 %v6232_v25 }
  0xa9   :  { %5781 = vmatprep.subr.bf16.mxu0 %v8307_v14 }
  0xaa   :  { %979 = vmatpush1.bf16.msra.mxu1 %v6207_v26 }
  0xab   :  { %980 = vmatprep.subr.bf16.mxu1 %v6212_v27 }
  0xac   :  { %5782 = vmatpush3.bf16.msra.mxu0 %v6233_v28 }
  0xad   :  { %5128 = vmatmul.mubr.msk.bf16.gmra.mxu1 %vm277_vm0, %v6193_v12  ;;  %5783 = vmatprep.subr.bf16.mxu0 %v8307_v14 }
  0xae   :  { %633 = vmatprep.mubr.bf16.mxu1 %v8305_v0  ;;  %981 = vmatpush1.bf16.msra.mxu1 %v6210_v29 }
  0xaf   :  { %982 = vmatprep.subr.bf16.mxu1 %v6215_v30 }
  0xb0   :  { %5784 = vmatpush3.bf16.msra.mxu0 %v6234_v31 }
  0xb1   :  { %5785 = vmatprep.subr.bf16.mxu0 %v8307_v14 }
  0xb2   :  { %983 = vmatpush1.bf16.msra.mxu1 %v7040_v32 }
  0xb3   :  { %984 = vmatprep.subr.bf16.mxu1 %v7043_v33 }
  0xb4   :  { %5786 = vmatpush3.bf16.msra.mxu0 %v6235_v34 }
  0xb5   :  { %5129 = vmatmul.mubr.msk.bf16.gmra.mxu1 %vm277_vm0, %v6992_v7  ;;  %5791 = vmatprep.subr.bf16.mxu0 %v8307_v14 }
  0xb6   :  { %643 = vmatprep.mubr.bf16.mxu1 %v8305_v0  ;;  %985 = vmatpush1.bf16.msra.mxu1 %v7047_v35 }
  0xb7   :  { %986 = vmatprep.subr.bf16.mxu1 %v7049_v36  ;;  %5788 = vmatmul.mubr.bf16.vlgmr.msra.gmra.mxu0 %v8305_v0 }
  0xb8   :  { %5807 = vmatprep.mubr.msk.bf16.mxu0 %vm6845_vm1, %v8307_v14  ;;  %5792 = vmatpush3.bf16.msra.mxu0 %v6236_v42 }
  0xb9   :  { %5793 = vmatprep.subr.bf16.mxu0 %v8307_v14 }
  0xba   :  { %987 = vmatpush1.bf16.msra.mxu1 %v7054_v37 }
  0xbb   :  { %988 = vmatprep.subr.bf16.mxu1 %v7058_v38 }
  0xbc   :  { %5794 = vmatpush3.bf16.msra.mxu0 %v6237_v43 }
  0xbd   :  { %5130 = vmatmul.mubr.msk.bf16.gmra.mxu1 %vm277_vm0, %v7006_v13  ;;  %5795 = vmatprep.subr.bf16.mxu0 %v8307_v14 }
  0xbe   :  { %989 = vmatpush1.bf16.msra.mxu1 %v7065_v39  ;;  %1008 = vmatprep.mubr.bf16.mxu1 %v8305_v0 }
  0xbf   :  { %990 = vmatprep.subr.bf16.mxu1 %v7069_v40 }
  0xc0   :  { %5796 = vmatpush3.bf16.msra.mxu0 %v6238_v44 }
  0xc1   :  { %5797 = vmatprep.subr.bf16.mxu0 %v8307_v14 }
  0xc2   :  { %991 = vmatpush1.bf16.msra.mxu1 %v7073_v41 }
  0xc3   :  { %1263 = vmatprep.subr.bf16.mxu1 %v7022_v19 }
  0xc4   :  { %5798 = vmatpush3.bf16.msra.mxu0 %v6239_v45 }
  0xc5   :  { %1009 = vmatmul.mubr.bf16.vlgmr.msra.gmra.mxu1 %v8305_v0  ;;  %5799 = vmatprep.subr.bf16.mxu0 %v8307_v14 }
  0xc6   :  { %1264 = vmatpush1.bf16.msra.mxu1 %v6204_v23  ;;  %1295 = vmatprep.mubr.bf16.mxu1 %v8305_v0  ;;  %v7136_v23 = vld [vmem:[%s8291_s4] sm:$0x7] }
  0xc7   :  { %1265 = vmatprep.subr.bf16.mxu1 %v6209_v24  ;;  %v7149_v42 = vrot.slane %v7136_v23, %v7128_v15 }
  0xc8   :  { %5800 = vmatpush3.bf16.msra.mxu0 %v6240_v46 }
  0xc9   :  { %5801 = vmatprep.subr.bf16.mxu0 %v8307_v14 }
  0xca   :  { %1266 = vmatpush1.bf16.msra.mxu1 %v6207_v26 }
  0xcb   :  { %1267 = vmatprep.subr.bf16.mxu1 %v6212_v27  ;;  %v7142_v27 = vrot.slane %v208_v54, %v7128_v15 }
  0xcc   :  { %5802 = vmatpush3.bf16.msra.mxu0 %v6241_v48 }
  0xcd   :  { %5803 = vmatprep.subr.bf16.mxu0 %v8307_v14 }
  0xce   :  { %1268 = vmatpush1.bf16.msra.mxu1 %v6210_v29 }
  0xcf   :  { %1269 = vmatprep.subr.bf16.mxu1 %v6215_v30 }
  0xd0   :  { %5804 = vmatpush3.bf16.msra.mxu0 %v6242_v50 }
  0xd1   :  { %5805 = vmatprep.subr.bf16.mxu0 %v8307_v14 }
  0xd2   :  { %1270 = vmatpush1.bf16.msra.mxu1 %v7040_v32 }
  0xd3   :  { %1271 = vmatprep.subr.bf16.mxu1 %v7043_v33 }
  0xd4   :  { %5806 = vmatpush3.bf16.msra.mxu0 %v6243_v53 }
  0xd5   :  { %5811 = vmatprep.subr.bf16.mxu0 %v8307_v14 }
  0xd6   :  { %1272 = vmatpush1.bf16.msra.mxu1 %v7047_v35 }
  0xd7   :  { %1273 = vmatprep.subr.bf16.mxu1 %v7049_v36 }
  0xda   :  { %1274 = vmatpush1.bf16.msra.mxu1 %v7054_v37 }
  0xdb   :  { %1275 = vmatprep.subr.bf16.mxu1 %v7058_v38 }
  0xde   :  { %1276 = vmatpush1.bf16.msra.mxu1 %v7065_v39 }
  0xdf   :  { %1277 = vmatprep.subr.bf16.mxu1 %v7069_v40 }
  0xe2   :  { %1278 = vmatpush1.bf16.msra.mxu1 %v7073_v41 }
  0xe3   :  { %1542 = vmatprep.subr.bf16.mxu1 %v7022_v19 }
 0x145   :  { %v7114_v57 = vpop.f32.mrf.mxu0  ;;  %v344_v58 = vpop.f32.mrf.mxu1 }
 0x146   :  { %v345_v61 = vadd.f32 %v344_v58, %v7109_v55 }
 0x147   :  { %v7117_v59 = vpop.f32.mrf.mxu0  ;;  %v346_v60 = vpop.f32.mrf.mxu1 }
 0x148   :  { %v347_v62 = vadd.f32 %v346_v60, %v7112_v56 }
 0x149   :  { %v328_v63 = vpop.f32.mrf.mxu0  ;;  %v348_v1 = vpop.f32.mrf.mxu1 }
 0x14a   :  { %v5501_v2 = vpack.c.bf16 %v347_v62, %v345_v61  ;;  %v329_v3 = vadd.f32 %v328_v63, %v7109_v55  ;;  %v349_v6 = vadd.f32 %v348_v1, %v7109_v55 }
 0x14b   :  { %v330_v4 = vpop.f32.mrf.mxu0  ;;  %v350_v5 = vpop.f32.mrf.mxu1 }
 0x14c   :  { %516 = vst [vmem:[#allocation2 + $0x30] sm:$0xff] %v5501_v2  ;;  %v331_v7 = vadd.f32 %v330_v4, %v7112_v56  ;;  %v351_v8 = vadd.f32 %v350_v5, %v7112_v56 }
 0x14d   :  { %v334_v9 = vpop.f32.mrf.mxu0  ;;  %v354_v10 = vpop.f32.mrf.mxu1 }
 0x14e   :  { %v7125_v11 = vpack.c.bf16 %v331_v7, %v329_v3  ;;  %v5503_v12 = vpack.c.bf16 %v351_v8, %v349_v6  ;;  %v335_v13 = vadd.f32 %v334_v9, %v7109_v55  ;;  %v355_v18 = vadd.f32 %v354_v10, %v7109_v55 }
 0x14f   :  { %v336_v16 = vpop.f32.mrf.mxu0  ;;  %v356_v17 = vpop.f32.mrf.mxu1 }
 0x150   :  { %518 = vst [vmem:[#allocation2 + $0x3c] sm:$0xff] %v5503_v12  ;;  %v337_v19 = vadd.f32 %v336_v16, %v7112_v56  ;;  %v357_v20 = vadd.f32 %v356_v17, %v7112_v56 }
 0x151   :  { %v338_v21 = vpop.f32.mrf.mxu0  ;;  %v358_v22 = vpop.f32.mrf.mxu1 }
 0x152   :  { %v7138_v24 = vpack.c.bf16 %v337_v19, %v335_v13  ;;  %v5505_v25 = vpack.c.bf16 %v357_v20, %v355_v18  ;;  %v339_v26 = vadd.f32 %v338_v21, %v7109_v55  ;;  %v359_v30 = vadd.f32 %v358_v22, %v7109_v55 }
 0x153   :  { %v340_v28 = vpop.f32.mrf.mxu0  ;;  %v360_v29 = vpop.f32.mrf.mxu1 }
 0x154   :  { %520 = vst [vmem:[#allocation2 + $0x48] sm:$0xff] %v5505_v25  ;;  %v341_v31 = vadd.f32 %v340_v28, %v7112_v56  ;;  %v361_v34 = vadd.f32 %v360_v29, %v7112_v56 }
 0x155   :  { %v5753_v43 = vpop.f32.mrf.mxu1  ;;  %v5765_v44 = vpop.f32.mrf.mxu0 }
 0x156   :  { %v5499_v45 = vpack.c.bf16 %v341_v31, %v339_v26  ;;  %v5507_v46 = vpack.c.bf16 %v361_v34, %v359_v30  ;;  %v406_v47 = vadd.f32 %v5753_v43, %v7142_v27  ;;  %v697_v48 = vadd.f32 %v5765_v44, %v7149_v42 }
 0x157   :  { %v397_v49 = vpop.f32.mrf.mxu1  ;;  %v688_v50 = vpop.f32.mrf.mxu0 }
 0x158   :  { %514 = vst [vmem:[#allocation2 + $0x24] sm:$0xff] %v5499_v45  ;;  %522 = vst [vmem:[#allocation2 + $0x54] sm:$0xff] %v5507_v46  ;;  %v5498_v53 = vpack.c.bf16 %v406_v47, %v406_v47  ;;  %v5514_v54 = vpack.c.bf16 %v697_v48, %v697_v48  ;;  %v398_v58 = vadd.f32 %v397_v49, %v7142_v27 }
 0x159   :  { %v689_v60 = vadd.f32 %v688_v50, %v7149_v42  ;;  %v5754_v61 = vpop.f32.mrf.mxu1  ;;  %v5766_v62 = vpop.f32.mrf.mxu0  ;;  %v7167_v46 = vrot.slane %v7136_v23, %v7100_v51  ;;  %v7171_v47 = vrot.slane %v7136_v23, %v7102_v52 }
 0x15a   :  { %513 = vst [vmem:[#allocation2 + $0x20] sm:$0xf] %v5498_v53  ;;  %804 = vst [vmem:[#allocation3 + $0x20] sm:$0xf] %v5514_v54  ;;  %v5494_v63 = vpack.c.bf16 %v398_v58, %v398_v58  ;;  %v409_v2 = vadd.f32 %v5754_v61, %v7142_v27  ;;  %v700_v3 = vadd.f32 %v5766_v62, %v7149_v42 }
 0x15b   :  { %v5510_v1 = vpack.c.bf16 %v689_v60, %v689_v60  ;;  %v400_v4 = vpop.f32.mrf.mxu1  ;;  %v691_v5 = vpop.f32.mrf.mxu0 }
 0x15c   :  { %509 = vst [vmem:[#allocation2 + $0x8] sm:$0xf] %v5494_v63  ;;  %v5500_v6 = vpack.c.bf16 %v409_v2, %v409_v2  ;;  %v5516_v7 = vpack.c.bf16 %v700_v3, %v700_v3  ;;  %v401_v8 = vadd.f32 %v400_v4, %v7142_v27  ;;  %v692_v9 = vadd.f32 %v691_v5, %v7149_v42 }
 0x15d   :  { %800 = vst [vmem:[#allocation3 + $0x8] sm:$0xf] %v5510_v1  ;;  %v5757_v10 = vpop.f32.mrf.mxu1  ;;  %v5769_v12 = vpop.f32.mrf.mxu0 }
 0x15e   :  { %515 = vst [vmem:[#allocation2 + $0x2c] sm:$0xf] %v5500_v6  ;;  %806 = vst [vmem:[#allocation3 + $0x2c] sm:$0xf] %v5516_v7  ;;  %v5496_v13 = vpack.c.bf16 %v401_v8, %v401_v8  ;;  %v5512_v16 = vpack.c.bf16 %v692_v9, %v692_v9  ;;  %v422_v17 = vadd.f32 %v5757_v10, %v7142_v27 }
 0x15f   :  { %v713_v18 = vadd.f32 %v5769_v12, %v7149_v42  ;;  %v413_v19 = vpop.f32.mrf.mxu1  ;;  %v704_v20 = vpop.f32.mrf.mxu0 }
 0x160   :  { %511 = vst [vmem:[#allocation2 + $0x14] sm:$0xf] %v5496_v13  ;;  %802 = vst [vmem:[#allocation3 + $0x14] sm:$0xf] %v5512_v16  ;;  %v5506_v21 = vpack.c.bf16 %v422_v17, %v422_v17  ;;  %v414_v25 = vadd.f32 %v413_v19, %v7142_v27  ;;  %v705_v26 = vadd.f32 %v704_v20, %v7149_v42 }
 0x161   :  { %v5522_v22 = vpack.c.bf16 %v713_v18, %v713_v18  ;;  %v5758_v28 = vpop.f32.mrf.mxu1  ;;  %v5770_v29 = vpop.f32.mrf.mxu0 }
 0x162   :  { %521 = vst [vmem:[#allocation2 + $0x50] sm:$0xf] %v5506_v21  ;;  %v5502_v30 = vpack.c.bf16 %v414_v25, %v414_v25  ;;  %v5518_v31 = vpack.c.bf16 %v705_v26, %v705_v26  ;;  %v425_v34 = vadd.f32 %v5758_v28, %v7142_v27  ;;  %v716_v43 = vadd.f32 %v5770_v29, %v7149_v42 }
 0x163   :  { %812 = vst [vmem:[#allocation3 + $0x50] sm:$0xf] %v5522_v22  ;;  %v416_v44 = vpop.f32.mrf.mxu1  ;;  %v707_v45 = vpop.f32.mrf.mxu0 }
 0x164   :  { %517 = vst [vmem:[#allocation2 + $0x38] sm:$0xf] %v5502_v30  ;;  %808 = vst [vmem:[#allocation3 + $0x38] sm:$0xf] %v5518_v31  ;;  %v5508_v48 = vpack.c.bf16 %v425_v34, %v425_v34  ;;  %v5524_v49 = vpack.c.bf16 %v716_v43, %v716_v43  ;;  %v417_v50 = vadd.f32 %v416_v44, %v7142_v27 }
 0x165   :  { %v708_v53 = vadd.f32 %v707_v45, %v7149_v42  ;;  %v615_v54 = vpop.f32.mrf.mxu1 }
 0x166   :  { %523 = vst [vmem:[#allocation2 + $0x5c] sm:$0xf] %v5508_v48  ;;  %814 = vst [vmem:[#allocation3 + $0x5c] sm:$0xf] %v5524_v49  ;;  %v5504_v58 = vpack.c.bf16 %v417_v50, %v417_v50  ;;  %v616_v62 = vadd.f32 %v615_v54, %v7167_v46  ;;  %v1625_v48 = vunpack.c.l.bf16 %v7138_v24  ;;  %v1626_v49 = vunpack.c.h.bf16 %v7138_v24 }
 0x167   :  { %v5520_v60 = vpack.c.bf16 %v708_v53, %v708_v53  ;;  %v617_v61 = vpop.f32.mrf.mxu1  ;;  %v325_v50 = vadd.f32 %v7114_v57, %v7109_v55  ;;  %v327_v53 = vadd.f32 %v7117_v59, %v7112_v56  ;;  %v1346_v24 = vunpack.c.l.bf16 %v7125_v11 }
 0x168   :  { %519 = vst [vmem:[#allocation2 + $0x44] sm:$0xf] %v5504_v58  ;;  %v618_v23 = vadd.f32 %v617_v61, %v7171_v47  ;;  %v1347_v55 = vunpack.c.h.bf16 %v7125_v11 }
 0x169   :  { %810 = vst [vmem:[#allocation3 + $0x44] sm:$0xf] %v5520_v60  ;;  %v619_v63 = vpop.f32.mrf.mxu1 }
 0x16a   :  { %v5509_v1 = vpack.c.bf16 %v618_v23, %v616_v62  ;;  %v620_v27 = vadd.f32 %v619_v63, %v7167_v46 }
 0x16b   :  { %v621_v2 = vpop.f32.mrf.mxu1 }
 0x16c   :  { %799 = vst [vmem:[#allocation3] sm:$0xff] %v5509_v1  ;;  %v622_v42 = vadd.f32 %v621_v2, %v7171_v47  ;;  %v5493_v2 = vpack.c.bf16 %v327_v53, %v325_v50 }
 0x16d   :  { %v625_v3 = vpop.f32.mrf.mxu1 }
 0x16e   :  { %v5511_v4 = vpack.c.bf16 %v622_v42, %v620_v27  ;;  %v626_v6 = vadd.f32 %v625_v3, %v7167_v46 }
 0x16f   :  { %v627_v5 = vpop.f32.mrf.mxu1 }
 0x170   :  { %801 = vst [vmem:[#allocation3 + $0xc] sm:$0xff] %v5511_v4  ;;  %v628_v7 = vadd.f32 %v627_v5, %v7171_v47 }
 0x171   :  { %v629_v8 = vpop.f32.mrf.mxu1 }
 0x172   :  { %v5513_v9 = vpack.c.bf16 %v628_v7, %v626_v6  ;;  %v630_v12 = vadd.f32 %v629_v8, %v7167_v46  ;;  %v1059_v8 = vunpack.c.l.bf16 %v5493_v2 }
 0x173   :  { %v631_v10 = vpop.f32.mrf.mxu1 }
 0x174   :  { %803 = vst [vmem:[#allocation3 + $0x18] sm:$0xff] %v5513_v9  ;;  %v632_v13 = vadd.f32 %v631_v10, %v7171_v47 }
 0x175   :  { %v635_v16 = vpop.f32.mrf.mxu1 }
 0x176   :  { %v5515_v17 = vpack.c.bf16 %v632_v13, %v630_v12  ;;  %v636_v18 = vadd.f32 %v635_v16, %v7167_v46 }
 0x177   :  { %v637_v19 = vpop.f32.mrf.mxu1  ;;  %v1051_v20 = vpop.f32.mrf.mxu0 }
 0x178   :  { %805 = vst [vmem:[#allocation3 + $0x24] sm:$0xff] %v5515_v17  ;;  %v638_v21 = vadd.f32 %v637_v19, %v7171_v47  ;;  %v1060_v17 = vunpack.c.h.bf16 %v5493_v2  ;;  %v6585_v2 = vld [vmem:[#allocation9 + $0x94] ss:$12 sps:$4 sm:$0xff]  }
 0x179   :  { %v639_v22 = vpop.f32.mrf.mxu1  ;;  %v5789_v25 = vpop.f32.mrf.mxu0 }
 0x17a   :  { %v7185_v26 = vpack.c.bf16 %v638_v21, %v636_v18  ;;  %v640_v28 = vadd.f32 %v639_v22, %v7167_v46 }
 0x17b   :  { %v641_v29 = vpop.f32.mrf.mxu1  ;;  %v1054_v30 = vpop.f32.mrf.mxu0 }
 0x17c   :  { %v642_v31 = vadd.f32 %v641_v29, %v7171_v47  ;;  %v7214_v29 = vld [vmem:[#allocation3 + $0x50] ss:$12 sps:$4 sm:$0xff]   ;;  %v7216_v30 = vld [vmem:[#allocation2 + $0x8] ss:$12 sps:$4 sm:$0xff]  }
 0x17d   :  { %v645_v34 = vpop.f32.mrf.mxu1  ;;  %v5790_v43 = vpop.f32.mrf.mxu0 }
 0x17e   :  { %v5519_v44 = vpack.c.bf16 %v642_v31, %v640_v28  ;;  %v646_v45 = vadd.f32 %v645_v34, %v7167_v46  ;;  %v7212_v28 = vld [vmem:[%s8293_s6] ss:$0 sm:$0xff]  ;;  %v1066_v34 = vunpack.c.h.bf16 %v7214_v29 }
 0x17f   :  { %v647_v54 = vpop.f32.mrf.mxu1  ;;  %v1090_v43 = vadd.f32 %v7212_v28, %v1051_v20 }
 0x180   :  { %v648_v58 = vadd.f32 %v647_v54, %v7171_v47  ;;  %v1630_v60 = vunpack.c.l.bf16 %v5519_v44  ;;  %v1631_v61 = vunpack.c.h.bf16 %v5519_v44  ;;  %v1061_v44 = vunpack.c.l.bf16 %v7216_v30 }
 0x181   :  { %v649_v62 = vpop.f32.mrf.mxu1 }
 0x182   :  { %v5521_v23 = vpack.c.bf16 %v648_v58, %v646_v45  ;;  %v7197_v63 = vadd.f32 %v1630_v60, %v1625_v48  ;;  %v7199_v1 = vadd.f32 %v1631_v61, %v1626_v49  ;;  %v650_v57 = vadd.f32 %v649_v62, %v7167_v46 }
 0x183   :  { %v651_v27 = vpop.f32.mrf.mxu1  ;;  %v1069_v48 = vadd.f32 %v1066_v34, %v1061_v44 }
 0x184   :  { %v652_v56 = vadd.f32 %v651_v27, %v7171_v47  ;;  %v1351_v59 = vunpack.c.l.bf16 %v5521_v23  ;;  %v1352_v42 = vunpack.c.h.bf16 %v5521_v23  ;;  %v6584_v23 = vld [vmem:[#allocation9 + $0xa8] ss:$12 sps:$4 sm:$0xff]   ;;  %v6586_v27 = vld [vmem:[#allocation9 + $0x90] ss:$12 sps:$4 sm:$0xff]  }
 0x185   :  { %v1010_v3 = vpop.f32.mrf.mxu1 }
 0x186   :  { %v5523_v4 = vpack.c.bf16 %v652_v56, %v650_v57  ;;  %v7205_v5 = vadd.f32 %v1351_v59, %v1346_v24  ;;  %v7207_v6 = vadd.f32 %v1352_v42, %v1347_v55  ;;  %v6587_v24 = vld [vmem:[#allocation9 + $0x7c] ss:$12 sps:$4 sm:$0xff]   ;;  %v6588_v55 = vld [vmem:[#allocation9 + $0x78] ss:$12 sps:$4 sm:$0xff]  }
 0x187   :  { %v1012_v7 = vpop.f32.mrf.mxu1  ;;  %v6589_v57 = vld [vmem:[#allocation9 + $0x64] ss:$12 sps:$4 sm:$0xff]  }
 0x188   :  { %v1064_v9 = vunpack.c.l.bf16 %v5523_v4  ;;  %v1065_v13 = vunpack.c.h.bf16 %v5523_v4  ;;  %v6244_v56 = vld [vmem:[#allocation9 + $0xb0] ss:$12 sps:$4 sm:$0xff]  }
 0x189   :  { %v1014_v10 = vpop.f32.mrf.mxu1 }
 0x18a   :  { %v1067_v12 = vadd.f32 %v1064_v9, %v1059_v8  ;;  %v1068_v18 = vadd.f32 %v1065_v13, %v1060_v17 }
 0x18b   :  { %v1015_v16 = vpop.f32.mrf.mxu1 }
 0x18c   :  { %v1070_v11 = vadd.f32 %v1067_v12, %v1010_v3  ;;  %v1077_v47 = vadd.f32 %v1068_v18, %v1012_v7 }
 0x18e   :  { %v5175_v46 = vmul.f32 -1.442695, %v1070_v11  ;;  %v5176_v19 = vmul.f32 -1.442695, %v1077_v47 }
 0x190   :  { %6424 = vpow2.f32 %v5175_v46  ;;  %v1353_v46 = vunpack.c.l.bf16 %v7214_v29 }
 0x191   :  { %6426 = vpow2.f32 %v5176_v19 }
 0x19d   :  { %v6425_v21 = vpop.eup %6424 }
 0x19e   :  { %v1074_v22 = vadd.f32 1.0, %v6425_v21  ;;  %v6427_v25 = vpop.eup %6426 }
 0x19f   :  { %v1081_v31 = vadd.f32 1.0, %v6427_v25 }
 0x1a0   :  { %6428 = vrcp.f32 %v1074_v22 }
 0x1a1   :  { %6430 = vrcp.f32 %v1081_v31 }
 0x1ad   :  { %v6429_v45 = vpop.eup %6428 }
 0x1ae   :  { %v1091_v49 = vmul.f32 %v6429_v45, %v1090_v43  ;;  %v6431_v53 = vpop.eup %6430 }
 0x1af   :  { %v1094_v54 = vsub.f32 1.0, %v6431_v53  ;;  %v1096_v61 = vmul.f32 0.0, %v6431_v53  ;;  %v7271_v53 = vld [vmem:[#allocation9 + $0x90] ss:$12 sps:$4 sm:$0xff]  }
 0x1b0   :  { %v1092_v50 = vadd.f32 %v1091_v49, %v1069_v48  ;;  %v7264_v48 = vld [vmem:[#allocation9 + $0xa8] ss:$12 sps:$4 sm:$0xff]   ;;  %v6255_v49 = vld [vmem:[#allocation9 + $0xb0] ss:$12 sps:$4 sm:$0xff]  }
 0x1b2   :  { %6432 = vtanh.f32 %v1092_v50  ;;  %v7268_v50 = vld [vmem:[#allocation9 + $0x94] ss:$12 sps:$4 sm:$0xff]  }
 0x1bf   :  { %v6433_v58 = vpop.eup %6432 }
 0x1c0   :  { %v1095_v60 = vmul.f32 %v6433_v58, %v1094_v54  ;;  %v6259_v54 = vld [vmem:[#allocation9 + $0x98] ss:$12 sps:$4 sm:$0xff]   ;;  %v7275_v58 = vld [vmem:[#allocation9 + $0x7c] ss:$12 sps:$4 sm:$0xff]  }
 0x1c2   :  { %v7221_v62 = vadd.f32 %v1096_v61, %v1095_v60  ;;  %v7278_v60 = vld [vmem:[#allocation9 + $0x78] ss:$12 sps:$4 sm:$0xff]   ;;  %v6263_v61 = vld [vmem:[#allocation9 + $0x80] ss:$12 sps:$4 sm:$0xff]  }
 0x1c4   :  { %v1098_v20 = vpack.c.bf16 %v7221_v62, %v7221_v62 }
 0x1c6   :  { %1100 = vst.msk [vmem:[#allocation4] sm:$0xf] %vm1099_vm2, %v1098_v20  ;;  %1296 = vmatmul.mubr.bf16.vlgmr.msra.gmra.mxu1 %v1098_v20  ;;  %5808 = vmatmul.mubr.bf16.vlgmr.msra.gmra.mxu0 %v1098_v20 }
 0x1c7   :  { %1102 = vst.msk [vmem:[#allocation4 + $0x1c] sm:$0xf] %vm1101_vm3, %v1098_v20  ;;  %1543 = vmatpush1.bf16.msra.mxu1 %v6584_v23  ;;  %1574 = vmatprep.mubr.bf16.mxu1 %v8305_v0  ;;  %v7285_v20 = vld [vmem:[#allocation9 + $0x60] ss:$12 sps:$4 sm:$0xff]   ;;  %v6267_v23 = vld [vmem:[#allocation9 + $0x68] ss:$12 sps:$4 sm:$0xff]  }
 0x1c8   :  { %1544 = vmatprep.subr.bf16.mxu1 %v6585_v2  ;;  %5827 = vmatprep.mubr.msk.bf16.mxu0 %vm6845_vm1, %v8307_v14  ;;  %v7288_v2 = vld [vmem:[#allocation9 + $0x4c] ss:$12 sps:$4 sm:$0xff]  }
 0x1c9   :  { %5812 = vmatpush3.bf16.msra.mxu0 %v6244_v56  ;;  %v6275_v56 = vld [vmem:[#allocation9 + $0x38] ss:$12 sps:$4 sm:$0xff]  }
 0x1ca   :  { %5813 = vmatprep.subr.bf16.mxu0 %v8307_v14 }
 0x1cb   :  { %1545 = vmatpush1.bf16.msra.mxu1 %v6586_v27  ;;  %v7291_v27 = vld [vmem:[#allocation9 + $0x48] ss:$12 sps:$4 sm:$0xff]  }
 0x1cc   :  { %1546 = vmatprep.subr.bf16.mxu1 %v6587_v24  ;;  %v6271_v24 = vld [vmem:[#allocation9 + $0x50] ss:$12 sps:$4 sm:$0xff]  }
 0x1cf   :  { %1547 = vmatpush1.bf16.msra.mxu1 %v6588_v55  ;;  %v7295_v55 = vld [vmem:[#allocation9 + $0x34] ss:$12 sps:$4 sm:$0xff]  }
 0x1d0   :  { %1548 = vmatprep.subr.bf16.mxu1 %v6589_v57  ;;  %v7298_v57 = vld [vmem:[#allocation9 + $0x30] ss:$12 sps:$4 sm:$0xff]  }
 0x1d3   :  { %1549 = vmatpush1.bf16.msra.mxu1 %v7040_v32  ;;  %v6245_v32 = vld [vmem:[#allocation9 + $0x98] ss:$12 sps:$4 sm:$0xff]  }
 0x1d4   :  { %1550 = vmatprep.subr.bf16.mxu1 %v7043_v33  ;;  %5814 = vmatpush3.bf16.msra.mxu0 %v6245_v32  ;;  %v6246_v33 = vld [vmem:[#allocation9 + $0x80] ss:$12 sps:$4 sm:$0xff]   ;;  %v7302_v32 = vld [vmem:[#allocation9 + $0x1c] ss:$12 sps:$4 sm:$0xff]  }
 0x1d5   :  { %5815 = vmatprep.subr.bf16.mxu0 %v8307_v14 }
 0x1d7   :  { %1551 = vmatpush1.bf16.msra.mxu1 %v7047_v35  ;;  %v6247_v35 = vld [vmem:[#allocation9 + $0x68] ss:$12 sps:$4 sm:$0xff]  }
 0x1d8   :  { %1552 = vmatprep.subr.bf16.mxu1 %v7049_v36  ;;  %5816 = vmatpush3.bf16.msra.mxu0 %v6246_v33  ;;  %v6248_v36 = vld [vmem:[#allocation9 + $0x50] ss:$12 sps:$4 sm:$0xff]   ;;  %v7305_v33 = vld [vmem:[#allocation9 + $0x18] ss:$12 sps:$4 sm:$0xff]  }
 0x1d9   :  { %5817 = vmatprep.subr.bf16.mxu0 %v8307_v14 }
 0x1db   :  { %1553 = vmatpush1.bf16.msra.mxu1 %v7054_v37  ;;  %v6249_v37 = vld [vmem:[#allocation9 + $0x38] ss:$12 sps:$4 sm:$0xff]  }
 0x1dc   :  { %1554 = vmatprep.subr.bf16.mxu1 %v7058_v38  ;;  %5818 = vmatpush3.bf16.msra.mxu0 %v6247_v35  ;;  %v6250_v38 = vld [vmem:[#allocation9 + $0x20] ss:$12 sps:$4 sm:$0xff]  }
 0x1dd   :  { %5819 = vmatprep.subr.bf16.mxu0 %v8307_v14  ;;  %v6279_v35 = vld [vmem:[#allocation9 + $0x20] ss:$12 sps:$4 sm:$0xff]  }
 0x1df   :  { %1555 = vmatpush1.bf16.msra.mxu1 %v7065_v39  ;;  %v6251_v39 = vld [vmem:[#allocation9 + $0x8] ss:$12 sps:$4 sm:$0xff]  }
 0x1e0   :  { %1556 = vmatprep.subr.bf16.mxu1 %v7069_v40  ;;  %5820 = vmatpush3.bf16.msra.mxu0 %v6248_v36  ;;  %v7309_v36 = vld [vmem:[#allocation9 + $0x4] ss:$12 sps:$4 sm:$0xff]  }
 0x1e1   :  { %5821 = vmatprep.subr.bf16.mxu0 %v8307_v14 }
 0x1e3   :  { %1557 = vmatpush1.bf16.msra.mxu1 %v7073_v41 }
 0x1e4   :  { %5822 = vmatpush3.bf16.msra.mxu0 %v6249_v37  ;;  %v7312_v37 = vld [vmem:[#allocation9] ss:$12 sps:$4 sm:$0xff]  }
 0x1e5   :  { %5823 = vmatprep.subr.bf16.mxu0 %v8307_v14 }
 0x1e8   :  { %5824 = vmatpush3.bf16.msra.mxu0 %v6250_v38  ;;  %v6283_v38 = vld [vmem:[#allocation9 + $0x8] ss:$12 sps:$4 sm:$0xff]  }
 0x1e9   :  { %5825 = vmatprep.subr.bf16.mxu0 %v8307_v14 }
 0x1ec   :  { %5826 = vmatpush3.bf16.msra.mxu0 %v6251_v39 }
 0x1ed   :  { %5831 = vmatprep.subr.bf16.mxu0 %v8307_v14 }
 0x286   :  { %v1297_v40 = vpop.f32.mrf.mxu1  ;;  %v1338_v41 = vpop.f32.mrf.mxu0 }
 0x287   :  { %v1357_v59 = vadd.f32 %v7205_v5, %v1297_v40  ;;  %v1348_v5 = vunpack.c.h.bf16 %v7216_v30  ;;  %v1371_v47 = vadd.f32 %v7212_v28, %v1338_v41  ;;  %v7262_v30 = vld [vmem:[#allocation9 + $0xac] ss:$12 sps:$4 sm:$0xff]  }
 0x288   :  { %v1299_v42 = vpop.f32.mrf.mxu1  ;;  %v5809_v3 = vpop.f32.mrf.mxu0  ;;  %1821 = vmatprep.subr.bf16.mxu1 %v7262_v30 }
 0x289   :  { %v5202_v4 = vmul.f32 -1.442695, %v1357_v59  ;;  %v1364_v12 = vadd.f32 %v7207_v6, %v1299_v42  ;;  %v1356_v21 = vadd.f32 %v1353_v46, %v1348_v5  ;;  %v7323_v46 = vld [vmem:[#allocation2 + $0x20] ss:$12 sps:$4 sm:$0xff]  }
 0x28a   :  { %v1301_v7 = vpop.f32.mrf.mxu1  ;;  %v1341_v8 = vpop.f32.mrf.mxu0  ;;  %v1627_v5 = vunpack.c.l.bf16 %v7323_v46 }
 0x28b   :  { %6434 = vpow2.f32 %v5202_v4  ;;  %v5203_v13 = vmul.f32 -1.442695, %v1364_v12 }
 0x28c   :  { %v1302_v9 = vpop.f32.mrf.mxu1  ;;  %v5810_v10 = vpop.f32.mrf.mxu0 }
 0x28d   :  { %6436 = vpow2.f32 %v5203_v13 }
 0x298   :  { %v6435_v16 = vpop.eup %6434 }
 0x299   :  { %v1361_v11 = vadd.f32 1.0, %v6435_v16 }
 0x29a   :  { %v6437_v17 = vpop.eup %6436 }
 0x29b   :  { %6438 = vrcp.f32 %v1361_v11  ;;  %v1368_v18 = vadd.f32 1.0, %v6437_v17  ;;  %v7321_v17 = vld [vmem:[#allocation3 + $0x38] ss:$12 sps:$4 sm:$0xff]  }
 0x29d   :  { %6440 = vrcp.f32 %v1368_v18 }
 0x2a8   :  { %v6439_v19 = vpop.eup %6438 }
 0x2a9   :  { %v1372_v22 = vmul.f32 %v6439_v19, %v1371_v47 }
 0x2aa   :  { %v6441_v6 = vpop.eup %6440 }
 0x2ab   :  { %v1373_v25 = vadd.f32 %v1372_v22, %v1356_v21  ;;  %v1375_v31 = vsub.f32 1.0, %v6441_v6  ;;  %v1377_v44 = vmul.f32 %v6441_v6, %v7221_v62  ;;  %v7282_v62 = vld [vmem:[#allocation9 + $0x64] ss:$12 sps:$4 sm:$0xff]  }
 0x2ad   :  { %6442 = vtanh.f32 %v1373_v25 }
 0x2ba   :  { %v6443_v34 = vpop.eup %6442 }
 0x2bb   :  { %v1376_v43 = vmul.f32 %v6443_v34, %v1375_v31 }
 0x2bd   :  { %v7253_v45 = vadd.f32 %v1377_v44, %v1376_v43 }
 0x2bf   :  { %v1379_v29 = vpack.c.bf16 %v7253_v45, %v7253_v45 }
 0x2c1   :  { %1380 = vst.msk [vmem:[#allocation4 + $0x4] sm:$0xf] %vm1099_vm2, %v1379_v29  ;;  %1575 = vmatmul.mubr.bf16.vlgmr.msra.gmra.mxu1 %v1379_v29  ;;  %5828 = vmatmul.mubr.bf16.vlgmr.msra.gmra.mxu0 %v1379_v29 }
 0x2c2   :  { %1381 = vst.msk [vmem:[#allocation4 + $0x18] sm:$0xf] %vm1101_vm3, %v1379_v29  ;;  %1853 = vmatprep.mubr.bf16.mxu1 %v8305_v0  ;;  %5847 = vmatprep.mubr.msk.bf16.mxu0 %vm6845_vm1, %v8307_v14 }
 0x2c3   :  { %1822 = vmatpush1.bf16.msra.mxu1 %v7264_v48  ;;  %5832 = vmatpush3.bf16.msra.mxu0 %v6255_v49  ;;  %v6285_v49 = vld [vmem:[#allocation9 + $0x98] ss:$12 sps:$4 sm:$0xff]  }
 0x2c4   :  { %5833 = vmatprep.subr.bf16.mxu0 %v8307_v14  ;;  %1823 = vmatprep.subr.bf16.mxu1 %v7268_v50 }
 0x2c7   :  { %1824 = vmatpush1.bf16.msra.mxu1 %v7271_v53  ;;  %5834 = vmatpush3.bf16.msra.mxu0 %v6259_v54  ;;  %v6286_v54 = vld [vmem:[#allocation9 + $0x80] ss:$12 sps:$4 sm:$0xff]  }
 0x2c8   :  { %5835 = vmatprep.subr.bf16.mxu0 %v8307_v14  ;;  %1825 = vmatprep.subr.bf16.mxu1 %v7275_v58 }
 0x2cb   :  { %1826 = vmatpush1.bf16.msra.mxu1 %v7278_v60  ;;  %5836 = vmatpush3.bf16.msra.mxu0 %v6263_v61  ;;  %v6287_v61 = vld [vmem:[#allocation9 + $0x68] ss:$12 sps:$4 sm:$0xff]  }
 0x2cc   :  { %5837 = vmatprep.subr.bf16.mxu0 %v8307_v14  ;;  %1827 = vmatprep.subr.bf16.mxu1 %v7282_v62 }
 0x2cf   :  { %1828 = vmatpush1.bf16.msra.mxu1 %v7285_v20  ;;  %5838 = vmatpush3.bf16.msra.mxu0 %v6267_v23  ;;  %v6288_v23 = vld [vmem:[#allocation9 + $0x50] ss:$12 sps:$4 sm:$0xff]  }
 0x2d0   :  { %1829 = vmatprep.subr.bf16.mxu1 %v7288_v2  ;;  %5839 = vmatprep.subr.bf16.mxu0 %v8307_v14 }
 0x2d3   :  { %1830 = vmatpush1.bf16.msra.mxu1 %v7291_v27  ;;  %5840 = vmatpush3.bf16.msra.mxu0 %v6271_v24  ;;  %v6289_v24 = vld [vmem:[#allocation9 + $0x38] ss:$12 sps:$4 sm:$0xff]  }
 0x2d4   :  { %1831 = vmatprep.subr.bf16.mxu1 %v7295_v55  ;;  %5841 = vmatprep.subr.bf16.mxu0 %v8307_v14 }
 0x2d7   :  { %1832 = vmatpush1.bf16.msra.mxu1 %v7298_v57  ;;  %5842 = vmatpush3.bf16.msra.mxu0 %v6275_v56  ;;  %v6290_v56 = vld [vmem:[#allocation9 + $0x20] ss:$12 sps:$4 sm:$0xff]  }
 0x2d8   :  { %1833 = vmatprep.subr.bf16.mxu1 %v7302_v32  ;;  %5843 = vmatprep.subr.bf16.mxu0 %v8307_v14 }
 0x2db   :  { %1834 = vmatpush1.bf16.msra.mxu1 %v7305_v33  ;;  %5844 = vmatpush3.bf16.msra.mxu0 %v6279_v35  ;;  %v6291_v35 = vld [vmem:[#allocation9 + $0x8] ss:$12 sps:$4 sm:$0xff]  }
 0x2dc   :  { %1835 = vmatprep.subr.bf16.mxu1 %v7309_v36  ;;  %5845 = vmatprep.subr.bf16.mxu0 %v8307_v14 }
 0x2df   :  { %1836 = vmatpush1.bf16.msra.mxu1 %v7312_v37  ;;  %5846 = vmatpush3.bf16.msra.mxu0 %v6283_v38  ;;  %v1902_v38 = vld [vmem:[#allocation2 + $0x24] sm:$0xff] }
 0x2e0   :  { %2100 = vmatprep.subr.bf16.mxu1 %v7262_v30  ;;  %5851 = vmatprep.subr.bf16.mxu0 %v8307_v14 }
 0x381   :  { %v1576_v39 = vpop.f32.mrf.mxu1  ;;  %v1617_v40 = vpop.f32.mrf.mxu0 }
 0x382   :  { %v1636_v41 = vadd.f32 %v7197_v63, %v1576_v39  ;;  %v1632_v63 = vunpack.c.h.bf16 %v7321_v17  ;;  %v1650_v47 = vadd.f32 %v7212_v28, %v1617_v40  ;;  %v1904_v39 = vunpack.c.l.bf16 %v1902_v38 }
 0x383   :  { %v1578_v59 = vpop.f32.mrf.mxu1  ;;  %v5829_v42 = vpop.f32.mrf.mxu0  ;;  %v1909_v40 = vunpack.c.l.bf16 %v7185_v26 }
 0x384   :  { %v5228_v3 = vmul.f32 -1.442695, %v1636_v41  ;;  %v1643_v10 = vadd.f32 %v7199_v1, %v1578_v59  ;;  %v1635_v21 = vadd.f32 %v1632_v63, %v1627_v5 }
 0x385   :  { %v1580_v4 = vpop.f32.mrf.mxu1  ;;  %v1620_v7 = vpop.f32.mrf.mxu0  ;;  %v1912_v41 = vadd.f32 %v1909_v40, %v1904_v39  ;;  %v6299_v39 = vld [vmem:[#allocation9 + $0x8] ss:$12 sps:$4 sm:$0xff]  }
 0x386   :  { %6444 = vpow2.f32 %v5228_v3  ;;  %v5229_v12 = vmul.f32 -1.442695, %v1643_v10  ;;  %v1905_v4 = vunpack.c.h.bf16 %v1902_v38  ;;  %v1910_v7 = vunpack.c.h.bf16 %v7185_v26  ;;  %v6297_v38 = vld [vmem:[#allocation9 + $0x38] ss:$12 sps:$4 sm:$0xff]  }
 0x387   :  { %v1581_v8 = vpop.f32.mrf.mxu1  ;;  %v5830_v9 = vpop.f32.mrf.mxu0  ;;  %v1906_v26 = vunpack.c.h.bf16 %v7323_v46  ;;  %v6292_v46 = vld [vmem:[#allocation9 + $0xb0] ss:$12 sps:$4 sm:$0xff]   ;;  %v2186_v40 = vld [vmem:[#allocation3 + $0x24] sm:$0xff] }
 0x388   :  { %6446 = vpow2.f32 %v5229_v12 }
 0x393   :  { %v6445_v13 = vpop.eup %6444 }
 0x394   :  { %v1640_v16 = vadd.f32 1.0, %v6445_v13 }
 0x395   :  { %v6447_v11 = vpop.eup %6446 }
 0x396   :  { %6448 = vrcp.f32 %v1640_v16  ;;  %v1647_v18 = vadd.f32 1.0, %v6447_v11  ;;  %v1913_v16 = vadd.f32 %v1910_v7, %v1905_v4 }
 0x398   :  { %6450 = vrcp.f32 %v1647_v18 }
 0x3a3   :  { %v6449_v19 = vpop.eup %6448 }
 0x3a4   :  { %v1651_v1 = vmul.f32 %v6449_v19, %v1650_v47 }
 0x3a5   :  { %v6451_v25 = vpop.eup %6450 }
 0x3a6   :  { %v1652_v22 = vadd.f32 %v1651_v1, %v1635_v21  ;;  %v1654_v6 = vsub.f32 1.0, %v6451_v25  ;;  %v1656_v43 = vmul.f32 %v6451_v25, %v7253_v45  ;;  %v6284_v45 = vld [vmem:[#allocation9 + $0xb0] ss:$12 sps:$4 sm:$0xff]   ;;  %v1911_v1 = vunpack.c.l.bf16 %v7321_v17 }
 0x3a8   :  { %6452 = vtanh.f32 %v1652_v22 }
 0x3b5   :  { %v6453_v31 = vpop.eup %6452 }
 0x3b6   :  { %v1655_v34 = vmul.f32 %v6453_v31, %v1654_v6  ;;  %v1914_v31 = vadd.f32 %v1911_v1, %v1906_v26 }
 0x3b8   :  { %v7329_v44 = vadd.f32 %v1656_v43, %v1655_v34 }
 0x3ba   :  { %v1658_v29 = vpack.c.bf16 %v7329_v44, %v7329_v44 }
 0x3bc   :  { %1659 = vst.msk [vmem:[#allocation4 + $0x8] sm:$0xf] %vm1099_vm2, %v1658_v29  ;;  %1854 = vmatmul.mubr.bf16.vlgmr.msra.gmra.mxu1 %v1658_v29  ;;  %5848 = vmatmul.mubr.bf16.vlgmr.msra.gmra.mxu0 %v1658_v29 }
 0x3bd   :  { %1660 = vst.msk [vmem:[#allocation4 + $0x14] sm:$0xf] %vm1101_vm3, %v1658_v29  ;;  %2101 = vmatpush1.bf16.msra.mxu1 %v7264_v48  ;;  %2132 = vmatprep.mubr.bf16.mxu1 %v8305_v0 }
 0x3be   :  { %2102 = vmatprep.subr.bf16.mxu1 %v7268_v50  ;;  %5867 = vmatprep.mubr.msk.bf16.mxu0 %vm6845_vm1, %v8307_v14 }
 0x3bf   :  { %5852 = vmatpush3.bf16.msra.mxu0 %v6284_v45 }
 0x3c0   :  { %5853 = vmatprep.subr.bf16.mxu0 %v8307_v14 }
 0x3c1   :  { %2103 = vmatpush1.bf16.msra.mxu1 %v7271_v53 }
 0x3c2   :  { %2104 = vmatprep.subr.bf16.mxu1 %v7275_v58 }
 0x3c3   :  { %5854 = vmatpush3.bf16.msra.mxu0 %v6285_v49 }
 0x3c4   :  { %5855 = vmatprep.subr.bf16.mxu0 %v8307_v14 }
 0x3c5   :  { %2105 = vmatpush1.bf16.msra.mxu1 %v7278_v60 }
 0x3c6   :  { %2106 = vmatprep.subr.bf16.mxu1 %v7282_v62 }
 0x3c7   :  { %5856 = vmatpush3.bf16.msra.mxu0 %v6286_v54 }
 0x3c8   :  { %5857 = vmatprep.subr.bf16.mxu0 %v8307_v14 }
 0x3c9   :  { %2107 = vmatpush1.bf16.msra.mxu1 %v7285_v20 }
 0x3ca   :  { %2108 = vmatprep.subr.bf16.mxu1 %v7288_v2 }
 0x3cb   :  { %5858 = vmatpush3.bf16.msra.mxu0 %v6287_v61 }
 0x3cc   :  { %5859 = vmatprep.subr.bf16.mxu0 %v8307_v14 }
 0x3cd   :  { %2109 = vmatpush1.bf16.msra.mxu1 %v7291_v27 }
 0x3ce   :  { %2110 = vmatprep.subr.bf16.mxu1 %v7295_v55 }
 0x3cf   :  { %5860 = vmatpush3.bf16.msra.mxu0 %v6288_v23 }
 0x3d0   :  { %5861 = vmatprep.subr.bf16.mxu0 %v8307_v14 }
 0x3d1   :  { %2111 = vmatpush1.bf16.msra.mxu1 %v7298_v57 }
 0x3d2   :  { %2112 = vmatprep.subr.bf16.mxu1 %v7302_v32 }
 0x3d3   :  { %5862 = vmatpush3.bf16.msra.mxu0 %v6289_v24  ;;  %v6294_v24 = vld [vmem:[#allocation9 + $0x80] ss:$12 sps:$4 sm:$0xff]  }
 0x3d4   :  { %5863 = vmatprep.subr.bf16.mxu0 %v8307_v14 }
 0x3d5   :  { %2113 = vmatpush1.bf16.msra.mxu1 %v7305_v33 }
 0x3d6   :  { %2114 = vmatprep.subr.bf16.mxu1 %v7309_v36 }
 0x3d7   :  { %5864 = vmatpush3.bf16.msra.mxu0 %v6290_v56  ;;  %v6295_v56 = vld [vmem:[#allocation9 + $0x68] ss:$12 sps:$4 sm:$0xff]  }
 0x3d8   :  { %5865 = vmatprep.subr.bf16.mxu0 %v8307_v14 }
 0x3d9   :  { %2115 = vmatpush1.bf16.msra.mxu1 %v7312_v37 }
 0x3da   :  { %2379 = vmatprep.subr.bf16.mxu1 %v7262_v30 }
 0x3db   :  { %5866 = vmatpush3.bf16.msra.mxu0 %v6291_v35  ;;  %v6296_v35 = vld [vmem:[#allocation9 + $0x50] ss:$12 sps:$4 sm:$0xff]  }
 0x3dc   :  { %5871 = vmatprep.subr.bf16.mxu0 %v8307_v14 }
 0x47c   :  { %v1855_v59 = vpop.f32.mrf.mxu1  ;;  %v1896_v42 = vpop.f32.mrf.mxu0 }
 0x47d   :  { %v1915_v3 = vadd.f32 %v1912_v41, %v1855_v59  ;;  %v1929_v25 = vadd.f32 %v7212_v28, %v1896_v42  ;;  %v2181_v41 = vld [vmem:[#allocation2 + $0x30] sm:$0xff]  ;;  %v2188_v59 = vunpack.c.l.bf16 %v2186_v40 }
 0x47e   :  { %v1857_v8 = vpop.f32.mrf.mxu1  ;;  %v5849_v9 = vpop.f32.mrf.mxu0  ;;  %v2183_v42 = vunpack.c.l.bf16 %v2181_v41 }
 0x47f   :  { %v5254_v10 = vmul.f32 -1.442695, %v1915_v3  ;;  %v1922_v18 = vadd.f32 %v1913_v16, %v1857_v8  ;;  %v2189_v9 = vunpack.c.h.bf16 %v2186_v40  ;;  %v2184_v16 = vunpack.c.h.bf16 %v2181_v41 }
 0x480   :  { %v1859_v12 = vpop.f32.mrf.mxu1  ;;  %v1899_v13 = vpop.f32.mrf.mxu0  ;;  %v2191_v3 = vadd.f32 %v2188_v59, %v2183_v42 }
 0x481   :  { %6454 = vpow2.f32 %v5254_v10  ;;  %v5255_v5 = vmul.f32 -1.442695, %v1922_v18  ;;  %v2192_v18 = vadd.f32 %v2189_v9, %v2184_v16 }
 0x482   :  { %v1860_v11 = vpop.f32.mrf.mxu1  ;;  %v5850_v63 = vpop.f32.mrf.mxu0 }
 0x483   :  { %6456 = vpow2.f32 %v5255_v5 }
 0x48e   :  { %v6455_v47 = vpop.eup %6454 }
 0x48f   :  { %v1919_v19 = vadd.f32 1.0, %v6455_v47 }
 0x490   :  { %v6457_v21 = vpop.eup %6456 }
 0x491   :  { %6458 = vrcp.f32 %v1919_v19  ;;  %v1926_v22 = vadd.f32 1.0, %v6457_v21 }
 0x493   :  { %6460 = vrcp.f32 %v1926_v22 }
 0x49e   :  { %v6459_v6 = vpop.eup %6458 }
 0x49f   :  { %v1930_v34 = vmul.f32 %v6459_v6, %v1929_v25  ;;  %v7401_v25 = vld [vmem:[#allocation2 + $0x38] ss:$12 sps:$4 sm:$0xff]   ;;  %v7403_v6 = vld [vmem:[#allocation3 + $0x20] ss:$12 sps:$4 sm:$0xff]  }
 0x4a0   :  { %v6461_v29 = vpop.eup %6460 }
 0x4a1   :  { %v1931_v43 = vadd.f32 %v1930_v34, %v1914_v31  ;;  %v1933_v45 = vsub.f32 1.0, %v6461_v29  ;;  %v1935_v61 = vmul.f32 %v6461_v29, %v7329_v44  ;;  %v6293_v44 = vld [vmem:[#allocation9 + $0x98] ss:$12 sps:$4 sm:$0xff]   ;;  %v2185_v31 = vunpack.c.l.bf16 %v7401_v25 }
 0x4a2   :  { %v2190_v34 = vunpack.c.h.bf16 %v7403_v6 }
 0x4a3   :  { %6462 = vtanh.f32 %v1931_v43 }
 0x4b0   :  { %v6463_v49 = vpop.eup %6462 }
 0x4b1   :  { %v1934_v54 = vmul.f32 %v6463_v49, %v1933_v45  ;;  %v2193_v49 = vadd.f32 %v2190_v34, %v2185_v31 }
 0x4b3   :  { %v7368_v23 = vadd.f32 %v1935_v61, %v1934_v54 }
 0x4b5   :  { %v1937_v17 = vpack.c.bf16 %v7368_v23, %v7368_v23 }
 0x4b7   :  { %1938 = vst.msk [vmem:[#allocation4 + $0xc] sm:$0xf] %vm1099_vm2, %v1937_v17  ;;  %2133 = vmatmul.mubr.bf16.vlgmr.msra.gmra.mxu1 %v1937_v17  ;;  %5868 = vmatmul.mubr.bf16.vlgmr.msra.gmra.mxu0 %v1937_v17 }
 0x4b8   :  { %1939 = vst.msk [vmem:[#allocation4 + $0x10] sm:$0xf] %vm1101_vm3, %v1937_v17  ;;  %2380 = vmatpush1.bf16.msra.mxu1 %v7264_v48  ;;  %2411 = vmatprep.mubr.bf16.mxu1 %v8305_v0 }
 0x4b9   :  { %2381 = vmatprep.subr.bf16.mxu1 %v7268_v50  ;;  %5887 = vmatprep.mubr.msk.bf16.mxu0 %vm6845_vm1, %v8307_v14 }
 0x4ba   :  { %5872 = vmatpush3.bf16.msra.mxu0 %v6292_v46 }
 0x4bb   :  { %5873 = vmatprep.subr.bf16.mxu0 %v8307_v14 }
 0x4bc   :  { %2382 = vmatpush1.bf16.msra.mxu1 %v7271_v53 }
 0x4bd   :  { %2383 = vmatprep.subr.bf16.mxu1 %v7275_v58 }
 0x4be   :  { %5874 = vmatpush3.bf16.msra.mxu0 %v6293_v44 }
 0x4bf   :  { %5875 = vmatprep.subr.bf16.mxu0 %v8307_v14 }
 0x4c0   :  { %2384 = vmatpush1.bf16.msra.mxu1 %v7278_v60 }
 0x4c1   :  { %2385 = vmatprep.subr.bf16.mxu1 %v7282_v62 }
 0x4c2   :  { %5876 = vmatpush3.bf16.msra.mxu0 %v6294_v24 }
 0x4c3   :  { %5877 = vmatprep.subr.bf16.mxu0 %v8307_v14 }
 0x4c4   :  { %2386 = vmatpush1.bf16.msra.mxu1 %v7285_v20 }
 0x4c5   :  { %2387 = vmatprep.subr.bf16.mxu1 %v7288_v2 }
 0x4c6   :  { %5878 = vmatpush3.bf16.msra.mxu0 %v6295_v56 }
 0x4c7   :  { %5879 = vmatprep.subr.bf16.mxu0 %v8307_v14 }
 0x4c8   :  { %2388 = vmatpush1.bf16.msra.mxu1 %v7291_v27 }
 0x4c9   :  { %2389 = vmatprep.subr.bf16.mxu1 %v7295_v55 }
 0x4ca   :  { %5880 = vmatpush3.bf16.msra.mxu0 %v6296_v35 }
 0x4cb   :  { %5881 = vmatprep.subr.bf16.mxu0 %v8307_v14 }
 0x4cc   :  { %2390 = vmatpush1.bf16.msra.mxu1 %v7298_v57 }
 0x4cd   :  { %2391 = vmatprep.subr.bf16.mxu1 %v7302_v32 }
 0x4ce   :  { %5882 = vmatpush3.bf16.msra.mxu0 %v6297_v38 }
 0x4cf   :  { %5883 = vmatprep.subr.bf16.mxu0 %v8307_v14 }
 0x4d0   :  { %2392 = vmatpush1.bf16.msra.mxu1 %v7305_v33 }
 0x4d1   :  { %2393 = vmatprep.subr.bf16.mxu1 %v7309_v36 }
 0x4d4   :  { %2394 = vmatpush1.bf16.msra.mxu1 %v7312_v37 }
 0x4d5   :  { %2658 = vmatprep.subr.bf16.mxu1 %v7262_v30  ;;  %v6298_v30 = vld [vmem:[#allocation9 + $0x20] ss:$12 sps:$4 sm:$0xff]  }
 0x4d6   :  { %5884 = vmatpush3.bf16.msra.mxu0 %v6298_v30 }
 0x4d7   :  { %5885 = vmatprep.subr.bf16.mxu0 %v8307_v14 }
 0x4da   :  { %5886 = vmatpush3.bf16.msra.mxu0 %v6299_v39 }
 0x4db   :  { %5891 = vmatprep.subr.bf16.mxu0 %v8307_v14 }
 0x577   :  { %v2134_v4 = vpop.f32.mrf.mxu1  ;;  %v2175_v7 = vpop.f32.mrf.mxu0 }
 0x578   :  { %v2194_v8 = vadd.f32 %v2191_v3, %v2134_v4  ;;  %v2208_v29 = vadd.f32 %v7212_v28, %v2175_v7 }
 0x579   :  { %v2136_v10 = vpop.f32.mrf.mxu1  ;;  %v5869_v12 = vpop.f32.mrf.mxu0 }
 0x57a   :  { %v5280_v13 = vmul.f32 -1.442695, %v2194_v8  ;;  %v2201_v19 = vadd.f32 %v2192_v18, %v2136_v10 }
 0x57b   :  { %v2138_v11 = vpop.f32.mrf.mxu1  ;;  %v2178_v63 = vpop.f32.mrf.mxu0 }
 0x57c   :  { %6464 = vpow2.f32 %v5280_v13  ;;  %v5281_v21 = vmul.f32 -1.442695, %v2201_v19  ;;  %v2464_v11 = vunpack.c.h.bf16 %v7401_v25  ;;  %v2469_v63 = vunpack.c.l.bf16 %v7403_v6  ;;  %v6308_v6 = vld [vmem:[#allocation9 + $0xa8] ss:$12 sps:$4 sm:$0xff]  }
 0x57d   :  { %v2139_v5 = vpop.f32.mrf.mxu1  ;;  %v5870_v47 = vpop.f32.mrf.mxu0 }
 0x57e   :  { %6466 = vpow2.f32 %v5281_v21  ;;  %v2472_v19 = vadd.f32 %v2469_v63, %v2464_v11 }
 0x589   :  { %v6465_v1 = vpop.eup %6464 }
 0x58a   :  { %v2198_v22 = vadd.f32 1.0, %v6465_v1 }
 0x58b   :  { %v6467_v26 = vpop.eup %6466 }
 0x58c   :  { %6468 = vrcp.f32 %v2198_v22  ;;  %v2205_v43 = vadd.f32 1.0, %v6467_v26 }
 0x58e   :  { %6470 = vrcp.f32 %v2205_v43 }
 0x599   :  { %v6469_v45 = vpop.eup %6468 }
 0x59a   :  { %v2209_v54 = vmul.f32 %v6469_v45, %v2208_v29  ;;  %v6311_v45 = vld [vmem:[#allocation9 + $0xb0] ss:$12 sps:$4 sm:$0xff]  }
 0x59b   :  { %v6471_v17 = vpop.eup %6470 }
 0x59c   :  { %v2210_v61 = vadd.f32 %v2209_v54, %v2193_v49  ;;  %v2212_v46 = vsub.f32 1.0, %v6471_v17  ;;  %v2214_v56 = vmul.f32 %v6471_v17, %v7368_v23  ;;  %v6314_v49 = vld [vmem:[#allocation9 + $0x94] ss:$12 sps:$4 sm:$0xff]   ;;  %v6312_v54 = vld [vmem:[#allocation9 + $0x90] ss:$12 sps:$4 sm:$0xff]  }
 0x59d   :  { %v6318_v17 = vld [vmem:[#allocation9 + $0x7c] ss:$12 sps:$4 sm:$0xff]  }
 0x59e   :  { %6472 = vtanh.f32 %v2210_v61  ;;  %v6315_v61 = vld [vmem:[#allocation9 + $0x98] ss:$12 sps:$4 sm:$0xff]  }
 0x5ab   :  { %v6473_v44 = vpop.eup %6472 }
 0x5ac   :  { %v2213_v24 = vmul.f32 %v6473_v44, %v2212_v46  ;;  %v6316_v46 = vld [vmem:[#allocation9 + $0x78] ss:$12 sps:$4 sm:$0xff]   ;;  %v6319_v44 = vld [vmem:[#allocation9 + $0x80] ss:$12 sps:$4 sm:$0xff]  }
 0x5ae   :  { %v7409_v35 = vadd.f32 %v2214_v56, %v2213_v24  ;;  %v6322_v24 = vld [vmem:[#allocation9 + $0x64] ss:$12 sps:$4 sm:$0xff]   ;;  %v6320_v56 = vld [vmem:[#allocation9 + $0x60] ss:$12 sps:$4 sm:$0xff]  }
 0x5b0   :  { %v2216_v38 = vpack.c.bf16 %v7409_v35, %v7409_v35 }
 0x5b2   :  { %2217 = vst.msk [vmem:[#allocation4 + $0x10] sm:$0xf] %vm1099_vm2, %v2216_v38  ;;  %2412 = vmatmul.mubr.bf16.vlgmr.msra.gmra.mxu1 %v2216_v38  ;;  %5888 = vmatmul.mubr.bf16.vlgmr.msra.gmra.mxu0 %v2216_v38 }
 0x5b3   :  { %2218 = vst.msk [vmem:[#allocation4 + $0xc] sm:$0xf] %vm1101_vm3, %v2216_v38  ;;  %2659 = vmatpush1.bf16.msra.mxu1 %v7264_v48  ;;  %2690 = vmatprep.mubr.bf16.mxu1 %v8305_v0  ;;  %v6300_v48 = vld [vmem:[#allocation9 + $0xb0] ss:$12 sps:$4 sm:$0xff]   ;;  %v6326_v38 = vld [vmem:[#allocation9 + $0x4c] ss:$12 sps:$4 sm:$0xff]  }
 0x5b4   :  { %2660 = vmatprep.subr.bf16.mxu1 %v7268_v50  ;;  %5907 = vmatprep.mubr.msk.bf16.mxu0 %vm6845_vm1, %v8307_v14  ;;  %v6301_v50 = vld [vmem:[#allocation9 + $0x98] ss:$12 sps:$4 sm:$0xff]  }
 0x5b5   :  { %5892 = vmatpush3.bf16.msra.mxu0 %v6300_v48  ;;  %v6324_v48 = vld [vmem:[#allocation9 + $0x48] ss:$12 sps:$4 sm:$0xff]  }
 0x5b6   :  { %5893 = vmatprep.subr.bf16.mxu0 %v8307_v14 }
 0x5b7   :  { %2661 = vmatpush1.bf16.msra.mxu1 %v7271_v53  ;;  %v6302_v53 = vld [vmem:[#allocation9 + $0x80] ss:$12 sps:$4 sm:$0xff]  }
 0x5b8   :  { %2662 = vmatprep.subr.bf16.mxu1 %v7275_v58  ;;  %v6303_v58 = vld [vmem:[#allocation9 + $0x68] ss:$12 sps:$4 sm:$0xff]  }
 0x5b9   :  { %5894 = vmatpush3.bf16.msra.mxu0 %v6301_v50  ;;  %v6327_v50 = vld [vmem:[#allocation9 + $0x50] ss:$12 sps:$4 sm:$0xff]  }
 0x5ba   :  { %5895 = vmatprep.subr.bf16.mxu0 %v8307_v14 }
 0x5bb   :  { %2663 = vmatpush1.bf16.msra.mxu1 %v7278_v60  ;;  %v6304_v60 = vld [vmem:[#allocation9 + $0x50] ss:$12 sps:$4 sm:$0xff]  }
 0x5bc   :  { %2664 = vmatprep.subr.bf16.mxu1 %v7282_v62  ;;  %v6305_v62 = vld [vmem:[#allocation9 + $0x38] ss:$12 sps:$4 sm:$0xff]  }
 0x5bd   :  { %5896 = vmatpush3.bf16.msra.mxu0 %v6302_v53  ;;  %v6330_v53 = vld [vmem:[#allocation9 + $0x34] ss:$12 sps:$4 sm:$0xff]  }
 0x5be   :  { %5897 = vmatprep.subr.bf16.mxu0 %v8307_v14 }
 0x5bf   :  { %2665 = vmatpush1.bf16.msra.mxu1 %v7285_v20  ;;  %v6306_v20 = vld [vmem:[#allocation9 + $0x20] ss:$12 sps:$4 sm:$0xff]  }
 0x5c0   :  { %2666 = vmatprep.subr.bf16.mxu1 %v7288_v2  ;;  %v6307_v2 = vld [vmem:[#allocation9 + $0x8] ss:$12 sps:$4 sm:$0xff]  }
 0x5c1   :  { %5898 = vmatpush3.bf16.msra.mxu0 %v6303_v58  ;;  %v6328_v58 = vld [vmem:[#allocation9 + $0x30] ss:$12 sps:$4 sm:$0xff]  }
 0x5c2   :  { %5899 = vmatprep.subr.bf16.mxu0 %v8307_v14 }
 0x5c3   :  { %2667 = vmatpush1.bf16.msra.mxu1 %v7291_v27  ;;  %v2465_v27 = vld [vmem:[#allocation3 + $0x18] sm:$0xff] }
 0x5c4   :  { %2668 = vmatprep.subr.bf16.mxu1 %v7295_v55  ;;  %v2460_v55 = vld [vmem:[#allocation2 + $0x3c] sm:$0xff]  ;;  %v2468_v30 = vunpack.c.h.bf16 %v2465_v27 }
 0x5c5   :  { %5900 = vmatpush3.bf16.msra.mxu0 %v6304_v60  ;;  %v2463_v59 = vunpack.c.h.bf16 %v2460_v55  ;;  %v6331_v60 = vld [vmem:[#allocation9 + $0x38] ss:$12 sps:$4 sm:$0xff]  }
 0x5c6   :  { %5901 = vmatprep.subr.bf16.mxu0 %v8307_v14 }
 0x5c7   :  { %2669 = vmatpush1.bf16.msra.mxu1 %v7298_v57  ;;  %v2467_v57 = vunpack.c.l.bf16 %v2465_v27  ;;  %v2471_v4 = vadd.f32 %v2468_v30, %v2463_v59  ;;  %v6338_v27 = vld [vmem:[#allocation9 + $0x4] ss:$12 sps:$4 sm:$0xff]  }
 0x5c8   :  { %2670 = vmatprep.subr.bf16.mxu1 %v7302_v32  ;;  %v2462_v32 = vunpack.c.l.bf16 %v2460_v55  ;;  %v6336_v55 = vld [vmem:[#allocation9] ss:$12 sps:$4 sm:$0xff]  }
 0x5c9   :  { %5902 = vmatpush3.bf16.msra.mxu0 %v6305_v62  ;;  %v6334_v62 = vld [vmem:[#allocation9 + $0x1c] ss:$12 sps:$4 sm:$0xff]  }
 0x5ca   :  { %5903 = vmatprep.subr.bf16.mxu0 %v8307_v14 }
 0x5cb   :  { %2671 = vmatpush1.bf16.msra.mxu1 %v7305_v33  ;;  %v2470_v33 = vadd.f32 %v2467_v57, %v2462_v32  ;;  %v6339_v57 = vld [vmem:[#allocation9 + $0x8] ss:$12 sps:$4 sm:$0xff]   ;;  %v2744_v32 = vld [vmem:[#allocation3 + $0xc] sm:$0xff] }
 0x5cc   :  { %2672 = vmatprep.subr.bf16.mxu1 %v7309_v36 }
 0x5cd   :  { %5904 = vmatpush3.bf16.msra.mxu0 %v6306_v20  ;;  %v6332_v20 = vld [vmem:[#allocation9 + $0x18] ss:$12 sps:$4 sm:$0xff]  }
 0x5ce   :  { %5905 = vmatprep.subr.bf16.mxu0 %v8307_v14 }
 0x5cf   :  { %2673 = vmatpush1.bf16.msra.mxu1 %v7312_v37 }
 0x5d1   :  { %5906 = vmatpush3.bf16.msra.mxu0 %v6307_v2  ;;  %v6335_v2 = vld [vmem:[#allocation9 + $0x20] ss:$12 sps:$4 sm:$0xff]  }
 0x5d2   :  { %5911 = vmatprep.subr.bf16.mxu0 %v8307_v14 }
 0x672   :  { %v2413_v36 = vpop.f32.mrf.mxu1  ;;  %v2454_v37 = vpop.f32.mrf.mxu0 }
 0x673   :  { %v2473_v23 = vadd.f32 %v2470_v33, %v2413_v36  ;;  %v2487_v5 = vadd.f32 %v7212_v28, %v2454_v37  ;;  %v6310_v28 = vld [vmem:[#allocation9 + $0xac] ss:$12 sps:$4 sm:$0xff]   ;;  %v2746_v36 = vunpack.c.l.bf16 %v2744_v32 }
 0x674   :  { %v2415_v39 = vpop.f32.mrf.mxu1  ;;  %v5889_v40 = vpop.f32.mrf.mxu0  ;;  %2937 = vmatprep.subr.bf16.mxu1 %v6310_v28  ;;  %v2739_v33 = vld [vmem:[#allocation2 + $0x48] sm:$0xff] }
 0x675   :  { %v5306_v41 = vmul.f32 -1.442695, %v2473_v23  ;;  %v2480_v9 = vadd.f32 %v2471_v4, %v2415_v39  ;;  %v2741_v37 = vunpack.c.l.bf16 %v2739_v33  ;;  %v2742_v4 = vunpack.c.h.bf16 %v2739_v33  ;;  %v3018_v33 = vld [vmem:[#allocation2 + $0x54] sm:$0xff] }
 0x676   :  { %v2417_v42 = vpop.f32.mrf.mxu1  ;;  %v2457_v3 = vpop.f32.mrf.mxu0 }
 0x677   :  { %6474 = vpow2.f32 %v5306_v41  ;;  %v5307_v10 = vmul.f32 -1.442695, %v2480_v9  ;;  %v2749_v23 = vadd.f32 %v2746_v36, %v2741_v37  ;;  %v2747_v41 = vunpack.c.h.bf16 %v2744_v32  ;;  %v3023_v32 = vld [vmem:[#allocation3] sm:$0xff] }
 0x678   :  { %v2418_v7 = vpop.f32.mrf.mxu1  ;;  %v5890_v8 = vpop.f32.mrf.mxu0  ;;  %v3025_v36 = vunpack.c.l.bf16 %v3023_v32  ;;  %v3020_v37 = vunpack.c.l.bf16 %v3018_v33 }
 0x679   :  { %6476 = vpow2.f32 %v5307_v10  ;;  %v2750_v9 = vadd.f32 %v2747_v41, %v2742_v4  ;;  %v3026_v41 = vunpack.c.h.bf16 %v3023_v32  ;;  %v3021_v4 = vunpack.c.h.bf16 %v3018_v33  ;;  %v7554_v32 = vld [vmem:[%s8299_s12 + $0x80] ss:$12 sps:$4 sm:$0xff]   ;;  %v7560_v33 = vld [vmem:[%s8299_s12 + $0xa8] ss:$12 sps:$4 sm:$0xff]  }
 0x684   :  { %v6475_v12 = vpop.eup %6474 }
 0x685   :  { %v2477_v13 = vadd.f32 1.0, %v6475_v12 }
 0x686   :  { %v6477_v16 = vpop.eup %6476 }
 0x687   :  { %6478 = vrcp.f32 %v2477_v13  ;;  %v2484_v18 = vadd.f32 1.0, %v6477_v16 }
 0x689   :  { %6480 = vrcp.f32 %v2484_v18 }
 0x694   :  { %v6479_v47 = vpop.eup %6478 }
 0x695   :  { %v2488_v21 = vmul.f32 %v6479_v47, %v2487_v5  ;;  %v7462_v5 = vld [vmem:[#allocation2 + $0x50] ss:$12 sps:$4 sm:$0xff]   ;;  %v7464_v47 = vld [vmem:[#allocation3 + $0x8] ss:$12 sps:$4 sm:$0xff]  }
 0x696   :  { %v6481_v22 = vpop.eup %6480 }
 0x697   :  { %v2489_v1 = vadd.f32 %v2488_v21, %v2472_v19  ;;  %v2491_v26 = vsub.f32 1.0, %v6481_v22  ;;  %v2493_v43 = vmul.f32 %v6481_v22, %v7409_v35  ;;  %v6323_v35 = vld [vmem:[#allocation9 + $0x68] ss:$12 sps:$4 sm:$0xff]   ;;  %v2743_v19 = vunpack.c.l.bf16 %v7462_v5  ;;  %v7471_v22 = vld [vmem:[%s8293_s6] ss:$0 sm:$0xff] }
 0x698   :  { %v2748_v21 = vunpack.c.h.bf16 %v7464_v47 }
 0x699   :  { %6482 = vtanh.f32 %v2489_v1 }
 0x6a6   :  { %v6483_v31 = vpop.eup %6482 }
 0x6a7   :  { %v2492_v34 = vmul.f32 %v6483_v31, %v2491_v26 }
 0x6a9   :  { %v7445_v29 = vadd.f32 %v2493_v43, %v2492_v34  ;;  %v2751_v34 = vadd.f32 %v2748_v21, %v2743_v19  ;;  %v3022_v19 = vunpack.c.h.bf16 %v7462_v5  ;;  %v3027_v21 = vunpack.c.l.bf16 %v7464_v47  ;;  %v6358_v5 = vld [vmem:[#allocation12 + $0x38] ss:$12 sps:$4 sm:$0xff]   ;;  %v6362_v47 = vld [vmem:[#allocation12 + $0x20] ss:$12 sps:$4 sm:$0xff]  }
 0x6ab   :  { %v2495_v25 = vpack.c.bf16 %v7445_v29, %v7445_v29 }
 0x6ad   :  { %2496 = vst.msk [vmem:[#allocation4 + $0x14] sm:$0xf] %vm1099_vm2, %v2495_v25  ;;  %2691 = vmatmul.mubr.bf16.vlgmr.msra.gmra.mxu1 %v2495_v25  ;;  %5908 = vmatmul.mubr.bf16.vlgmr.msra.gmra.mxu0 %v2495_v25 }
 0x6ae   :  { %2497 = vst.msk [vmem:[#allocation4 + $0x8] sm:$0xf] %vm1101_vm3, %v2495_v25  ;;  %2969 = vmatprep.mubr.bf16.mxu1 %v8305_v0  ;;  %5927 = vmatprep.mubr.msk.bf16.mxu0 %vm6845_vm1, %v8307_v14 }
 0x6af   :  { %2938 = vmatpush1.bf16.msra.mxu1 %v6308_v6  ;;  %5912 = vmatpush3.bf16.msra.mxu0 %v6311_v45 }
 0x6b0   :  { %5913 = vmatprep.subr.bf16.mxu0 %v8307_v14  ;;  %2939 = vmatprep.subr.bf16.mxu1 %v6314_v49 }
 0x6b3   :  { %2940 = vmatpush1.bf16.msra.mxu1 %v6312_v54  ;;  %5914 = vmatpush3.bf16.msra.mxu0 %v6315_v61 }
 0x6b4   :  { %5915 = vmatprep.subr.bf16.mxu0 %v8307_v14  ;;  %2941 = vmatprep.subr.bf16.mxu1 %v6318_v17 }
 0x6b7   :  { %2942 = vmatpush1.bf16.msra.mxu1 %v6316_v46  ;;  %5916 = vmatpush3.bf16.msra.mxu0 %v6319_v44  ;;  %v6340_v46 = vld [vmem:[#allocation10 + $0x38] sm:$0xff]   ;;  %v6342_v44 = vld [vmem:[#allocation10 + $0x28] sm:$0xff]  }
 0x6b8   :  { %5917 = vmatprep.subr.bf16.mxu0 %v8307_v14  ;;  %2943 = vmatprep.subr.bf16.mxu1 %v6322_v24  ;;  %v6343_v24 = vld [vmem:[#allocation10 + $0x20] sm:$0xff]  }
 0x6bb   :  { %2944 = vmatpush1.bf16.msra.mxu1 %v6320_v56  ;;  %5918 = vmatpush3.bf16.msra.mxu0 %v6323_v35  ;;  %v6347_v56 = vld [vmem:[#allocation12 + $0x48] ss:$12 sps:$4 sm:$0xff]   ;;  %v6349_v35 = vld [vmem:[#allocation12 + $0x4c] ss:$12 sps:$4 sm:$0xff]  }
 0x6bc   :  { %2945 = vmatprep.subr.bf16.mxu1 %v6326_v38  ;;  %5919 = vmatprep.subr.bf16.mxu0 %v8307_v14  ;;  %v6344_v38 = vld [vmem:[#allocation10 + $0x18] sm:$0xff]  }
 0x6bf   :  { %2946 = vmatpush1.bf16.msra.mxu1 %v6324_v48  ;;  %5920 = vmatpush3.bf16.msra.mxu0 %v6327_v50  ;;  %v6353_v48 = vld [vmem:[#allocation12 + $0x34] ss:$12 sps:$4 sm:$0xff]   ;;  %v6351_v50 = vld [vmem:[#allocation12 + $0x30] ss:$12 sps:$4 sm:$0xff]  }
 0x6c0   :  { %2947 = vmatprep.subr.bf16.mxu1 %v6330_v53  ;;  %5921 = vmatprep.subr.bf16.mxu0 %v8307_v14  ;;  %v6345_v53 = vld [vmem:[#allocation10 + $0x10] sm:$0xff]  }
 0x6c3   :  { %2948 = vmatpush1.bf16.msra.mxu1 %v6328_v58  ;;  %5922 = vmatpush3.bf16.msra.mxu0 %v6331_v60  ;;  %v6346_v58 = vld [vmem:[#allocation10 + $0x8] sm:$0xff]   ;;  %v6350_v60 = vld [vmem:[#allocation10] sm:$0xff]  }
 0x6c4   :  { %2949 = vmatprep.subr.bf16.mxu1 %v6334_v62  ;;  %5923 = vmatprep.subr.bf16.mxu0 %v8307_v14  ;;  %v6354_v62 = vld [vmem:[#allocation12 + $0x50] ss:$12 sps:$4 sm:$0xff]  }
 0x6c7   :  { %2950 = vmatpush1.bf16.msra.mxu1 %v6332_v20  ;;  %5924 = vmatpush3.bf16.msra.mxu0 %v6335_v2  ;;  %v6355_v20 = vld [vmem:[#allocation12 + $0x18] ss:$12 sps:$4 sm:$0xff]   ;;  %v6357_v2 = vld [vmem:[#allocation12 + $0x1c] ss:$12 sps:$4 sm:$0xff]  }
 0x6c8   :  { %2951 = vmatprep.subr.bf16.mxu1 %v6338_v27  ;;  %5925 = vmatprep.subr.bf16.mxu0 %v8307_v14  ;;  %v6359_v27 = vld [vmem:[#allocation12] ss:$12 sps:$4 sm:$0xff]  }
 0x6cb   :  { %2952 = vmatpush1.bf16.msra.mxu1 %v6336_v55  ;;  %5926 = vmatpush3.bf16.msra.mxu0 %v6339_v57  ;;  %v6361_v55 = vld [vmem:[#allocation12 + $0x4] ss:$12 sps:$4 sm:$0xff]   ;;  %v6366_v57 = vld [vmem:[#allocation13 + $0x4c] ss:$12 sps:$4 sm:$0xff]  }
 0x6cc   :  { %5931 = vmatprep.subr.bf16.mxu1 %v8307_v14  ;;  %3309 = vmatprep.subr.bf16.mxu0 %v6349_v35  ;;  %v6379_v35 = vld [vmem:[#allocation13 + $0x1c] ss:$12 sps:$4 sm:$0xff]  }
 0x76d   :  { %v2692_v30 = vpop.f32.mrf.mxu1  ;;  %v2733_v39 = vpop.f32.mrf.mxu0 }
 0x76e   :  { %v2752_v40 = vadd.f32 %v2749_v23, %v2692_v30  ;;  %v2766_v26 = vadd.f32 %v7471_v22, %v2733_v39  ;;  %v3028_v23 = vadd.f32 %v3025_v36, %v3020_v37  ;;  %v7567_v36 = vld [vmem:[%s8299_s12 + $0x94] ss:$12 sps:$4 sm:$0xff]  }
 0x76f   :  { %v2694_v59 = vpop.f32.mrf.mxu1  ;;  %v5909_v42 = vpop.f32.mrf.mxu0  ;;  %v7573_v37 = vld [vmem:[%s8299_s12 + $0x68] ss:$12 sps:$4 sm:$0xff]  }
 0x770   :  { %v5332_v3 = vmul.f32 -1.442695, %v2752_v40  ;;  %v2759_v13 = vadd.f32 %v2750_v9, %v2694_v59  ;;  %v3029_v9 = vadd.f32 %v3026_v41, %v3021_v4  ;;  %v7610_v41 = vld [vmem:[%s8299_s12 + $0x64] ss:$12 sps:$4 sm:$0xff]   ;;  %v7638_v4 = vld [vmem:[%s8299_s12 + $0x20] ss:$12 sps:$4 sm:$0xff]  }
 0x771   :  { %v2696_v7 = vpop.f32.mrf.mxu1  ;;  %v2736_v8 = vpop.f32.mrf.mxu0 }
 0x772   :  { %6484 = vpow2.f32 %v5332_v3  ;;  %v5333_v16 = vmul.f32 -1.442695, %v2759_v13 }
 0x773   :  { %v2697_v10 = vpop.f32.mrf.mxu1  ;;  %v5910_v12 = vpop.f32.mrf.mxu0 }
 0x774   :  { %6486 = vpow2.f32 %v5333_v16 }
 0x77f   :  { %v6485_v11 = vpop.eup %6484 }
 0x780   :  { %v2756_v63 = vadd.f32 1.0, %v6485_v11 }
 0x781   :  { %v6487_v18 = vpop.eup %6486 }
 0x782   :  { %6488 = vrcp.f32 %v2756_v63  ;;  %v2763_v1 = vadd.f32 1.0, %v6487_v18 }
 0x784   :  { %6490 = vrcp.f32 %v2763_v1 }
 0x78f   :  { %v6489_v31 = vpop.eup %6488 }
 0x790   :  { %v2767_v43 = vmul.f32 %v6489_v31, %v2766_v26 }
 0x791   :  { %v6491_v28 = vpop.eup %6490 }
 0x792   :  { %v2768_v25 = vadd.f32 %v2767_v43, %v2751_v34  ;;  %v2770_v6 = vsub.f32 1.0, %v6491_v28  ;;  %v2772_v54 = vmul.f32 %v6491_v28, %v7445_v29  ;;  %v6341_v29 = vld [vmem:[#allocation10 + $0x30] sm:$0xff]   ;;  %v3030_v34 = vadd.f32 %v3027_v21, %v3022_v19 }
 0x794   :  { %6492 = vtanh.f32 %v2768_v25 }
 0x7a1   :  { %v6493_v45 = vpop.eup %6492 }
 0x7a2   :  { %v2771_v49 = vmul.f32 %v6493_v45, %v2770_v6 }
 0x7a4   :  { %v7475_v61 = vadd.f32 %v2772_v54, %v2771_v49 }
 0x7a6   :  { %v2774_v17 = vpack.c.bf16 %v7475_v61, %v7475_v61 }
 0x7a8   :  { %2775 = vst.msk [vmem:[#allocation4 + $0x18] sm:$0xf] %vm1099_vm2, %v2774_v17  ;;  %2970 = vmatmul.mubr.bf16.vlgmr.msra.gmra.mxu1 %v2774_v17  ;;  %5928 = vmatmul.mubr.bf16.vlgmr.msra.gmra.mxu0 %v2774_v17 }
 0x7a9   :  { %2776 = vst.msk [vmem:[#allocation4 + $0x4] sm:$0xf] %vm1101_vm3, %v2774_v17  ;;  %5947 = vmatprep.mubr.msk.bf16.mxu1 %vm6845_vm1, %v8307_v14  ;;  %3333 = vmatprep.mubr.bf16.mxu0 %v8305_v0 }
 0x7aa   :  { %5932 = vmatpush3.bf16.msra.mxu1 %v6340_v46  ;;  %3310 = vmatpush1.bf16.msra.mxu0 %v6347_v56  ;;  %v6371_v56 = vld [vmem:[#allocation13 + $0x30] ss:$12 sps:$4 sm:$0xff]  }
 0x7ab   :  { %5933 = vmatprep.subr.bf16.mxu1 %v8307_v14  ;;  %3311 = vmatprep.subr.bf16.mxu0 %v6353_v48  ;;  %v6374_v48 = vld [vmem:[#allocation13 + $0x38] ss:$12 sps:$4 sm:$0xff]  }
 0x7ae   :  { %5934 = vmatpush3.bf16.msra.mxu1 %v6341_v29  ;;  %3312 = vmatpush1.bf16.msra.mxu0 %v6351_v50  ;;  %v6367_v29 = vld [vmem:[#allocation12 + $0x8] ss:$12 sps:$4 sm:$0xff]  }
 0x7af   :  { %5935 = vmatprep.subr.bf16.mxu1 %v8307_v14  ;;  %3313 = vmatprep.subr.bf16.mxu0 %v6357_v2  ;;  %v7506_v50 = vld [vmem:[#allocation4 + $0x10] sm:$0xff]  }
 0x7b2   :  { %5936 = vmatpush3.bf16.msra.mxu1 %v6342_v44  ;;  %3314 = vmatpush1.bf16.msra.mxu0 %v6355_v20  ;;  %v7518_v20 = vld [vmem:[%s8299_s12 + $0xac] ss:$12 sps:$4 sm:$0xff]  }
 0x7b3   :  { %5937 = vmatprep.subr.bf16.mxu1 %v8307_v14  ;;  %3315 = vmatprep.subr.bf16.mxu0 %v6361_v55  ;;  %v7533_v55 = vld [vmem:[%s8299_s12 + $0xb0] ss:$12 sps:$4 sm:$0xff]  }
 0x7b6   :  { %5938 = vmatpush3.bf16.msra.mxu1 %v6343_v24  ;;  %3316 = vmatpush1.bf16.msra.mxu0 %v6359_v27  ;;  %v6373_v24 = vld [vmem:[#allocation13 + $0x34] ss:$12 sps:$4 sm:$0xff]  }
 0x7b7   :  { %5939 = vmatprep.subr.bf16.mxu1 %v8307_v14  ;;  %3640 = vmatprep.subr.bf16.mxu0 %v6366_v57  ;;  %v6380_v27 = vld [vmem:[#allocation13 + $0x8] ss:$12 sps:$4 sm:$0xff]   ;;  %v7544_v57 = vld [vmem:[%s8299_s12 + $0x98] ss:$12 sps:$4 sm:$0xff]  }
 0x7ba   :  { %5940 = vmatpush3.bf16.msra.mxu1 %v6344_v38  ;;  %v7504_v38 = vld [vmem:[#allocation4 + $0x8] sm:$0xff]  }
 0x7bb   :  { %5941 = vmatprep.subr.bf16.mxu1 %v8307_v14 }
 0x7be   :  { %5942 = vmatpush3.bf16.msra.mxu1 %v6345_v53  ;;  %v6377_v53 = vld [vmem:[#allocation13 + $0x18] ss:$12 sps:$4 sm:$0xff]  }
 0x7bf   :  { %5943 = vmatprep.subr.bf16.mxu1 %v8307_v14 }
 0x7c2   :  { %5944 = vmatpush3.bf16.msra.mxu1 %v6346_v58  ;;  %v6383_v58 = vld [vmem:[#allocation13 + $0x4] ss:$12 sps:$4 sm:$0xff]  }
 0x7c3   :  { %5945 = vmatprep.subr.bf16.mxu1 %v8307_v14 }
 0x7c6   :  { %5946 = vmatpush3.bf16.msra.mxu1 %v6350_v60  ;;  %v6376_v60 = vld [vmem:[#allocation13 + $0x20] ss:$12 sps:$4 sm:$0xff]  }
 0x7c7   :  { %5951 = vmatprep.subr.bf16.mxu1 %v6354_v62 }
 0x868   :  { %v2971_v30 = vpop.f32.mrf.mxu1  ;;  %v3012_v39 = vpop.f32.mrf.mxu0 }
 0x869   :  { %v3031_v40 = vadd.f32 %v3028_v23, %v2971_v30  ;;  %v3045_v26 = vadd.f32 %v7471_v22, %v3012_v39  ;;  %v6364_v22 = vld [vmem:[#allocation13 + $0x48] ss:$12 sps:$4 sm:$0xff]   ;;  %v7585_v23 = vld [vmem:[%s8299_s12 + $0x90] ss:$12 sps:$4 sm:$0xff]  }
 0x86a   :  { %v2973_v59 = vpop.f32.mrf.mxu1  ;;  %v5929_v42 = vpop.f32.mrf.mxu0  ;;  %v7591_v30 = vld [vmem:[%s8299_s12 + $0x7c] ss:$12 sps:$4 sm:$0xff]  }
 0x86b   :  { %v5358_v3 = vmul.f32 -1.442695, %v3031_v40  ;;  %v3038_v13 = vadd.f32 %v3029_v9, %v2973_v59  ;;  %v7597_v39 = vld [vmem:[%s8299_s12 + $0x50] ss:$12 sps:$4 sm:$0xff]   ;;  %v7604_v40 = vld [vmem:[%s8299_s12 + $0x78] ss:$12 sps:$4 sm:$0xff]  }
 0x86c   :  { %v2975_v7 = vpop.f32.mrf.mxu1  ;;  %v3015_v8 = vpop.f32.mrf.mxu0  ;;  %v7616_v59 = vld [vmem:[%s8299_s12 + $0x38] ss:$12 sps:$4 sm:$0xff]   ;;  %v7626_v42 = vld [vmem:[%s8299_s12 + $0x60] ss:$12 sps:$4 sm:$0xff]   ;;  %v7657_v9 = vld [vmem:[%s8299_s12 + $0x8] ss:$12 sps:$4 sm:$0xff]  }
 0x86d   :  { %6494 = vpow2.f32 %v5358_v3  ;;  %v5359_v16 = vmul.f32 -1.442695, %v3038_v13  ;;  %v7632_v3 = vld [vmem:[%s8299_s12 + $0x4c] ss:$12 sps:$4 sm:$0xff]   ;;  %v7645_v7 = vld [vmem:[%s8299_s12 + $0x48] ss:$12 sps:$4 sm:$0xff]  }
 0x86e   :  { %v2976_v10 = vpop.f32.mrf.mxu1  ;;  %v5930_v12 = vpop.f32.mrf.mxu0  ;;  %v7651_v8 = vld [vmem:[%s8299_s12 + $0x34] ss:$12 sps:$4 sm:$0xff]   ;;  %v7681_v13 = vld [vmem:[%s8299_s12 + $0x18] ss:$12 sps:$4 sm:$0xff]  }
 0x86f   :  { %6496 = vpow2.f32 %v5359_v16  ;;  %v7667_v10 = vld [vmem:[%s8299_s12 + $0x30] ss:$12 sps:$4 sm:$0xff]  }
 0x870   :  { %v7673_v12 = vld [vmem:[%s8299_s12 + $0x1c] ss:$12 sps:$4 sm:$0xff]   ;;  %v7687_v16 = vld [vmem:[%s8299_s12 + $0x4] ss:$12 sps:$4 sm:$0xff]  }
 0x87a   :  { %v6495_v11 = vpop.eup %6494 }
 0x87b   :  { %v3035_v63 = vadd.f32 1.0, %v6495_v11  ;;  %v7700_v11 = vld [vmem:[%s8299_s12] ss:$12 sps:$4 sm:$0xff]  }
 0x87c   :  { %v6497_v18 = vpop.eup %6496 }
 0x87d   :  { %6498 = vrcp.f32 %v3035_v63  ;;  %v3042_v1 = vadd.f32 1.0, %v6497_v18  ;;  %v5086_v63 = vld [vmem:[%s8302_s15] ss:$0 sm:$0xff] }
 0x87f   :  { %6500 = vrcp.f32 %v3042_v1 }
 0x88a   :  { %v6499_v31 = vpop.eup %6498 }
 0x88b   :  { %v3046_v43 = vmul.f32 %v6499_v31, %v3045_v26  ;;  %v3187_v26 = vld [vmem:[#allocation15] sm:$0x7] }
 0x88c   :  { %v6501_v28 = vpop.eup %6500 }
 0x88d   :  { %v3047_v25 = vadd.f32 %v3046_v43, %v3030_v34  ;;  %v3049_v6 = vsub.f32 1.0, %v6501_v28  ;;  %v3051_v54 = vmul.f32 %v6501_v28, %v7475_v61  ;;  %v6369_v61 = vld [vmem:[#allocation13 + $0x50] ss:$12 sps:$4 sm:$0xff]   ;;  %v7745_v34 = vrot.slane %v3187_v26, %v7100_v51 }
 0x88e   :  { %v7748_v43 = vrot.slane %v3187_v26, %v7102_v52 }
 0x88f   :  { %6502 = vtanh.f32 %v3047_v25 }
 0x89c   :  { %v6503_v45 = vpop.eup %6502 }
 0x89d   :  { %v3050_v49 = vmul.f32 %v6503_v45, %v3049_v6 }
 0x89f   :  { %v3052_v17 = vadd.f32 %v3051_v54, %v3050_v49  ;;  %v3200_v54 = vrot.slane %v3187_v26, %v7128_v15 }
 0x8a1   :  { %v3053_v46 = vpack.c.bf16 %v3052_v17, %v3052_v17 }
 0x8a3   :  { %3054 = vst.msk [vmem:[#allocation4 + $0x1c] sm:$0xf] %vm1099_vm2, %v3053_v46  ;;  %5948 = vmatmul.mubr.bf16.vlgmr.msra.gmra.mxu1 %v3053_v46 }
 0x8a4   :  { %3055 = vst.msk [vmem:[#allocation4] sm:$0xf] %vm1101_vm3, %v3053_v46  ;;  %5952 = vmatpush3.bf16.msra.mxu1 %v6354_v62  ;;  %v6381_v62 = vld [vmem:[#allocation13] ss:$12 sps:$4 sm:$0xff]  }
 0x8a5   :  { %5953 = vmatprep.subr.bf16.mxu1 %v6358_v5 }
 0x8a8   :  { %5954 = vmatpush3.bf16.msra.mxu1 %v6358_v5 }
 0x8a9   :  { %5955 = vmatprep.subr.bf16.mxu1 %v6362_v47 }
 0x8aa   :  { %v7520_v2 = vld [vmem:[#allocation4 + $0x18] sm:$0xff]  }
 0x8ab   :  { %v7497_v44 = vld [vmem:[#allocation4] sm:$0xff]  }
 0x8ac   :  { %5956 = vmatpush3.bf16.msra.mxu1 %v6362_v47  ;;  %5384 = vmatmul.mubr.msk.bf16.vlgmr.msra.gmra.mxu0 %vm3288_vm4, %v7497_v44 }
 0x8ad   :  { %5959 = vmatprep.mubr.msk.bf16.mxu1 %vm3288_vm4, %v7497_v44  ;;  %5957 = vmatprep.subr.bf16.mxu1 %v6367_v29 }
 0x8ae   :  { %3641 = vmatpush1.bf16.msra.mxu0 %v6364_v22  ;;  %3343 = vmatprep.mubr.bf16.mxu0 %v8305_v0 }
 0x8af   :  { %3642 = vmatprep.subr.bf16.mxu0 %v6373_v24 }
 0x8b0   :  { %5958 = vmatpush3.bf16.msra.mxu1 %v6367_v29 }
 0x8b1   :  { %5967 = vmatprep.subr.bf16.mxu1 %v6369_v61 }
 0x8b2   :  { %3643 = vmatpush1.bf16.msra.mxu0 %v6371_v56 }
 0x8b3   :  { %5960 = vmatmul.mubr.msk.bf16.vlgmr.msra.gmra.mxu1 %vm3288_vm4, %v7504_v38  ;;  %3644 = vmatprep.subr.bf16.mxu0 %v6379_v35 }
 0x8b4   :  { %5963 = vmatprep.mubr.msk.bf16.mxu1 %vm3288_vm4, %v7506_v50  ;;  %5968 = vmatpush3.bf16.msra.mxu1 %v6369_v61 }
 0x8b5   :  { %5385 = vmatmul.mubr.msk.bf16.gmra.mxu0 %vm3288_vm4, %v7504_v38  ;;  %5969 = vmatprep.subr.bf16.mxu1 %v6374_v48 }
 0x8b6   :  { %3353 = vmatprep.mubr.bf16.mxu0 %v8305_v0  ;;  %3645 = vmatpush1.bf16.msra.mxu0 %v6377_v53 }
 0x8b7   :  { %3646 = vmatprep.subr.bf16.mxu0 %v6383_v58 }
 0x8b8   :  { %5970 = vmatpush3.bf16.msra.mxu1 %v6374_v48 }
 0x8b9   :  { %5971 = vmatprep.subr.bf16.mxu1 %v6376_v60 }
 0x8ba   :  { %3647 = vmatpush1.bf16.msra.mxu0 %v6381_v62 }
 0x8bb   :  { %5964 = vmatmul.mubr.msk.bf16.gmra.mxu1 %vm3288_vm4, %v7520_v2  ;;  %4027 = vmatprep.subr.bf16.mxu0 %v7518_v20 }
 0x8bc   :  { %5972 = vmatpush3.bf16.msra.mxu1 %v6376_v60  ;;  %5975 = vmatprep.mubr.msk.bf16.mxu1 %vm3288_vm4, %v7497_v44 }
 0x8bd   :  { %5386 = vmatmul.mubr.msk.bf16.gmra.mxu0 %vm3288_vm4, %v7506_v50  ;;  %5973 = vmatprep.subr.bf16.mxu1 %v6380_v27 }
 0x8be   :  { %3363 = vmatprep.mubr.bf16.mxu0 %v8305_v0 }
 0x8c0   :  { %5974 = vmatpush3.bf16.msra.mxu1 %v6380_v27 }
 0x8c1   :  { %5983 = vmatprep.subr.bf16.mxu1 %v8307_v14 }
 0x8c3   :  { %5976 = vmatmul.mubr.msk.bf16.vlgmr.msra.gmra.mxu1 %vm3288_vm4, %v7504_v38 }
 0x8c4   :  { %5979 = vmatprep.mubr.msk.bf16.mxu1 %vm3288_vm4, %v7506_v50  ;;  %5984 = vmatpush3.bf16.msra.mxu1 %v7533_v55 }
 0x8c5   :  { %5387 = vmatmul.mubr.msk.bf16.gmra.mxu0 %vm3288_vm4, %v7520_v2  ;;  %5985 = vmatprep.subr.bf16.mxu1 %v8307_v14 }
 0x8c6   :  { %3664 = vmatprep.mubr.bf16.mxu0 %v8305_v0 }
 0x8c8   :  { %5986 = vmatpush3.bf16.msra.mxu1 %v7544_v57 }
 0x8c9   :  { %5987 = vmatprep.subr.bf16.mxu1 %v8307_v14 }
 0x8cb   :  { %5980 = vmatmul.mubr.msk.bf16.gmra.mxu1 %vm3288_vm4, %v7520_v2 }
 0x8cc   :  { %5988 = vmatpush3.bf16.msra.mxu1 %v7554_v32  ;;  %5999 = vmatprep.mubr.msk.bf16.mxu1 %vm6845_vm1, %v8307_v14 }
 0x8cd   :  { %5420 = vmatmul.mubr.msk.bf16.vlgmr.msra.gmra.mxu0 %vm3288_vm4, %v7497_v44  ;;  %5989 = vmatprep.subr.bf16.mxu1 %v8307_v14 }
 0x8ce   :  { %3674 = vmatprep.mubr.bf16.mxu0 %v8305_v0  ;;  %4028 = vmatpush1.bf16.msra.mxu0 %v7560_v33 }
 0x8cf   :  { %4029 = vmatprep.subr.bf16.mxu0 %v7567_v36 }
 0x8d0   :  { %5990 = vmatpush3.bf16.msra.mxu1 %v7573_v37 }
 0x8d1   :  { %5991 = vmatprep.subr.bf16.mxu1 %v8307_v14 }
 0x8d2   :  { %4030 = vmatpush1.bf16.msra.mxu0 %v7585_v23 }
 0x8d3   :  { %4031 = vmatprep.subr.bf16.mxu0 %v7591_v30 }
 0x8d4   :  { %5992 = vmatpush3.bf16.msra.mxu1 %v7597_v39 }
 0x8d5   :  { %5421 = vmatmul.mubr.msk.bf16.gmra.mxu0 %vm3288_vm4, %v7504_v38  ;;  %5993 = vmatprep.subr.bf16.mxu1 %v8307_v14 }
 0x8d6   :  { %3684 = vmatprep.mubr.bf16.mxu0 %v8305_v0  ;;  %4032 = vmatpush1.bf16.msra.mxu0 %v7604_v40 }
 0x8d7   :  { %4033 = vmatprep.subr.bf16.mxu0 %v7610_v41 }
 0x8d8   :  { %5994 = vmatpush3.bf16.msra.mxu1 %v7616_v59 }
 0x8d9   :  { %5995 = vmatprep.subr.bf16.mxu1 %v8307_v14 }
 0x8da   :  { %4034 = vmatpush1.bf16.msra.mxu0 %v7626_v42 }
 0x8db   :  { %4035 = vmatprep.subr.bf16.mxu0 %v7632_v3 }
 0x8dc   :  { %5996 = vmatpush3.bf16.msra.mxu1 %v7638_v4 }
 0x8dd   :  { %5422 = vmatmul.mubr.msk.bf16.gmra.mxu0 %vm3288_vm4, %v7506_v50  ;;  %5997 = vmatprep.subr.bf16.mxu1 %v8307_v14 }
 0x8de   :  { %3694 = vmatprep.mubr.bf16.mxu0 %v8305_v0  ;;  %4036 = vmatpush1.bf16.msra.mxu0 %v7645_v7 }
 0x8df   :  { %4037 = vmatprep.subr.bf16.mxu0 %v7651_v8 }
 0x8e0   :  { %5998 = vmatpush3.bf16.msra.mxu1 %v7657_v9 }
 0x8e1   :  { %6003 = vmatprep.subr.bf16.mxu1 %v8307_v14 }
 0x8e2   :  { %4038 = vmatpush1.bf16.msra.mxu0 %v7667_v10 }
 0x8e3   :  { %4039 = vmatprep.subr.bf16.mxu0 %v7673_v12  ;;  %6000 = vmatmul.mubr.bf16.vlgmr.msra.gmra.mxu1 %v8305_v0 }
 0x8e4   :  { %6004 = vmatpush3.bf16.msra.mxu1 %v7533_v55  ;;  %6019 = vmatprep.mubr.msk.bf16.mxu1 %vm6845_vm1, %v8307_v14 }
 0x8e5   :  { %5423 = vmatmul.mubr.msk.bf16.gmra.mxu0 %vm3288_vm4, %v7520_v2  ;;  %6005 = vmatprep.subr.bf16.mxu1 %v8307_v14 }
 0x8e6   :  { %4040 = vmatpush1.bf16.msra.mxu0 %v7681_v13  ;;  %4059 = vmatprep.mubr.bf16.mxu0 %v8305_v0 }
 0x8e7   :  { %4041 = vmatprep.subr.bf16.mxu0 %v7687_v16 }
 0x8e8   :  { %6006 = vmatpush3.bf16.msra.mxu1 %v7544_v57 }
 0x8e9   :  { %6007 = vmatprep.subr.bf16.mxu1 %v8307_v14 }
 0x8ea   :  { %4042 = vmatpush1.bf16.msra.mxu0 %v7700_v11 }
 0x8eb   :  { %4150 = vmatprep.subr.bf16.mxu0 %v7518_v20 }
 0x8ec   :  { %6008 = vmatpush3.bf16.msra.mxu1 %v7554_v32 }
 0x8ed   :  { %4060 = vmatmul.mubr.bf16.vlgmr.msra.gmra.mxu0 %v8305_v0  ;;  %6009 = vmatprep.subr.bf16.mxu1 %v8307_v14 }
 0x8ee   :  { %4151 = vmatpush1.bf16.msra.mxu0 %v7560_v33  ;;  %4182 = vmatprep.mubr.bf16.mxu0 %v8305_v0 }
 0x8ef   :  { %4152 = vmatprep.subr.bf16.mxu0 %v7567_v36 }
 0x8f0   :  { %6010 = vmatpush3.bf16.msra.mxu1 %v7573_v37 }
 0x8f1   :  { %6011 = vmatprep.subr.bf16.mxu1 %v8307_v14 }
 0x8f2   :  { %4153 = vmatpush1.bf16.msra.mxu0 %v7585_v23 }
 0x8f3   :  { %4154 = vmatprep.subr.bf16.mxu0 %v7591_v30 }
 0x8f4   :  { %6012 = vmatpush3.bf16.msra.mxu1 %v7597_v39 }
 0x8f5   :  { %6013 = vmatprep.subr.bf16.mxu1 %v8307_v14 }
 0x8f6   :  { %4155 = vmatpush1.bf16.msra.mxu0 %v7604_v40 }
 0x8f7   :  { %4156 = vmatprep.subr.bf16.mxu0 %v7610_v41 }
 0x8f8   :  { %6014 = vmatpush3.bf16.msra.mxu1 %v7616_v59 }
 0x8f9   :  { %6015 = vmatprep.subr.bf16.mxu1 %v8307_v14 }
 0x8fa   :  { %4157 = vmatpush1.bf16.msra.mxu0 %v7626_v42 }
 0x8fb   :  { %4158 = vmatprep.subr.bf16.mxu0 %v7632_v3 }
 0x8fc   :  { %6016 = vmatpush3.bf16.msra.mxu1 %v7638_v4 }
 0x8fd   :  { %6017 = vmatprep.subr.bf16.mxu1 %v8307_v14 }
 0x8fe   :  { %4159 = vmatpush1.bf16.msra.mxu0 %v7645_v7 }
 0x8ff   :  { %4160 = vmatprep.subr.bf16.mxu0 %v7651_v8 }
 0x900   :  { %6018 = vmatpush3.bf16.msra.mxu1 %v7657_v9 }
 0x901   :  { %6023 = vmatprep.subr.bf16.mxu1 %v8307_v14 }
 0x902   :  { %4161 = vmatpush1.bf16.msra.mxu0 %v7667_v10 }
 0x903   :  { %4162 = vmatprep.subr.bf16.mxu0 %v7673_v12 }
 0x906   :  { %4163 = vmatpush1.bf16.msra.mxu0 %v7681_v13 }
 0x907   :  { %4164 = vmatprep.subr.bf16.mxu0 %v7687_v16 }
 0x90a   :  { %4165 = vmatpush1.bf16.msra.mxu0 %v7700_v11 }
 0x90b   :  { %4267 = vmatprep.subr.bf16.mxu0 %v7518_v20 }
 0x963   :  { %v3155_v18 = vpop.f32.mrf.mxu1 }
 0x964   :  { %v3161_v19 = vadd.f32 %v5086_v63, %v3155_v18 }
 0x965   :  { %v5949_v21 = vpop.f32.mrf.mxu1 }
 0x966   :  { %3162 = vst [vmem:[%s8303_s16] sm:$0xff] %v3161_v19 }
 0x967   :  { %v3158_v1 = vpop.f32.mrf.mxu1 }
 0x969   :  { %v5950_v31 = vpop.f32.mrf.mxu1 }
 0x96c   :  { %v3335_v25 = vpop.f32.mrf.mxu0 }
 0x96d   :  { %v3336_v6 = vadd.f32 %v3335_v25, %v7745_v34 }
 0x96e   :  { %v3337_v28 = vpop.f32.mrf.mxu0 }
 0x96f   :  { %v3338_v45 = vadd.f32 %v3337_v28, %v7748_v43  ;;  %v3551_v28 = vld [vmem:[#allocation16] sm:$0x7] }
 0x970   :  { %v3339_v49 = vpop.f32.mrf.mxu0 }
 0x971   :  { %v7753_v17 = vpack.c.bf16 %v3338_v45, %v3336_v6  ;;  %v3340_v5 = vadd.f32 %v3339_v49, %v7745_v34 }
 0x972   :  { %v3341_v46 = vpop.f32.mrf.mxu0 }
 0x973   :  { %v5961_v47 = vpop.f32.mrf.mxu1  ;;  %v3342_v22 = vadd.f32 %v3341_v46, %v7748_v43 }
 0x974   :  { %v3417_v29 = vadd.f32 %v5961_v47, %v3200_v54 }
 0x975   :  { %v7757_v44 = vpack.c.bf16 %v3342_v22, %v3340_v5  ;;  %v3408_v24 = vpop.f32.mrf.mxu1  ;;  %v3345_v61 = vpop.f32.mrf.mxu0 }
 0x976   :  { %v5530_v56 = vpack.c.bf16 %v3417_v29, %v3417_v29  ;;  %v3409_v35 = vadd.f32 %v3408_v24, %v3200_v54  ;;  %v3346_v53 = vadd.f32 %v3345_v61, %v7745_v34  ;;  %v7768_v29 = vrot.slane %v3551_v28, %v7128_v15 }
 0x977   :  { %v5962_v38 = vpop.f32.mrf.mxu1  ;;  %v3347_v48 = vpop.f32.mrf.mxu0 }
 0x978   :  { %3524 = vst [vmem:[#allocation2 + $0x20] sm:$0xf] %v5530_v56  ;;  %v5526_v50 = vpack.c.bf16 %v3409_v35, %v3409_v35  ;;  %v3420_v58 = vadd.f32 %v5962_v38, %v3200_v54  ;;  %v3348_v60 = vadd.f32 %v3347_v48, %v7748_v43 }
 0x979   :  { %v3411_v62 = vpop.f32.mrf.mxu1  ;;  %v3349_v2 = vpop.f32.mrf.mxu0 }
 0x97a   :  { %3520 = vst [vmem:[#allocation2 + $0x8] sm:$0xf] %v5526_v50  ;;  %v5532_v27 = vpack.c.bf16 %v3420_v58, %v3420_v58  ;;  %v7761_v63 = vpack.c.bf16 %v3348_v60, %v3346_v53  ;;  %v3412_v18 = vadd.f32 %v3411_v62, %v3200_v54  ;;  %v3350_v26 = vadd.f32 %v3349_v2, %v7745_v34 }
 0x97b   :  { %v5965_v19 = vpop.f32.mrf.mxu1  ;;  %v3351_v21 = vpop.f32.mrf.mxu0 }
 0x97c   :  { %3526 = vst [vmem:[#allocation2 + $0x2c] sm:$0xf] %v5532_v27  ;;  %v5528_v1 = vpack.c.bf16 %v3412_v18, %v3412_v18  ;;  %v3433_v31 = vadd.f32 %v5965_v19, %v3200_v54  ;;  %v3352_v25 = vadd.f32 %v3351_v21, %v7748_v43 }
 0x97d   :  { %v3424_v6 = vpop.f32.mrf.mxu1  ;;  %v3355_v45 = vpop.f32.mrf.mxu0 }
 0x97e   :  { %3522 = vst [vmem:[#allocation2 + $0x14] sm:$0xf] %v5528_v1  ;;  %v5538_v49 = vpack.c.bf16 %v3433_v31, %v3433_v31  ;;  %v7765_v46 = vpack.c.bf16 %v3352_v25, %v3350_v26  ;;  %v3425_v5 = vadd.f32 %v3424_v6, %v3200_v54  ;;  %v3356_v61 = vadd.f32 %v3355_v45, %v7745_v34 }
 0x97f   :  { %v5966_v47 = vpop.f32.mrf.mxu1  ;;  %v3357_v22 = vpop.f32.mrf.mxu0 }
 0x980   :  { %3532 = vst [vmem:[#allocation2 + $0x50] sm:$0xf] %v5538_v49  ;;  %3525 = vst [vmem:[#allocation2 + $0x24] sm:$0xff] %v7765_v46  ;;  %v5534_v24 = vpack.c.bf16 %v3425_v5, %v3425_v5  ;;  %v3436_v56 = vadd.f32 %v5966_v47, %v3200_v54  ;;  %v3358_v35 = vadd.f32 %v3357_v22, %v7748_v43 }
 0x981   :  { %v3427_v38 = vpop.f32.mrf.mxu1  ;;  %v3359_v48 = vpop.f32.mrf.mxu0 }
 0x982   :  { %3528 = vst [vmem:[#allocation2 + $0x38] sm:$0xf] %v5534_v24  ;;  %v5540_v50 = vpack.c.bf16 %v3436_v56, %v3436_v56  ;;  %v7773_v53 = vpack.c.bf16 %v3358_v35, %v3356_v61  ;;  %v3428_v58 = vadd.f32 %v3427_v38, %v3200_v54  ;;  %v3360_v2 = vadd.f32 %v3359_v48, %v7745_v34 }
 0x983   :  { %v5977_v60 = vpop.f32.mrf.mxu1  ;;  %v3361_v62 = vpop.f32.mrf.mxu0  ;;  %v7788_v48 = vrot.slane %v3551_v28, %v7100_v51 }
 0x984   :  { %3534 = vst [vmem:[#allocation2 + $0x5c] sm:$0xf] %v5540_v50  ;;  %3527 = vst [vmem:[#allocation2 + $0x30] sm:$0xff] %v7773_v53  ;;  %v5536_v15 = vpack.c.bf16 %v3428_v58, %v3428_v58  ;;  %v3748_v27 = vadd.f32 %v5977_v60, %v7768_v29  ;;  %v3362_v18 = vadd.f32 %v3361_v62, %v7748_v43 }
 0x985   :  { %v3739_v19 = vpop.f32.mrf.mxu1  ;;  %v3365_v21 = vpop.f32.mrf.mxu0  ;;  %v7791_v50 = vrot.slane %v3551_v28, %v7102_v52 }
 0x986   :  { %3530 = vst [vmem:[#allocation2 + $0x44] sm:$0xf] %v5536_v15  ;;  %v5546_v1 = vpack.c.bf16 %v3748_v27, %v3748_v27  ;;  %v7779_v26 = vpack.c.bf16 %v3362_v18, %v3360_v2  ;;  %v3740_v54 = vadd.f32 %v3739_v19, %v7768_v29  ;;  %v3366_v45 = vadd.f32 %v3365_v21, %v7745_v34 }
 0x987   :  { %v5978_v31 = vpop.f32.mrf.mxu1  ;;  %v3367_v25 = vpop.f32.mrf.mxu0 }
 0x988   :  { %3855 = vst [vmem:[#allocation3 + $0x20] sm:$0xf] %v5546_v1  ;;  %3529 = vst [vmem:[#allocation2 + $0x3c] sm:$0xff] %v7779_v26  ;;  %v5542_v6 = vpack.c.bf16 %v3740_v54, %v3740_v54  ;;  %v3751_v49 = vadd.f32 %v5978_v31, %v7768_v29  ;;  %v3368_v5 = vadd.f32 %v3367_v25, %v7748_v43 }
 0x989   :  { %v3742_v47 = vpop.f32.mrf.mxu1  ;;  %v3369_v22 = vpop.f32.mrf.mxu0 }
 0x98a   :  { %3851 = vst [vmem:[#allocation3 + $0x8] sm:$0xf] %v5542_v6  ;;  %v5548_v24 = vpack.c.bf16 %v3751_v49, %v3751_v49  ;;  %v5537_v61 = vpack.c.bf16 %v3368_v5, %v3366_v45  ;;  %v3743_v56 = vadd.f32 %v3742_v47, %v7768_v29  ;;  %v3370_v60 = vadd.f32 %v3369_v22, %v7745_v34 }
 0x98b   :  { %v5981_v35 = vpop.f32.mrf.mxu1  ;;  %v3371_v38 = vpop.f32.mrf.mxu0 }
 0x98c   :  { %3857 = vst [vmem:[#allocation3 + $0x2c] sm:$0xf] %v5548_v24  ;;  %3531 = vst [vmem:[#allocation2 + $0x48] sm:$0xff] %v5537_v61  ;;  %v5544_v58 = vpack.c.bf16 %v3743_v56, %v3743_v56  ;;  %v3764_v62 = vadd.f32 %v5981_v35, %v7768_v29  ;;  %v3372_v15 = vadd.f32 %v3371_v38, %v7748_v43  ;;  %v4817_v38 = vld [vmem:[#allocation2 + $0x50] ss:$12 sps:$4 sm:$0xff]  }
 0x98d   :  { %v3755_v2 = vpop.f32.mrf.mxu1  ;;  %v3666_v27 = vpop.f32.mrf.mxu0  ;;  %v7800_v31 = vld [vmem:[#allocation2 + $0x38] ss:$12 sps:$4 sm:$0xff]  }
 0x98e   :  { %3853 = vst [vmem:[#allocation3 + $0x14] sm:$0xf] %v5544_v58  ;;  %v5554_v18 = vpack.c.bf16 %v3764_v62, %v3764_v62  ;;  %v5539_v19 = vpack.c.bf16 %v3372_v15, %v3370_v60  ;;  %v3756_v51 = vadd.f32 %v3755_v2, %v7768_v29  ;;  %v3667_v28 = vadd.f32 %v3666_v27, %v7788_v48 }
 0x98f   :  { %v5982_v21 = vpop.f32.mrf.mxu1  ;;  %v3668_v1 = vpop.f32.mrf.mxu0  ;;  %v4703_v22 = vunpack.c.h.bf16 %v7800_v31  ;;  %v4937_v2 = vunpack.c.h.bf16 %v4817_v38 }
 0x990   :  { %3863 = vst [vmem:[#allocation3 + $0x50] sm:$0xf] %v5554_v18  ;;  %3533 = vst [vmem:[#allocation2 + $0x54] sm:$0xff] %v5539_v19  ;;  %v5550_v52 = vpack.c.bf16 %v3756_v51, %v3756_v51  ;;  %v3767_v34 = vadd.f32 %v5982_v21, %v7768_v29  ;;  %v3669_v54 = vadd.f32 %v3668_v1, %v7791_v50  ;;  %v7816_v51 = vld [vmem:[#allocation2 + $0x8] ss:$12 sps:$4 sm:$0xff]  }
 0x991   :  { %v3758_v43 = vpop.f32.mrf.mxu1  ;;  %v3670_v25 = vpop.f32.mrf.mxu0 }
 0x992   :  { %3859 = vst [vmem:[#allocation3 + $0x38] sm:$0xf] %v5550_v52  ;;  %v5556_v6 = vpack.c.bf16 %v3767_v34, %v3767_v34  ;;  %v5541_v45 = vpack.c.bf16 %v3669_v54, %v3667_v28  ;;  %v3759_v49 = vadd.f32 %v3758_v43, %v7768_v29  ;;  %v3671_v61 = vadd.f32 %v3670_v25, %v7788_v48  ;;  %v7823_v43 = vld [vmem:[#allocation2 + $0x20] ss:$12 sps:$4 sm:$0xff]  }
 0x993   :  { %v3672_v5 = vpop.f32.mrf.mxu0  ;;  %v7803_v47 = vld [vmem:[#allocation3 + $0x20] ss:$12 sps:$4 sm:$0xff]   ;;  %v4235_v54 = vunpack.c.h.bf16 %v7816_v51 }
 0x994   :  { %3865 = vst [vmem:[#allocation3 + $0x5c] sm:$0xf] %v5556_v6  ;;  %3850 = vst [vmem:[#allocation3] sm:$0xff] %v5541_v45  ;;  %v5552_v24 = vpack.c.bf16 %v3759_v49, %v3759_v49  ;;  %v3673_v56 = vadd.f32 %v3672_v5, %v7791_v50  ;;  %v4708_v35 = vunpack.c.l.bf16 %v7803_v47 }
 0x995   :  { %v3676_v58 = vpop.f32.mrf.mxu0  ;;  %v4822_v60 = vld [vmem:[#allocation3 + $0x8] ss:$12 sps:$4 sm:$0xff]  }
 0x996   :  { %3861 = vst [vmem:[#allocation3 + $0x44] sm:$0xf] %v5552_v24  ;;  %v7809_v62 = vpack.c.bf16 %v3673_v56, %v3671_v61  ;;  %v7811_v29 = vadd.f32 %v4708_v35, %v4703_v22  ;;  %v4942_v27 = vunpack.c.l.bf16 %v4822_v60  ;;  %v3677_v18 = vadd.f32 %v3676_v58, %v7788_v48 }
 0x997   :  { %v3678_v15 = vpop.f32.mrf.mxu0  ;;  %v4701_v24 = vunpack.c.l.bf16 %v7779_v26  ;;  %v4702_v61 = vunpack.c.h.bf16 %v7779_v26  ;;  %v4469_v58 = vunpack.c.h.bf16 %v7823_v43  ;;  %v4584_v60 = vunpack.c.l.bf16 %v7773_v53 }
 0x998   :  { %8313 = vst [vmem:[#allocation27_spill] sm:$0xff] %v7809_v62  ;;  %8314 = vst [vmem:[#allocation28_spill] sm:$0xff] %v7811_v29  ;;  %v3679_v19 = vadd.f32 %v3678_v15, %v7791_v50  ;;  %v7818_v1 = vadd.f32 %v4942_v27, %v4937_v2  ;;  %v4585_v27 = vunpack.c.h.bf16 %v7773_v53 }
 0x999   :  { %3852 = vst [vmem:[#allocation3 + $0xc] sm:$0xff] %v7809_v62  ;;  %v3680_v21 = vpop.f32.mrf.mxu0 }
 0x99a   :  { %8315 = vst [vmem:[#allocation29_spill] sm:$0xff] %v7818_v1  ;;  %v5545_v52 = vpack.c.bf16 %v3679_v19, %v3677_v18  ;;  %v3681_v25 = vadd.f32 %v3680_v21, %v7788_v48 }
 0x99b   :  { %v3682_v28 = vpop.f32.mrf.mxu0  ;;  %v7820_v34 = vld [vmem:[#allocation3 + $0x50] ss:$12 sps:$4 sm:$0xff]  }
 0x99c   :  { %3854 = vst [vmem:[#allocation3 + $0x18] sm:$0xff] %v5545_v52  ;;  %v3683_v6 = vadd.f32 %v3682_v28, %v7791_v50  ;;  %v4240_v45 = vunpack.c.l.bf16 %v7820_v34  ;;  %v4706_v49 = vunpack.c.l.bf16 %v5545_v52  ;;  %v4707_v56 = vunpack.c.h.bf16 %v5545_v52 }
 0x99d   :  { %v3686_v5 = vpop.f32.mrf.mxu0  ;;  %v7828_v22 = vld [vmem:[#allocation3 + $0x38] ss:$12 sps:$4 sm:$0xff]  }
 0x99e   :  { %v5547_v35 = vpack.c.bf16 %v3683_v6, %v3681_v25  ;;  %v7832_v38 = vadd.f32 %v4240_v45, %v4235_v54  ;;  %v4474_v2 = vunpack.c.l.bf16 %v7828_v22  ;;  %v7838_v18 = vadd.f32 %v4706_v49, %v4701_v24 }
 0x99f   :  { %v3688_v15 = vpop.f32.mrf.mxu0  ;;  %v7840_v19 = vadd.f32 %v4707_v56, %v4702_v61  ;;  %v3687_v26 = vadd.f32 %v3686_v5, %v7788_v48  ;;  %v4467_v24 = vunpack.c.l.bf16 %v7765_v46  ;;  %v4468_v61 = vunpack.c.h.bf16 %v7765_v46 }
 0x9a0   :  { %3856 = vst [vmem:[#allocation3 + $0x24] sm:$0xff] %v5547_v35  ;;  %v3689_v21 = vadd.f32 %v3688_v15, %v7791_v50  ;;  %v4589_v52 = vunpack.c.l.bf16 %v5547_v35  ;;  %v4590_v28 = vunpack.c.h.bf16 %v5547_v35  ;;  %v7844_v25 = vadd.f32 %v4474_v2, %v4469_v58 }
 0x9a1   :  { %8316 = vst [vmem:[#allocation30_spill] sm:$0xff] %v7840_v19  ;;  %v3690_v54 = vpop.f32.mrf.mxu0 }
 0x9a2   :  { %v5549_v6 = vpack.c.bf16 %v3689_v21, %v3687_v26  ;;  %v7846_v45 = vadd.f32 %v4589_v52, %v4584_v60  ;;  %v7848_v0 = vadd.f32 %v4590_v28, %v4585_v27  ;;  %v3691_v5 = vadd.f32 %v3690_v54, %v7788_v48 }
 0x9a3   :  { %v3692_v53 = vpop.f32.mrf.mxu0  ;;  %v4102_v49 = vpop.f32.mrf.mxu1  ;;  %v4350_v52 = vunpack.c.l.bf16 %v7761_v63  ;;  %v4351_v28 = vunpack.c.h.bf16 %v7761_v63 }
 0x9a4   :  { %v3693_v56 = vadd.f32 %v3692_v53, %v7791_v50  ;;  %v4472_v15 = vunpack.c.l.bf16 %v5549_v6  ;;  %v4473_v35 = vunpack.c.h.bf16 %v5549_v6 }
 0x9a5   :  { %v3696_v14 = vpop.f32.mrf.mxu0  ;;  %v6001_v58 = vpop.f32.mrf.mxu1 }
 0x9a6   :  { %v5551_v2 = vpack.c.bf16 %v3693_v56, %v3691_v5  ;;  %v7854_v26 = vadd.f32 %v4472_v15, %v4467_v24  ;;  %v7856_v60 = vadd.f32 %v4473_v35, %v4468_v61  ;;  %v3697_v46 = vadd.f32 %v3696_v14, %v7788_v48 }
 0x9a7   :  { %v3698_v27 = vpop.f32.mrf.mxu0  ;;  %v4105_v21 = vpop.f32.mrf.mxu1  ;;  %v4233_v56 = vunpack.c.l.bf16 %v7757_v44  ;;  %v4234_v15 = vunpack.c.h.bf16 %v7757_v44 }
 0x9a8   :  { %v3699_v54 = vadd.f32 %v3698_v27, %v7791_v50  ;;  %v4355_v53 = vunpack.c.l.bf16 %v5551_v2  ;;  %v4356_v1 = vunpack.c.h.bf16 %v5551_v2 }
 0x9a9   :  { %v3700_v6 = vpop.f32.mrf.mxu0  ;;  %v6002_v62 = vpop.f32.mrf.mxu1 }
 0x9aa   :  { %v5553_v58 = vpack.c.bf16 %v3699_v54, %v3697_v46  ;;  %v7862_v5 = vadd.f32 %v4355_v53, %v4350_v52  ;;  %v7864_v24 = vadd.f32 %v4356_v1, %v4351_v28  ;;  %v3701_v63 = vadd.f32 %v3700_v6, %v7788_v48 }
 0x9ab   :  { %v3702_v61 = vpop.f32.mrf.mxu0  ;;  %v4110_v1 = vunpack.c.l.bf16 %v7753_v17  ;;  %v4111_v48 = vunpack.c.h.bf16 %v7753_v17 }
 0x9ac   :  { %v3703_v14 = vadd.f32 %v3702_v61, %v7791_v50  ;;  %v4238_v35 = vunpack.c.l.bf16 %v5553_v58  ;;  %v4239_v27 = vunpack.c.h.bf16 %v5553_v58 }
 0x9ad   :  { %v4061_v21 = vpop.f32.mrf.mxu0 }
 0x9ae   :  { %v5555_v2 = vpack.c.bf16 %v3703_v14, %v3701_v63  ;;  %v7870_v29 = vadd.f32 %v4238_v35, %v4233_v56  ;;  %v7872_v62 = vadd.f32 %v4239_v27, %v4234_v15  ;;  %v7876_v14 = vld [vmem:[#allocation18] ss:$0 sm:$0xff]  ;;  %v4117_v27 = vunpack.c.h.bf16 %v7820_v34 }
 0x9af   :  { %v4063_v52 = vpop.f32.mrf.mxu0 }
 0x9b0   :  { %v4115_v28 = vunpack.c.l.bf16 %v5555_v2  ;;  %v4116_v53 = vunpack.c.h.bf16 %v5555_v2  ;;  %v4141_v2 = vadd.f32 %v7876_v14, %v4102_v49  ;;  %v8318_v49 = vmov 0  }
 0x9b1   :  { %v4065_v46 = vpop.f32.mrf.mxu0 }
 0x9b2   :  { %v4118_v54 = vadd.f32 %v4115_v28, %v4110_v1  ;;  %v4119_v6 = vadd.f32 %v4116_v53, %v4111_v48 }
 0x9b3   :  { %v4066_v44 = vpop.f32.mrf.mxu0 }
 0x9b4   :  { %v4121_v19 = vadd.f32 %v4118_v54, %v4061_v21  ;;  %v4128_v58 = vadd.f32 %v4119_v6, %v4063_v52  ;;  %v4112_v21 = vunpack.c.l.bf16 %v7816_v51  ;;  %v8317_v51 = vmov 0.0  }
 0x9b6   :  { %v5468_v50 = vmul.f32 -1.442695, %v4121_v19  ;;  %v5469_v61 = vmul.f32 -1.442695, %v4128_v58  ;;  %v4120_v19 = vadd.f32 %v4117_v27, %v4112_v21 }
 0x9b8   :  { %6504 = vpow2.f32 %v5468_v50 }
 0x9b9   :  { %6506 = vpow2.f32 %v5469_v61 }
 0x9c5   :  { %v6505_v56 = vpop.eup %6504 }
 0x9c6   :  { %v4125_v15 = vadd.f32 1.0, %v6505_v56  ;;  %v6507_v63 = vpop.eup %6506 }
 0x9c7   :  { %v4132_v35 = vadd.f32 1.0, %v6507_v63 }
 0x9c8   :  { %6508 = vrcp.f32 %v4125_v15 }
 0x9c9   :  { %6510 = vrcp.f32 %v4132_v35 }
 0x9d5   :  { %v6509_v17 = vpop.eup %6508 }
 0x9d6   :  { %v4142_v1 = vmul.f32 %v6509_v17, %v4141_v2  ;;  %v6511_v28 = vpop.eup %6510 }
 0x9d7   :  { %v4145_v46 = vsub.f32 1.0, %v6511_v28  ;;  %v4147_v44 = vmul.f32 0.0, %v6511_v28 }
 0x9d8   :  { %v4143_v52 = vadd.f32 %v4142_v1, %v4120_v19 }
 0x9da   :  { %6512 = vtanh.f32 %v4143_v52 }
 0x9e7   :  { %v6513_v54 = vpop.eup %6512 }
 0x9e8   :  { %v4146_v53 = vmul.f32 %v6513_v54, %v4145_v46 }
 0x9ea   :  { %v7881_v48 = vadd.f32 %v4147_v44, %v4146_v53 }
 0x9ec   :  { %v4149_v34 = vpack.c.bf16 %v7881_v48, %v7881_v48 }
 0x9ee   :  { %4183 = vmatmul.mubr.bf16.vlgmr.msra.gmra.mxu0 %v4149_v34  ;;  %6020 = vmatmul.mubr.bf16.vlgmr.msra.gmra.mxu1 %v4149_v34 }
 0x9ef   :  { %4268 = vmatpush1.bf16.msra.mxu0 %v7560_v33  ;;  %6024 = vmatpush3.bf16.msra.mxu1 %v7533_v55 }
 0x9f0   :  { %4269 = vmatprep.subr.bf16.mxu0 %v7567_v36  ;;  %6025 = vmatprep.subr.bf16.mxu1 %v8317_v51 }
 0x9f1   :  { %4299 = vmatprep.mubr.bf16.mxu0 %v8318_v49  ;;  %6039 = vmatprep.mubr.msk.bf16.mxu1 %vm6845_vm1, %v8317_v51 }
 0x9f3   :  { %4270 = vmatpush1.bf16.msra.mxu0 %v7585_v23  ;;  %6026 = vmatpush3.bf16.msra.mxu1 %v7544_v57 }
 0x9f4   :  { %4271 = vmatprep.subr.bf16.mxu0 %v7591_v30  ;;  %6027 = vmatprep.subr.bf16.mxu1 %v8317_v51 }
 0x9f7   :  { %4272 = vmatpush1.bf16.msra.mxu0 %v7604_v40  ;;  %6028 = vmatpush3.bf16.msra.mxu1 %v7554_v32 }
 0x9f8   :  { %4273 = vmatprep.subr.bf16.mxu0 %v7610_v41  ;;  %6029 = vmatprep.subr.bf16.mxu1 %v8317_v51 }
 0x9fb   :  { %4274 = vmatpush1.bf16.msra.mxu0 %v7626_v42  ;;  %6030 = vmatpush3.bf16.msra.mxu1 %v7573_v37 }
 0x9fc   :  { %4275 = vmatprep.subr.bf16.mxu0 %v7632_v3  ;;  %6031 = vmatprep.subr.bf16.mxu1 %v8317_v51 }
 0x9ff   :  { %4276 = vmatpush1.bf16.msra.mxu0 %v7645_v7  ;;  %6032 = vmatpush3.bf16.msra.mxu1 %v7597_v39 }
 0xa00   :  { %4277 = vmatprep.subr.bf16.mxu0 %v7651_v8  ;;  %6033 = vmatprep.subr.bf16.mxu1 %v8317_v51 }
 0xa03   :  { %4278 = vmatpush1.bf16.msra.mxu0 %v7667_v10  ;;  %6034 = vmatpush3.bf16.msra.mxu1 %v7616_v59 }
 0xa04   :  { %4279 = vmatprep.subr.bf16.mxu0 %v7673_v12  ;;  %6035 = vmatprep.subr.bf16.mxu1 %v8317_v51 }
 0xa07   :  { %4280 = vmatpush1.bf16.msra.mxu0 %v7681_v13  ;;  %6036 = vmatpush3.bf16.msra.mxu1 %v7638_v4 }
 0xa08   :  { %4281 = vmatprep.subr.bf16.mxu0 %v7687_v16  ;;  %6037 = vmatprep.subr.bf16.mxu1 %v8317_v51 }
 0xa0b   :  { %4282 = vmatpush1.bf16.msra.mxu0 %v7700_v11  ;;  %6038 = vmatpush3.bf16.msra.mxu1 %v7657_v9 }
 0xa0c   :  { %4384 = vmatprep.subr.bf16.mxu0 %v7518_v20  ;;  %6043 = vmatprep.subr.bf16.mxu1 %v8317_v51 }
 0xaae   :  { %v4184_v50 = vpop.f32.mrf.mxu0  ;;  %v4225_v6 = vpop.f32.mrf.mxu1 }
 0xaaf   :  { %v4244_v58 = vadd.f32 %v7870_v29, %v4184_v50  ;;  %v4258_v46 = vadd.f32 %v7876_v14, %v4225_v6 }
 0xab0   :  { %v4186_v61 = vpop.f32.mrf.mxu0  ;;  %v6021_v56 = vpop.f32.mrf.mxu1 }
 0xab1   :  { %v5471_v15 = vmul.f32 -1.442695, %v4244_v58  ;;  %v4251_v21 = vadd.f32 %v7872_v62, %v4186_v61 }
 0xab2   :  { %v4188_v63 = vpop.f32.mrf.mxu0  ;;  %v4228_v35 = vpop.f32.mrf.mxu1 }
 0xab3   :  { %6514 = vpow2.f32 %v5471_v15  ;;  %v5472_v17 = vmul.f32 -1.442695, %v4251_v21 }
 0xab4   :  { %v4189_v27 = vpop.f32.mrf.mxu0  ;;  %v6022_v2 = vpop.f32.mrf.mxu1 }
 0xab5   :  { %6516 = vpow2.f32 %v5472_v17 }
 0xac0   :  { %v6515_v19 = vpop.eup %6514 }
 0xac1   :  { %v4248_v1 = vadd.f32 1.0, %v6515_v19  ;;  %v4357_v19 = vunpack.c.h.bf16 %v7828_v22 }
 0xac2   :  { %v6517_v52 = vpop.eup %6516 }
 0xac3   :  { %6518 = vrcp.f32 %v4248_v1  ;;  %v4255_v28 = vadd.f32 1.0, %v6517_v52 }
 0xac5   :  { %6520 = vrcp.f32 %v4255_v28 }
 0xad0   :  { %v6519_v29 = vpop.eup %6518 }
 0xad1   :  { %v4259_v54 = vmul.f32 %v6519_v29, %v4258_v46 }
 0xad2   :  { %v6521_v44 = vpop.eup %6520 }
 0xad3   :  { %v4260_v53 = vadd.f32 %v4259_v54, %v7832_v38  ;;  %v4262_v34 = vsub.f32 1.0, %v6521_v44  ;;  %v4264_v62 = vmul.f32 %v6521_v44, %v7881_v48 }
 0xad5   :  { %6522 = vtanh.f32 %v4260_v53 }
 0xae2   :  { %v6523_v50 = vpop.eup %6522 }
 0xae3   :  { %v4263_v58 = vmul.f32 %v6523_v50, %v4262_v34 }
 0xae5   :  { %v7925_v61 = vadd.f32 %v4264_v62, %v4263_v58 }
 0xae7   :  { %v4266_v56 = vpack.c.bf16 %v7925_v61, %v7925_v61 }
 0xae9   :  { %4300 = vmatmul.mubr.bf16.vlgmr.msra.gmra.mxu0 %v4266_v56  ;;  %6040 = vmatmul.mubr.bf16.vlgmr.msra.gmra.mxu1 %v4266_v56 }
 0xaea   :  { %4385 = vmatpush1.bf16.msra.mxu0 %v7560_v33  ;;  %6044 = vmatpush3.bf16.msra.mxu1 %v7533_v55 }
 0xaeb   :  { %4386 = vmatprep.subr.bf16.mxu0 %v7567_v36  ;;  %6045 = vmatprep.subr.bf16.mxu1 %v8317_v51 }
 0xaec   :  { %4416 = vmatprep.mubr.bf16.mxu0 %v8318_v49  ;;  %6059 = vmatprep.mubr.msk.bf16.mxu1 %vm6845_vm1, %v8317_v51 }
 0xaee   :  { %4387 = vmatpush1.bf16.msra.mxu0 %v7585_v23  ;;  %6046 = vmatpush3.bf16.msra.mxu1 %v7544_v57 }
 0xaef   :  { %4388 = vmatprep.subr.bf16.mxu0 %v7591_v30  ;;  %6047 = vmatprep.subr.bf16.mxu1 %v8317_v51 }
 0xaf2   :  { %4389 = vmatpush1.bf16.msra.mxu0 %v7604_v40  ;;  %6048 = vmatpush3.bf16.msra.mxu1 %v7554_v32 }
 0xaf3   :  { %4390 = vmatprep.subr.bf16.mxu0 %v7610_v41  ;;  %6049 = vmatprep.subr.bf16.mxu1 %v8317_v51 }
 0xaf6   :  { %4391 = vmatpush1.bf16.msra.mxu0 %v7626_v42  ;;  %6050 = vmatpush3.bf16.msra.mxu1 %v7573_v37 }
 0xaf7   :  { %4392 = vmatprep.subr.bf16.mxu0 %v7632_v3  ;;  %6051 = vmatprep.subr.bf16.mxu1 %v8317_v51 }
 0xafa   :  { %4393 = vmatpush1.bf16.msra.mxu0 %v7645_v7  ;;  %6052 = vmatpush3.bf16.msra.mxu1 %v7597_v39 }
 0xafb   :  { %4394 = vmatprep.subr.bf16.mxu0 %v7651_v8  ;;  %6053 = vmatprep.subr.bf16.mxu1 %v8317_v51 }
 0xafe   :  { %4395 = vmatpush1.bf16.msra.mxu0 %v7667_v10  ;;  %6054 = vmatpush3.bf16.msra.mxu1 %v7616_v59 }
 0xaff   :  { %4396 = vmatprep.subr.bf16.mxu0 %v7673_v12  ;;  %6055 = vmatprep.subr.bf16.mxu1 %v8317_v51 }
 0xb02   :  { %4397 = vmatpush1.bf16.msra.mxu0 %v7681_v13  ;;  %6056 = vmatpush3.bf16.msra.mxu1 %v7638_v4 }
 0xb03   :  { %4398 = vmatprep.subr.bf16.mxu0 %v7687_v16  ;;  %6057 = vmatprep.subr.bf16.mxu1 %v8317_v51 }
 0xb06   :  { %4399 = vmatpush1.bf16.msra.mxu0 %v7700_v11  ;;  %6058 = vmatpush3.bf16.msra.mxu1 %v7657_v9 }
 0xb07   :  { %4501 = vmatprep.subr.bf16.mxu0 %v7518_v20  ;;  %6063 = vmatprep.subr.bf16.mxu1 %v8317_v51 }
 0xba9   :  { %v4301_v55 = vpop.f32.mrf.mxu0  ;;  %v4342_v57 = vpop.f32.mrf.mxu1 }
 0xbaa   :  { %v4361_v32 = vadd.f32 %v7862_v5, %v4301_v55  ;;  %v4352_v5 = vunpack.c.l.bf16 %v7823_v43  ;;  %v4375_v52 = vadd.f32 %v7876_v14, %v4342_v57  ;;  %v7978_v43 = vld [vmem:[%s8299_s12 + $0xb0] ss:$12 sps:$4 sm:$0xff]  }
 0xbab   :  { %v4303_v37 = vpop.f32.mrf.mxu0  ;;  %v6041_v38 = vpop.f32.mrf.mxu1 }
 0xbac   :  { %v5473_v48 = vmul.f32 -1.442695, %v4361_v32  ;;  %v4368_v27 = vadd.f32 %v7864_v24, %v4303_v37  ;;  %v4360_v46 = vadd.f32 %v4357_v19, %v4352_v5  ;;  %v8111_v19 = vld [vmem:[%s8299_s12 + $0x50] ss:$12 sps:$4 sm:$0xff]  }
 0xbad   :  { %v4305_v6 = vpop.f32.mrf.mxu0  ;;  %v4345_v15 = vpop.f32.mrf.mxu1  ;;  %v8124_v5 = vld [vmem:[%s8299_s12 + $0x30] ss:$12 sps:$4 sm:$0xff]  }
 0xbae   :  { %6524 = vpow2.f32 %v5473_v48  ;;  %v5474_v2 = vmul.f32 -1.442695, %v4368_v27  ;;  %v8046_v15 = vld [vmem:[%s8299_s12 + $0xa8] ss:$12 sps:$4 sm:$0xff]   ;;  %v8077_v27 = vld [vmem:[%s8299_s12 + $0x78] ss:$12 sps:$4 sm:$0xff]  }
 0xbaf   :  { %v4306_v63 = vpop.f32.mrf.mxu0  ;;  %v6042_v35 = vpop.f32.mrf.mxu1 }
 0xbb0   :  { %6526 = vpow2.f32 %v5474_v2  ;;  %v8063_v63 = vld [vmem:[%s8299_s12 + $0x90] ss:$12 sps:$4 sm:$0xff]  }
 0xbb1   :  { %v8070_v35 = vld [vmem:[%s8299_s12 + $0x7c] ss:$12 sps:$4 sm:$0xff]   ;;  %v8084_v2 = vld [vmem:[%s8299_s12 + $0x64] ss:$12 sps:$4 sm:$0xff]  }
 0xbbb   :  { %v6525_v21 = vpop.eup %6524 }
 0xbbc   :  { %v4365_v20 = vadd.f32 1.0, %v6525_v21  ;;  %v8091_v21 = vld [vmem:[%s8299_s12 + $0x60] ss:$12 sps:$4 sm:$0xff]  }
 0xbbd   :  { %v6527_v17 = vpop.eup %6526 }
 0xbbe   :  { %6528 = vrcp.f32 %v4365_v20  ;;  %v4372_v1 = vadd.f32 1.0, %v6527_v17  ;;  %v8098_v20 = vld [vmem:[%s8299_s12 + $0x4c] ss:$12 sps:$4 sm:$0xff]   ;;  %v8105_v17 = vld [vmem:[%s8299_s12 + $0x48] ss:$12 sps:$4 sm:$0xff]  }
 0xbc0   :  { %6530 = vrcp.f32 %v4372_v1  ;;  %v8117_v1 = vld [vmem:[%s8299_s12 + $0x34] ss:$12 sps:$4 sm:$0xff]  }
 0xbcb   :  { %v6529_v28 = vpop.eup %6528 }
 0xbcc   :  { %v4376_v29 = vmul.f32 %v6529_v28, %v4375_v52  ;;  %v8130_v52 = vld [vmem:[%s8299_s12 + $0x38] ss:$12 sps:$4 sm:$0xff]   ;;  %v8136_v28 = vld [vmem:[%s8299_s12 + $0x1c] ss:$12 sps:$4 sm:$0xff]  }
 0xbcd   :  { %v6531_v24 = vpop.eup %6530 }
 0xbce   :  { %v4377_v54 = vadd.f32 %v4376_v29, %v4360_v46  ;;  %v4379_v53 = vsub.f32 1.0, %v6531_v24  ;;  %v4381_v50 = vmul.f32 %v6531_v24, %v7925_v61  ;;  %v8143_v46 = vld [vmem:[%s8299_s12 + $0x18] ss:$12 sps:$4 sm:$0xff]   ;;  %v8149_v29 = vld [vmem:[%s8299_s12 + $0x20] ss:$12 sps:$4 sm:$0xff]  }
 0xbcf   :  { %v8162_v24 = vld [vmem:[%s8299_s12] ss:$12 sps:$4 sm:$0xff]  }
 0xbd0   :  { %6532 = vtanh.f32 %v4377_v54  ;;  %v8155_v54 = vld [vmem:[%s8299_s12 + $0x4] ss:$12 sps:$4 sm:$0xff]  }
 0xbdd   :  { %v6533_v44 = vpop.eup %6532 }
 0xbde   :  { %v4380_v34 = vmul.f32 %v6533_v44, %v4379_v53  ;;  %v8168_v53 = vld [vmem:[%s8299_s12 + $0x8] ss:$12 sps:$4 sm:$0xff]  }
 0xbe0   :  { %v7970_v58 = vadd.f32 %v4381_v50, %v4380_v34 }
 0xbe2   :  { %v4383_v22 = vpack.c.bf16 %v7970_v58, %v7970_v58 }
 0xbe4   :  { %4417 = vmatmul.mubr.bf16.vlgmr.msra.gmra.mxu0 %v4383_v22  ;;  %6060 = vmatmul.mubr.bf16.vlgmr.msra.gmra.mxu1 %v4383_v22 }
 0xbe5   :  { %4502 = vmatpush1.bf16.msra.mxu0 %v7560_v33  ;;  %6064 = vmatpush3.bf16.msra.mxu1 %v7978_v43  ;;  %v7990_v33 = vld [vmem:[%s8299_s12 + $0x98] ss:$12 sps:$4 sm:$0xff]  }
 0xbe6   :  { %4503 = vmatprep.subr.bf16.mxu0 %v7567_v36  ;;  %6065 = vmatprep.subr.bf16.mxu1 %v8317_v51  ;;  %v7999_v36 = vld [vmem:[%s8299_s12 + $0x80] ss:$12 sps:$4 sm:$0xff]  }
 0xbe7   :  { %4533 = vmatprep.mubr.bf16.mxu0 %v8318_v49  ;;  %6079 = vmatprep.mubr.msk.bf16.mxu1 %vm6845_vm1, %v8317_v51 }
 0xbe9   :  { %4504 = vmatpush1.bf16.msra.mxu0 %v7585_v23  ;;  %6066 = vmatpush3.bf16.msra.mxu1 %v7990_v33  ;;  %v8008_v23 = vld [vmem:[%s8299_s12 + $0x68] ss:$12 sps:$4 sm:$0xff]  }
 0xbea   :  { %4505 = vmatprep.subr.bf16.mxu0 %v7591_v30  ;;  %6067 = vmatprep.subr.bf16.mxu1 %v8317_v51  ;;  %v8030_v30 = vld [vmem:[%s8299_s12 + $0xac] ss:$12 sps:$4 sm:$0xff]  }
 0xbed   :  { %4506 = vmatpush1.bf16.msra.mxu0 %v7604_v40  ;;  %6068 = vmatpush3.bf16.msra.mxu1 %v7999_v36 }
 0xbee   :  { %4507 = vmatprep.subr.bf16.mxu0 %v7610_v41  ;;  %6069 = vmatprep.subr.bf16.mxu1 %v8317_v51 }
 0xbf1   :  { %4508 = vmatpush1.bf16.msra.mxu0 %v7626_v42  ;;  %6070 = vmatpush3.bf16.msra.mxu1 %v8008_v23 }
 0xbf2   :  { %4509 = vmatprep.subr.bf16.mxu0 %v7632_v3  ;;  %6071 = vmatprep.subr.bf16.mxu1 %v8317_v51 }
 0xbf5   :  { %4510 = vmatpush1.bf16.msra.mxu0 %v7645_v7  ;;  %6072 = vmatpush3.bf16.msra.mxu1 %v7597_v39 }
 0xbf6   :  { %4511 = vmatprep.subr.bf16.mxu0 %v7651_v8  ;;  %6073 = vmatprep.subr.bf16.mxu1 %v8317_v51 }
 0xbf9   :  { %4512 = vmatpush1.bf16.msra.mxu0 %v7667_v10  ;;  %6074 = vmatpush3.bf16.msra.mxu1 %v7616_v59 }
 0xbfa   :  { %4513 = vmatprep.subr.bf16.mxu0 %v7673_v12  ;;  %6075 = vmatprep.subr.bf16.mxu1 %v8317_v51 }
 0xbfd   :  { %4514 = vmatpush1.bf16.msra.mxu0 %v7681_v13  ;;  %6076 = vmatpush3.bf16.msra.mxu1 %v7638_v4 }
 0xbfe   :  { %4515 = vmatprep.subr.bf16.mxu0 %v7687_v16  ;;  %6077 = vmatprep.subr.bf16.mxu1 %v8317_v51 }
 0xc01   :  { %4516 = vmatpush1.bf16.msra.mxu0 %v7700_v11  ;;  %6078 = vmatpush3.bf16.msra.mxu1 %v7657_v9 }
 0xc02   :  { %4618 = vmatprep.subr.bf16.mxu0 %v8030_v30  ;;  %6083 = vmatprep.subr.bf16.mxu1 %v8317_v51 }
 0xca4   :  { %v4418_v39 = vpop.f32.mrf.mxu0  ;;  %v4459_v40 = vpop.f32.mrf.mxu1 }
 0xca5   :  { %v4478_v41 = vadd.f32 %v7854_v26, %v4418_v39  ;;  %v4492_v61 = vadd.f32 %v7876_v14, %v4459_v40 }
 0xca6   :  { %v4420_v59 = vpop.f32.mrf.mxu0  ;;  %v6061_v42 = vpop.f32.mrf.mxu1 }
 0xca7   :  { %v5475_v3 = vmul.f32 -1.442695, %v4478_v41  ;;  %v4485_v10 = vadd.f32 %v7856_v60, %v4420_v59 }
 0xca8   :  { %v4422_v4 = vpop.f32.mrf.mxu0  ;;  %v4462_v7 = vpop.f32.mrf.mxu1 }
 0xca9   :  { %6534 = vpow2.f32 %v5475_v3  ;;  %v5476_v12 = vmul.f32 -1.442695, %v4485_v10  ;;  %v4591_v10 = vunpack.c.h.bf16 %v7803_v47 }
 0xcaa   :  { %v4423_v8 = vpop.f32.mrf.mxu0  ;;  %v6062_v9 = vpop.f32.mrf.mxu1 }
 0xcab   :  { %6536 = vpow2.f32 %v5476_v12 }
 0xcb6   :  { %v6535_v13 = vpop.eup %6534 }
 0xcb7   :  { %v4482_v16 = vadd.f32 1.0, %v6535_v13 }
 0xcb8   :  { %v6537_v11 = vpop.eup %6536 }
 0xcb9   :  { %6538 = vrcp.f32 %v4482_v16  ;;  %v4489_v62 = vadd.f32 1.0, %v6537_v11 }
 0xcbb   :  { %6540 = vrcp.f32 %v4489_v62 }
 0xcc6   :  { %v6539_v26 = vpop.eup %6538 }
 0xcc7   :  { %v4493_v56 = vmul.f32 %v6539_v26, %v4492_v61 }
 0xcc8   :  { %v6541_v57 = vpop.eup %6540 }
 0xcc9   :  { %v4494_v55 = vadd.f32 %v4493_v56, %v7844_v25  ;;  %v4496_v32 = vsub.f32 1.0, %v6541_v57  ;;  %v4498_v60 = vmul.f32 %v6541_v57, %v7970_v58  ;;  %v8053_v25 = vld [vmem:[%s8299_s12 + $0x94] ss:$12 sps:$4 sm:$0xff]  }
 0xccb   :  { %6542 = vtanh.f32 %v4494_v55 }
 0xcd8   :  { %v6543_v37 = vpop.eup %6542 }
 0xcd9   :  { %v4497_v38 = vmul.f32 %v6543_v37, %v4496_v32 }
 0xcdb   :  { %v8039_v48 = vadd.f32 %v4498_v60, %v4497_v38 }
 0xcdd   :  { %v4500_v6 = vpack.c.bf16 %v8039_v48, %v8039_v48 }
 0xcdf   :  { %4534 = vmatmul.mubr.bf16.vlgmr.msra.gmra.mxu0 %v4500_v6  ;;  %6080 = vmatmul.mubr.bf16.vlgmr.msra.gmra.mxu1 %v4500_v6 }
 0xce0   :  { %4619 = vmatpush1.bf16.msra.mxu0 %v8046_v15  ;;  %6084 = vmatpush3.bf16.msra.mxu1 %v7978_v43 }
 0xce1   :  { %4620 = vmatprep.subr.bf16.mxu0 %v8053_v25  ;;  %6085 = vmatprep.subr.bf16.mxu1 %v8317_v51 }
 0xce2   :  { %4650 = vmatprep.mubr.bf16.mxu0 %v8318_v49  ;;  %6099 = vmatprep.mubr.msk.bf16.mxu1 %vm6845_vm1, %v8317_v51 }
 0xce4   :  { %4621 = vmatpush1.bf16.msra.mxu0 %v8063_v63  ;;  %6086 = vmatpush3.bf16.msra.mxu1 %v7990_v33 }
 0xce5   :  { %4622 = vmatprep.subr.bf16.mxu0 %v8070_v35  ;;  %6087 = vmatprep.subr.bf16.mxu1 %v8317_v51 }
 0xce8   :  { %4623 = vmatpush1.bf16.msra.mxu0 %v8077_v27  ;;  %6088 = vmatpush3.bf16.msra.mxu1 %v7999_v36 }
 0xce9   :  { %4624 = vmatprep.subr.bf16.mxu0 %v8084_v2  ;;  %6089 = vmatprep.subr.bf16.mxu1 %v8317_v51 }
 0xcec   :  { %4625 = vmatpush1.bf16.msra.mxu0 %v8091_v21  ;;  %6090 = vmatpush3.bf16.msra.mxu1 %v8008_v23 }
 0xced   :  { %4626 = vmatprep.subr.bf16.mxu0 %v8098_v20  ;;  %6091 = vmatprep.subr.bf16.mxu1 %v8317_v51 }
 0xcf0   :  { %4627 = vmatpush1.bf16.msra.mxu0 %v8105_v17  ;;  %6092 = vmatpush3.bf16.msra.mxu1 %v8111_v19 }
 0xcf1   :  { %4628 = vmatprep.subr.bf16.mxu0 %v8117_v1  ;;  %6093 = vmatprep.subr.bf16.mxu1 %v8317_v51 }
 0xcf4   :  { %4629 = vmatpush1.bf16.msra.mxu0 %v8124_v5  ;;  %6094 = vmatpush3.bf16.msra.mxu1 %v8130_v52 }
 0xcf5   :  { %4630 = vmatprep.subr.bf16.mxu0 %v8136_v28  ;;  %6095 = vmatprep.subr.bf16.mxu1 %v8317_v51 }
 0xcf8   :  { %4631 = vmatpush1.bf16.msra.mxu0 %v8143_v46  ;;  %6096 = vmatpush3.bf16.msra.mxu1 %v8149_v29 }
 0xcf9   :  { %4632 = vmatprep.subr.bf16.mxu0 %v8155_v54  ;;  %6097 = vmatprep.subr.bf16.mxu1 %v8317_v51 }
 0xcfc   :  { %4633 = vmatpush1.bf16.msra.mxu0 %v8162_v24  ;;  %6098 = vmatpush3.bf16.msra.mxu1 %v8168_v53 }
 0xcfd   :  { %4735 = vmatprep.subr.bf16.mxu0 %v8030_v30  ;;  %6103 = vmatprep.subr.bf16.mxu1 %v8317_v51 }
 0xd9f   :  { %v4535_v44 = vpop.f32.mrf.mxu0  ;;  %v4576_v34 = vpop.f32.mrf.mxu1 }
 0xda0   :  { %v4595_v50 = vadd.f32 %v7846_v45, %v4535_v44  ;;  %v4586_v45 = vunpack.c.l.bf16 %v7800_v31  ;;  %v4609_v13 = vadd.f32 %v7876_v14, %v4576_v34 }
 0xda1   :  { %v4537_v58 = vpop.f32.mrf.mxu0  ;;  %v6081_v22 = vpop.f32.mrf.mxu1 }
 0xda2   :  { %v5477_v39 = vmul.f32 -1.442695, %v4595_v50  ;;  %v4602_v3 = vadd.f32 %v7848_v0, %v4537_v58  ;;  %v4594_v11 = vadd.f32 %v4591_v10, %v4586_v45  ;;  %v8319_v22 = vld [vmem:[#allocation30_spill] sm:$0xff] }
 0xda3   :  { %v4539_v40 = vpop.f32.mrf.mxu0  ;;  %v4579_v41 = vpop.f32.mrf.mxu1 }
 0xda4   :  { %6544 = vpow2.f32 %v5477_v39  ;;  %v5478_v4 = vmul.f32 -1.442695, %v4602_v3 }
 0xda5   :  { %v4540_v59 = vpop.f32.mrf.mxu0  ;;  %v6082_v42 = vpop.f32.mrf.mxu1 }
 0xda6   :  { %6546 = vpow2.f32 %v5478_v4 }
 0xdb1   :  { %v6545_v7 = vpop.eup %6544 }
 0xdb2   :  { %v4599_v8 = vadd.f32 1.0, %v6545_v7  ;;  %v8320_v7 = vld [vmem:[#allocation28_spill] sm:$0xff] }
 0xdb3   :  { %v6547_v9 = vpop.eup %6546 }
 0xdb4   :  { %6548 = vrcp.f32 %v4599_v8  ;;  %v4606_v12 = vadd.f32 1.0, %v6547_v9 }
 0xdb6   :  { %6550 = vrcp.f32 %v4606_v12 }
 0xdc1   :  { %v6549_v16 = vpop.eup %6548 }
 0xdc2   :  { %v4610_v62 = vmul.f32 %v6549_v16, %v4609_v13 }
 0xdc3   :  { %v6551_v0 = vpop.eup %6550 }
 0xdc4   :  { %v4611_v61 = vadd.f32 %v4610_v62, %v4594_v11  ;;  %v4613_v26 = vsub.f32 1.0, %v6551_v0  ;;  %v4615_v57 = vmul.f32 %v6551_v0, %v8039_v48  ;;  %v6616_v0 = vld [vmem:[#allocation2 + $0x50] ss:$12 sps:$4 sm:$0xff]  }
 0xdc6   :  { %6552 = vtanh.f32 %v4611_v61 }
 0xdd3   :  { %v6553_v56 = vpop.eup %6552 }
 0xdd4   :  { %v4614_v55 = vmul.f32 %v6553_v56, %v4613_v26  ;;  %v4820_v26 = vunpack.c.l.bf16 %v6616_v0 }
 0xdd6   :  { %v8179_v32 = vadd.f32 %v4615_v57, %v4614_v55 }
 0xdd8   :  { %v4617_v47 = vpack.c.bf16 %v8179_v32, %v8179_v32 }
 0xdda   :  { %4651 = vmatmul.mubr.bf16.vlgmr.msra.gmra.mxu0 %v4617_v47  ;;  %6100 = vmatmul.mubr.bf16.vlgmr.msra.gmra.mxu1 %v4617_v47 }
 0xddb   :  { %4736 = vmatpush1.bf16.msra.mxu0 %v8046_v15  ;;  %6104 = vmatpush3.bf16.msra.mxu1 %v7978_v43 }
 0xddc   :  { %4737 = vmatprep.subr.bf16.mxu0 %v8053_v25  ;;  %6105 = vmatprep.subr.bf16.mxu1 %v8317_v51 }
 0xddd   :  { %4767 = vmatprep.mubr.bf16.mxu0 %v8318_v49  ;;  %6119 = vmatprep.mubr.msk.bf16.mxu1 %vm6845_vm1, %v8317_v51 }
 0xddf   :  { %4738 = vmatpush1.bf16.msra.mxu0 %v8063_v63  ;;  %6106 = vmatpush3.bf16.msra.mxu1 %v7990_v33 }
 0xde0   :  { %4739 = vmatprep.subr.bf16.mxu0 %v8070_v35  ;;  %6107 = vmatprep.subr.bf16.mxu1 %v8317_v51 }
 0xde3   :  { %4740 = vmatpush1.bf16.msra.mxu0 %v8077_v27  ;;  %6108 = vmatpush3.bf16.msra.mxu1 %v7999_v36 }
 0xde4   :  { %4741 = vmatprep.subr.bf16.mxu0 %v8084_v2  ;;  %6109 = vmatprep.subr.bf16.mxu1 %v8317_v51 }
 0xde7   :  { %4742 = vmatpush1.bf16.msra.mxu0 %v8091_v21  ;;  %6110 = vmatpush3.bf16.msra.mxu1 %v8008_v23 }
 0xde8   :  { %4743 = vmatprep.subr.bf16.mxu0 %v8098_v20  ;;  %6111 = vmatprep.subr.bf16.mxu1 %v8317_v51 }
 0xdeb   :  { %4744 = vmatpush1.bf16.msra.mxu0 %v8105_v17  ;;  %6112 = vmatpush3.bf16.msra.mxu1 %v8111_v19 }
 0xdec   :  { %4745 = vmatprep.subr.bf16.mxu0 %v8117_v1  ;;  %6113 = vmatprep.subr.bf16.mxu1 %v8317_v51 }
 0xdef   :  { %4746 = vmatpush1.bf16.msra.mxu0 %v8124_v5  ;;  %6114 = vmatpush3.bf16.msra.mxu1 %v8130_v52 }
 0xdf0   :  { %4747 = vmatprep.subr.bf16.mxu0 %v8136_v28  ;;  %6115 = vmatprep.subr.bf16.mxu1 %v8317_v51 }
 0xdf3   :  { %4748 = vmatpush1.bf16.msra.mxu0 %v8143_v46  ;;  %6116 = vmatpush3.bf16.msra.mxu1 %v8149_v29 }
 0xdf4   :  { %4749 = vmatprep.subr.bf16.mxu0 %v8155_v54  ;;  %6117 = vmatprep.subr.bf16.mxu1 %v8317_v51 }
 0xdf7   :  { %4750 = vmatpush1.bf16.msra.mxu0 %v8162_v24  ;;  %6118 = vmatpush3.bf16.msra.mxu1 %v8168_v53 }
 0xdf8   :  { %4852 = vmatprep.subr.bf16.mxu0 %v8030_v30  ;;  %6123 = vmatprep.subr.bf16.mxu1 %v8317_v51 }
 0xe9a   :  { %v4652_v31 = vpop.f32.mrf.mxu0  ;;  %v4693_v37 = vpop.f32.mrf.mxu1 }
 0xe9b   :  { %v4712_v38 = vadd.f32 %v7838_v18, %v4652_v31  ;;  %v4726_v3 = vadd.f32 %v7876_v14, %v4693_v37 }
 0xe9c   :  { %v4654_v60 = vpop.f32.mrf.mxu0  ;;  %v6101_v48 = vpop.f32.mrf.mxu1 }
 0xe9d   :  { %v5479_v6 = vmul.f32 -1.442695, %v4712_v38  ;;  %v4719_v39 = vadd.f32 %v8319_v22, %v4654_v60  ;;  %v6419_v22 = vld [vmem:[#allocation19 + $0x20] sm:$0xff]  }
 0xe9e   :  { %v4656_v44 = vpop.f32.mrf.mxu0  ;;  %v4696_v34 = vpop.f32.mrf.mxu1 }
 0xe9f   :  { %6554 = vpow2.f32 %v5479_v6  ;;  %v5480_v40 = vmul.f32 -1.442695, %v4719_v39  ;;  %v6416_v34 = vld [vmem:[#allocation19 + $0x38] sm:$0xff]  }
 0xea0   :  { %v4657_v50 = vpop.f32.mrf.mxu0  ;;  %v6102_v58 = vpop.f32.mrf.mxu1  ;;  %v6420_v39 = vld [vmem:[#allocation19 + $0x18] sm:$0xff]  }
 0xea1   :  { %6556 = vpow2.f32 %v5480_v40  ;;  %v6417_v50 = vld [vmem:[#allocation19 + $0x30] sm:$0xff]   ;;  %v6418_v58 = vld [vmem:[#allocation19 + $0x28] sm:$0xff]  }
 0xea2   :  { %v6421_v40 = vld [vmem:[#allocation19 + $0x10] sm:$0xff]  }
 0xeac   :  { %v6555_v41 = vpop.eup %6554 }
 0xead   :  { %v4716_v30 = vadd.f32 1.0, %v6555_v41  ;;  %v6422_v41 = vld [vmem:[#allocation19 + $0x8] sm:$0xff]  }
 0xeae   :  { %v6557_v59 = vpop.eup %6556 }
 0xeaf   :  { %6558 = vrcp.f32 %v4716_v30  ;;  %v4723_v42 = vadd.f32 1.0, %v6557_v59  ;;  %v6423_v30 = vld [vmem:[#allocation19] sm:$0xff]   ;;  %v4938_v59 = vld [vmem:[#allocation3] sm:$0xff] }
 0xeb1   :  { %6560 = vrcp.f32 %v4723_v42  ;;  %v4933_v42 = vld [vmem:[#allocation2 + $0x54] sm:$0xff] }
 0xebc   :  { %v6559_v18 = vpop.eup %6558 }
 0xebd   :  { %v4727_v4 = vmul.f32 %v6559_v18, %v4726_v3  ;;  %v4940_v3 = vunpack.c.l.bf16 %v4938_v59  ;;  %v4935_v18 = vunpack.c.l.bf16 %v4933_v42 }
 0xebe   :  { %v6561_v9 = vpop.eup %6560 }
 0xebf   :  { %v4728_v8 = vadd.f32 %v4727_v4, %v8320_v7  ;;  %v4730_v10 = vsub.f32 1.0, %v6561_v9  ;;  %v4732_v13 = vmul.f32 %v6561_v9, %v8179_v32  ;;  %v4943_v4 = vadd.f32 %v4940_v3, %v4935_v18 }
 0xec1   :  { %6562 = vtanh.f32 %v4728_v8 }
 0xece   :  { %v6563_v12 = vpop.eup %6562 }
 0xecf   :  { %v4731_v45 = vmul.f32 %v6563_v12, %v4730_v10  ;;  %v4941_v10 = vunpack.c.h.bf16 %v4938_v59 }
 0xed1   :  { %v8223_v16 = vadd.f32 %v4732_v13, %v4731_v45 }
 0xed3   :  { %v4734_v11 = vpack.c.bf16 %v8223_v16, %v8223_v16 }
 0xed5   :  { %4768 = vmatmul.mubr.bf16.vlgmr.msra.gmra.mxu0 %v4734_v11  ;;  %6120 = vmatmul.mubr.bf16.vlgmr.msra.gmra.mxu1 %v4734_v11 }
 0xed6   :  { %4853 = vmatpush1.bf16.msra.mxu0 %v8046_v15  ;;  %6124 = vmatpush3.bf16.msra.mxu1 %v7978_v43  ;;  %v8321_v43 = vld [vmem:[#allocation27_spill] sm:$0xff] }
 0xed7   :  { %4854 = vmatprep.subr.bf16.mxu0 %v8053_v25  ;;  %6125 = vmatprep.subr.bf16.mxu1 %v8317_v51 }
 0xed8   :  { %4884 = vmatprep.mubr.bf16.mxu0 %v8318_v49  ;;  %6139 = vmatprep.mubr.msk.bf16.mxu1 %vm6845_vm1, %v8317_v51  ;;  %v4816_v49 = vld [vmem:[#allocation2 + $0x48] sm:$0xff] }
 0xeda   :  { %4855 = vmatpush1.bf16.msra.mxu0 %v8063_v63  ;;  %6126 = vmatpush3.bf16.msra.mxu1 %v7990_v33  ;;  %v4823_v33 = vunpack.c.l.bf16 %v8321_v43 }
 0xedb   :  { %4856 = vmatprep.subr.bf16.mxu0 %v8070_v35  ;;  %6127 = vmatprep.subr.bf16.mxu1 %v8317_v51  ;;  %v4824_v35 = vunpack.c.h.bf16 %v8321_v43 }
 0xede   :  { %4857 = vmatpush1.bf16.msra.mxu0 %v8077_v27  ;;  %6128 = vmatpush3.bf16.msra.mxu1 %v7999_v36  ;;  %v4818_v36 = vunpack.c.l.bf16 %v4816_v49 }
 0xedf   :  { %4858 = vmatprep.subr.bf16.mxu0 %v8084_v2  ;;  %6129 = vmatprep.subr.bf16.mxu1 %v8317_v51 }
 0xee2   :  { %4859 = vmatpush1.bf16.msra.mxu0 %v8091_v21  ;;  %6130 = vmatpush3.bf16.msra.mxu1 %v8008_v23  ;;  %v4826_v23 = vadd.f32 %v4823_v33, %v4818_v36 }
 0xee3   :  { %4860 = vmatprep.subr.bf16.mxu0 %v8098_v20  ;;  %6131 = vmatprep.subr.bf16.mxu1 %v8317_v51  ;;  %v4819_v20 = vunpack.c.h.bf16 %v4816_v49 }
 0xee6   :  { %4861 = vmatpush1.bf16.msra.mxu0 %v8105_v17  ;;  %6132 = vmatpush3.bf16.msra.mxu1 %v8111_v19 }
 0xee7   :  { %4862 = vmatprep.subr.bf16.mxu0 %v8117_v1  ;;  %6133 = vmatprep.subr.bf16.mxu1 %v8317_v51  ;;  %v4827_v1 = vadd.f32 %v4824_v35, %v4819_v20  ;;  %v8322_v20 = vld [vmem:[#allocation29_spill] sm:$0xff] }
 0xeea   :  { %4863 = vmatpush1.bf16.msra.mxu0 %v8124_v5  ;;  %6134 = vmatpush3.bf16.msra.mxu1 %v8130_v52 }
 0xeeb   :  { %4864 = vmatprep.subr.bf16.mxu0 %v8136_v28  ;;  %6135 = vmatprep.subr.bf16.mxu1 %v8317_v51 }
 0xeee   :  { %4865 = vmatpush1.bf16.msra.mxu0 %v8143_v46  ;;  %6136 = vmatpush3.bf16.msra.mxu1 %v8149_v29 }
 0xeef   :  { %4866 = vmatprep.subr.bf16.mxu0 %v8155_v54  ;;  %6137 = vmatprep.subr.bf16.mxu1 %v8317_v51 }
 0xef2   :  { %4867 = vmatpush1.bf16.msra.mxu0 %v8162_v24  ;;  %6138 = vmatpush3.bf16.msra.mxu1 %v8168_v53  ;;  %v6615_v53 = vld [vmem:[#allocation3 + $0x8] ss:$12 sps:$4 sm:$0xff]  }
 0xef3   :  { %6143 = vmatprep.subr.bf16.mxu0 %v8317_v51  ;;  %v4825_v62 = vunpack.c.h.bf16 %v6615_v53 }
 0xef5   :  { %v4828_v57 = vadd.f32 %v4825_v62, %v4820_v26 }
 0xf95   :  { %v4769_v15 = vpop.f32.mrf.mxu0  ;;  %v4810_v25 = vpop.f32.mrf.mxu1 }
 0xf96   :  { %v4829_v63 = vadd.f32 %v4826_v23, %v4769_v15  ;;  %v4843_v56 = vadd.f32 %v7876_v14, %v4810_v25 }
 0xf97   :  { %v4771_v27 = vpop.f32.mrf.mxu0  ;;  %v6121_v2 = vpop.f32.mrf.mxu1 }
 0xf98   :  { %v5481_v21 = vmul.f32 -1.442695, %v4829_v63  ;;  %v4836_v28 = vadd.f32 %v4827_v1, %v4771_v27 }
 0xf99   :  { %v4773_v17 = vpop.f32.mrf.mxu0  ;;  %v4813_v19 = vpop.f32.mrf.mxu1 }
 0xf9a   :  { %6564 = vpow2.f32 %v5481_v21  ;;  %v5482_v46 = vmul.f32 -1.442695, %v4836_v28 }
 0xf9b   :  { %v4774_v5 = vpop.f32.mrf.mxu0  ;;  %v6122_v52 = vpop.f32.mrf.mxu1 }
 0xf9c   :  { %6566 = vpow2.f32 %v5482_v46 }
 0xfa7   :  { %v6565_v29 = vpop.eup %6564 }
 0xfa8   :  { %v4833_v54 = vadd.f32 1.0, %v6565_v29 }
 0xfa9   :  { %v6567_v24 = vpop.eup %6566 }
 0xfaa   :  { %6568 = vrcp.f32 %v4833_v54  ;;  %v4840_v61 = vadd.f32 1.0, %v6567_v24  ;;  %v4968_v54 = vld [vmem:[%s8303_s16] sm:$0xff] }
 0xfac   :  { %6570 = vrcp.f32 %v4840_v61 }
 0xfb7   :  { %v6569_v55 = vpop.eup %6568 }
 0xfb8   :  { %v4844_v32 = vmul.f32 %v6569_v55, %v4843_v56 }
 0xfb9   :  { %v6571_v31 = vpop.eup %6570 }
 0xfba   :  { %v4845_v47 = vadd.f32 %v4844_v32, %v4828_v57  ;;  %v4847_v37 = vsub.f32 1.0, %v6571_v31  ;;  %v4849_v48 = vmul.f32 %v6571_v31, %v8223_v16  ;;  %v4936_v16 = vunpack.c.h.bf16 %v4933_v42 }
 0xfbc   :  { %6572 = vtanh.f32 %v4845_v47  ;;  %v4944_v43 = vadd.f32 %v4941_v10, %v4936_v16 }
 0xfc9   :  { %v6573_v38 = vpop.eup %6572 }
 0xfca   :  { %v4848_v60 = vmul.f32 %v6573_v38, %v4847_v37 }
 0xfcc   :  { %v8265_v6 = vadd.f32 %v4849_v48, %v4848_v60 }
 0xfce   :  { %v4851_v44 = vpack.c.bf16 %v8265_v6, %v8265_v6 }
 0xfd0   :  { %4885 = vmatmul.mubr.bf16.vlgmr.msra.gmra.mxu0 %v4851_v44  ;;  %6140 = vmatmul.mubr.bf16.vlgmr.msra.gmra.mxu1 %v4851_v44 }
 0xfd1   :  { %6159 = vmatprep.mubr.msk.bf16.mxu0 %vm6845_vm1, %v8317_v51  ;;  %6144 = vmatpush3.bf16.msra.mxu0 %v6416_v34 }
 0xfd2   :  { %6145 = vmatprep.subr.bf16.mxu0 %v8317_v51 }
 0xfd5   :  { %6146 = vmatpush3.bf16.msra.mxu0 %v6417_v50 }
 0xfd6   :  { %6147 = vmatprep.subr.bf16.mxu0 %v8317_v51 }
 0xfd9   :  { %6148 = vmatpush3.bf16.msra.mxu0 %v6418_v58 }
 0xfda   :  { %6149 = vmatprep.subr.bf16.mxu0 %v8317_v51 }
 0xfdd   :  { %6150 = vmatpush3.bf16.msra.mxu0 %v6419_v22 }
 0xfde   :  { %6151 = vmatprep.subr.bf16.mxu0 %v8317_v51 }
 0xfe1   :  { %6152 = vmatpush3.bf16.msra.mxu0 %v6420_v39 }
 0xfe2   :  { %6153 = vmatprep.subr.bf16.mxu0 %v8317_v51 }
 0xfe5   :  { %6154 = vmatpush3.bf16.msra.mxu0 %v6421_v40 }
 0xfe6   :  { %6155 = vmatprep.subr.bf16.mxu0 %v8317_v51 }
 0xfe9   :  { %6156 = vmatpush3.bf16.msra.mxu0 %v6422_v41 }
 0xfea   :  { %6157 = vmatprep.subr.bf16.mxu0 %v8317_v51 }
 0xfed   :  { %6158 = vmatpush3.bf16.msra.mxu0 %v6423_v30 }
0x1090   :  { %v4886_v7 = vpop.f32.mrf.mxu0  ;;  %v4927_v8 = vpop.f32.mrf.mxu1 }
0x1091   :  { %v4946_v9 = vadd.f32 %v4943_v4, %v4886_v7  ;;  %v4960_v27 = vadd.f32 %v7876_v14, %v4927_v8 }
0x1092   :  { %v4888_v12 = vpop.f32.mrf.mxu0  ;;  %v6141_v45 = vpop.f32.mrf.mxu1 }
0x1093   :  { %v5483_v13 = vmul.f32 -1.442695, %v4946_v9  ;;  %v4953_v36 = vadd.f32 %v4944_v43, %v4888_v12 }
0x1094   :  { %v4890_v11 = vpop.f32.mrf.mxu0  ;;  %v4930_v49 = vpop.f32.mrf.mxu1 }
0x1095   :  { %6574 = vpow2.f32 %v5483_v13  ;;  %v5484_v23 = vmul.f32 -1.442695, %v4953_v36 }
0x1096   :  { %v4891_v33 = vpop.f32.mrf.mxu0  ;;  %v6142_v51 = vpop.f32.mrf.mxu1 }
0x1097   :  { %6576 = vpow2.f32 %v5484_v23 }
0x10a2   :  { %v6575_v15 = vpop.eup %6574 }
0x10a3   :  { %v4950_v25 = vadd.f32 1.0, %v6575_v15 }
0x10a4   :  { %v6577_v63 = vpop.eup %6576 }
0x10a5   :  { %6578 = vrcp.f32 %v4950_v25  ;;  %v4957_v35 = vadd.f32 1.0, %v6577_v63 }
0x10a7   :  { %6580 = vrcp.f32 %v4957_v35 }
0x10b2   :  { %v6579_v2 = vpop.eup %6578 }
0x10b3   :  { %v4961_v21 = vmul.f32 %v6579_v2, %v4960_v27 }
0x10b4   :  { %v6581_v19 = vpop.eup %6580 }
0x10b5   :  { %v4962_v17 = vadd.f32 %v4961_v21, %v8322_v20  ;;  %v4964_v1 = vsub.f32 1.0, %v6581_v19  ;;  %v4966_v28 = vmul.f32 %v6581_v19, %v8265_v6 }
0x10b7   :  { %6582 = vtanh.f32 %v4962_v17 }
0x10c4   :  { %v6583_v5 = vpop.eup %6582 }
0x10c5   :  { %v4965_v52 = vmul.f32 %v6583_v5, %v4964_v1 }
0x10c7   :  { %v4967_v46 = vadd.f32 %v4966_v28, %v4965_v52 }
0x10c9   :  { %v4969_v29 = vpack.c.bf16 %v4967_v46, %v4967_v46 }
0x10cb   :  { %6160 = vmatmul.mubr.bf16.vlgmr.msra.gmra.mxu0 %v4969_v29 }
0x118b   :  { %v5068_v14 = vpop.f32.mrf.mxu0 }
0x118c   :  { %v5074_v24 = vadd.f32 %v5068_v14, %v4968_v54 }
0x118d   :  { %v6161_v53 = vpop.f32.mrf.mxu0 }
0x118e   :  { %5075 = vst [vmem:[%s8303_s16] sm:$0xff] %v5074_v24 }
0x118f   :  { %v5071_v62 = vpop.f32.mrf.mxu0 }
0x1191   :  { %v6162_v61 = vpop.f32.mrf.mxu0 }
0x1192   :  { %5080 = vsyncpa [#allocation6], 1 }
0x1193   :  { %5081 = vsyncpa [#allocation8], 1 }
0x1194   :  { %5082 = vsyncpa [#allocation11], 1 }
0x1195   :  { %5083 = vsyncpa [#allocation14], 1 }
0x1196   :  { %5084 = vsyncpa [#allocation17], 1 }
0x1197   :  { %5085 = vsyncpa [#allocation20], 1 }

</bundles_post_ra>
